<compile_context>
chip_gen: v5e
topology: v5e:2x2
jax: 0.10.0
libtpu: 0.0.40
codegen_flags: <defaults>
</compile_context>

<pallas_src>
import functools

import jax
import jax.numpy as jnp
from jax.experimental import pallas as pl
from jax.experimental.pallas import tpu as pltpu

_HI = jax.lax.Precision.HIGHEST


# --------------------------- in-kernel activations ---------------------------

def _mish(x):
    # mish(x) = x * tanh(softplus(x)) = x * (1 - 2 / ((1 + e^x)^2 + 1))
    # one EUP exp + one approx EUP reciprocal instead of exp + log + tanh.
    p = 1.0 + jnp.exp(jnp.minimum(x, 30.0))     # clamp: exact for x < 30, never inf
    return x * (1.0 - 2.0 * pl.reciprocal(p * p + 1.0, approx=True))


def _sigmoid(x):
    return pl.reciprocal(1.0 + jnp.exp(jnp.minimum(-x, 30.0)), approx=True)


# --------------------------- in-kernel 3x3 conv -------------------------------

def _conv3x3_lane(x, w9, b, m9, W):
    """3x3 SAME conv in (channels, pixels) layout.

    x  : (Cin, HWp) f32 activation (pixels on lanes)
    w9 : (9, Cout, Cin) bf16 tap weights
    b  : (Cout, 1) f32 bias
    m9 : (9, 1, HWp) f32 {0,1} source-validity masks (in-kernel halo handling)
    """
    Cout = w9.shape[1]
    HWp = x.shape[-1]
    acc = jnp.zeros((Cout, HWp), jnp.float32)
    for dy in range(3):
        for dx in range(3):
            t = dy * 3 + dx
            off = (dy - 1) * W + (dx - 1)
            if off == 0:
                s = x
            else:
                s = pltpu.roll(x, (-off) % HWp, 1) * m9[t]
            acc = acc + jnp.dot(w9[t], s.astype(jnp.bfloat16),
                                preferred_element_type=jnp.float32)
    return acc + b


# --------------------------- fused forward kernel -----------------------------

def _former_fused_kernel(
        x_ref, m9_ref, w1_ref, b1_ref, wqkv_ref, bqkv_ref,
        wq9_ref, bq_ref, wk9_ref, bk_ref, wv9_ref, bv_ref,
        w3_ref, b3_ref, w49_ref, b4_ref, sf_ref, tf_ref,
        w29_ref, b2_ref, w3f9_ref, b3f_ref, o_ref, *, W, C):
    HWp = x_ref.shape[-1]
    m9 = m9_ref[...]                                   # (9, 1, HWp) f32
    x = x_ref[0]                                       # (Cin, HWp) bf16
    s_f = sf_ref[...]                                  # (C, 1) f32
    t_f = tf_ref[...]

    # conv1 (1x1) + mish
    a = _mish(jnp.dot(w1_ref[...], x, preferred_element_type=jnp.float32)
              + b1_ref[...])                           # (C, HWp) f32

    # Former BN -> q/k/v Linear -> PB.conv1 (1x1) -> PB.bn (all pre-folded) -> mish
    z = _mish(jnp.dot(wqkv_ref[...], a.astype(jnp.bfloat16),
                      preferred_element_type=jnp.float32) + bqkv_ref[...])  # (3C, HWp)

    # grouped per-head 3x3 convs of all 3 streams; each tap's lane-roll + edge
    # mask is computed once and shared across q / k / v.
    wq9, wk9, wv9 = wq9_ref[...], wk9_ref[...], wv9_ref[...]
    accq = jnp.zeros((C, HWp), jnp.float32)
    acck = jnp.zeros((C, HWp), jnp.float32)
    accv = jnp.zeros((C, HWp), jnp.float32)
    for dy in range(3):
        for dx in range(3):
            t = dy * 3 + dx
            off = (dy - 1) * W + (dx - 1)
            zs = z if off == 0 else pltpu.roll(z, (-off) % HWp, 1) * m9[t]
            zb = zs.astype(jnp.bfloat16)
            accq = accq + jnp.dot(wq9[t], zb[0:C],
                                  preferred_element_type=jnp.float32)
            acck = acck + jnp.dot(wk9[t], zb[C:2 * C],
                                  preferred_element_type=jnp.float32)
            accv = accv + jnp.dot(wv9[t], zb[2 * C:3 * C],
                                  preferred_element_type=jnp.float32)
    q = accq + bq_ref[...]
    k = acck + bk_ref[...]
    v = accv + bv_ref[...]                             # CSAM BN folded into wv9 / bv

    # attention gate + CSAM conv3 (1x1) + mish
    attn = _sigmoid(q * k) * _mish(v)
    y = _mish(jnp.dot(w3_ref[...], attn.astype(jnp.bfloat16),
                      preferred_element_type=jnp.float32) + b3_ref[...])

    # CSAM conv4 (3x3) + mish, CSAM residual, Former BN + residual
    e = _mish(_conv3x3_lane(y, w49_ref[...], b4_ref[...], m9, W))
    c = s_f * a + t_f + e                              # csam_out = bn_f(a) + branch
    g = a + s_f * c + t_f                              # a + bn_f(csam_out)

    # Former conv2 (3x3, C->C/2) + mish, conv3 (3x3, C/2->C) + mish, residual, BN_f
    pm = _mish(_conv3x3_lane(g, w29_ref[...], b2_ref[...], m9, W))
    q2 = _mish(_conv3x3_lane(pm, w3f9_ref[...], b3f_ref[...], m9, W))
    o_ref[0] = s_f * (g + q2) + t_f


# --------------------------- parameter init -----------------------------------

def _split(key, n):
    return list(jax.random.split(key, n))


def init_bn(key, c):
    k1, k2, k3, k4 = jax.random.split(key, 4)
    return dict(
        g=1.0 + 0.1 * jax.random.normal(k1, (c,), jnp.float32),
        b=0.1 * jax.random.normal(k2, (c,), jnp.float32),
        m=0.1 * jax.random.normal(k3, (c,), jnp.float32),
        v=1.0 + 0.1 * jax.random.uniform(k4, (c,), jnp.float32),
    )


def bn_fold(bn, eps=1e-5):
    s = bn["g"] / jnp.sqrt(bn["v"] + eps)
    return s, bn["b"] - bn["m"] * s


def init_dense(key, cin, cout):
    kw, kb = jax.random.split(key)
    w = jax.random.normal(kw, (cin, cout), jnp.float32) / jnp.sqrt(float(cin))
    b = 0.05 * jax.random.normal(kb, (cout,), jnp.float32)
    return w, b


def init_conv3(key, cin, cout):
    kw, kb = jax.random.split(key)
    w = jax.random.normal(kw, (cout, cin, 3, 3), jnp.float32) / jnp.sqrt(9.0 * cin)
    b = 0.05 * jax.random.normal(kb, (cout,), jnp.float32)
    return w, b


def init_pb(key, c, num_heads):
    hd = c // num_heads
    ks = _split(key, 2 + num_heads)
    w1, b1 = init_dense(ks[0], c, c)
    p = dict(conv1_w=w1, conv1_b=b1, bn=init_bn(ks[1], c), head_w=[], head_b=[])
    for i in range(num_heads):
        w, b = init_conv3(ks[2 + i], hd, hd)
        p["head_w"].append(w)
        p["head_b"].append(b)
    return p


def init_csam(key, c, num_heads):
    ks = _split(key, 9)
    qw, qb = init_dense(ks[0], c, c)
    kw_, kb_ = init_dense(ks[1], c, c)
    vw, vb = init_dense(ks[2], c, c)
    c3w, c3b = init_dense(ks[6], c, c)
    c4w, c4b = init_conv3(ks[7], c, c)
    return dict(q_w=qw, q_b=qb, k_w=kw_, k_b=kb_, v_w=vw, v_b=vb,
                pb1=init_pb(ks[3], c, num_heads),
                pb2=init_pb(ks[4], c, num_heads),
                pb3=init_pb(ks[5], c, num_heads),
                bn=init_bn(ks[8], c),
                conv3_w=c3w, conv3_b=c3b, conv4_w=c4w, conv4_b=c4b)


def init_former(key, in_ch, o_ch, num_heads):
    ks = _split(key, 5)
    w1, b1 = init_dense(ks[0], in_ch, o_ch)          # 1x1 conv as matmul
    w2, b2 = init_conv3(ks[1], o_ch, o_ch // 2)      # 3x3
    w3, b3 = init_conv3(ks[2], o_ch // 2, o_ch)      # 3x3
    return dict(conv1_w=w1, conv1_b=b1, conv2_w=w2, conv2_b=b2,
                conv3_w=w3, conv3_b=b3, bn=init_bn(ks[3], o_ch),
                csam=init_csam(ks[4], o_ch, num_heads))


# --------------------------- weight fusion (wrapper, exact algebra) -----------

def compose_qkv_pb_stage1(cs, s_f, t_f):
    """Compose BN_f -> {q,k,v} Linear -> PB.conv1(1x1) -> PB.bn into one (C, 3C)
    weight + (3C,) bias (channels-last form); mish is the kernel epilogue."""
    Ws, bs = [], []
    for lw, lb, pbk in (("q_w", "q_b", "pb1"),
                        ("k_w", "k_b", "pb2"),
                        ("v_w", "v_b", "pb3")):
        Wl, bl = cs[lw], cs[lb]
        pb = cs[pbk]
        W1, b1 = pb["conv1_w"], pb["conv1_b"]
        s1, t1 = bn_fold(pb["bn"])
        Wc = jnp.dot(Wl, W1, precision=_HI)                    # Linear o 1x1 conv
        bc = jnp.dot(bl, W1, precision=_HI) + b1
        Wf = (s_f[:, None] * Wc) * s1[None, :]                 # BN_f (in) + PB.bn (out)
        bf = (jnp.dot(t_f, Wc, precision=_HI) + bc) * s1 + t1
        Ws.append(Wf)
        bs.append(bf)
    return jnp.concatenate(Ws, axis=1), jnp.concatenate(bs, axis=0)


def _stream_block_diag(pb, C, num_heads):
    """All per-head 3x3 convs of one stream as a block-diagonal (C, C, 3, 3) OIHW."""
    hd = C // num_heads
    Wst = jnp.zeros((C, C, 3, 3), jnp.float32)
    bst = jnp.zeros((C,), jnp.float32)
    for h in range(num_heads):
        o = h * hd
        Wst = Wst.at[o:o + hd, o:o + hd].set(pb["head_w"][h])
        bst = bst.at[o:o + hd].set(pb["head_b"][h])
    return Wst, bst


def _oihw_to_taps(w_oihw):
    o, i = w_oihw.shape[0], w_oihw.shape[1]
    return jnp.transpose(w_oihw, (2, 3, 0, 1)).reshape(9, o, i)


def _tap_masks(H, W, HWp):
    """(9, 1, HWp) {0,1} masks: tap (dy,dx) valid iff the source pixel is in-image."""
    yy = jnp.repeat(jnp.arange(H), W)
    xx = jnp.tile(jnp.arange(W), H)
    ms = []
    for dy in (-1, 0, 1):
        for dx in (-1, 0, 1):
            m = ((yy + dy >= 0) & (yy + dy < H) & (xx + dx >= 0) & (xx + dx < W))
            ms.append(m.astype(jnp.float32))
    m9 = jnp.stack(ms, 0)
    if HWp != H * W:
        m9 = jnp.pad(m9, ((0, 0), (0, HWp - H * W)))
    return m9.reshape(9, 1, HWp)


def _const_spec(arr):
    zeros = (0,) * arr.ndim
    return pl.BlockSpec(arr.shape, lambda n, _z=zeros: _z)


# --------------------------- fused model forward ------------------------------

def former_bottleneck(x_nchw, p, num_heads):
    N, Cin, H, W = x_nchw.shape
    C = p["conv1_w"].shape[1]
    HW = H * W
    HWp = ((HW + 127) // 128) * 128          # lane-pad so loads/stores are lane-dense
    bf16 = jnp.bfloat16
    cs = p["csam"]
    s_f, t_f = bn_fold(p["bn"])
    s_c, t_c = bn_fold(cs["bn"])

    # ---- exact weight fusion (f32), then cast matmul operands to bf16 ----
    w1 = jnp.transpose(p["conv1_w"]).astype(bf16)            # (C, Cin)
    b1 = p["conv1_b"].reshape(C, 1)

    Wqkv, bqkv = compose_qkv_pb_stage1(cs, s_f, t_f)         # (C, 3C), (3C,)
    wqkv = jnp.transpose(Wqkv).astype(bf16)                  # (3C, C)
    bqkv = bqkv.reshape(3 * C, 1)

    wq_o, bq = _stream_block_diag(cs["pb1"], C, num_heads)
    wk_o, bk = _stream_block_diag(cs["pb2"], C, num_heads)
    wv_o, bv = _stream_block_diag(cs["pb3"], C, num_heads)
    wv_o = wv_o * s_c[:, None, None, None]                   # fold CSAM BN into v
    bv = s_c * bv + t_c
    wq9 = _oihw_to_taps(wq_o).astype(bf16)
    wk9 = _oihw_to_taps(wk_o).astype(bf16)
    wv9 = _oihw_to_taps(wv_o).astype(bf16)
    bqc, bkc, bvc = bq.reshape(C, 1), bk.reshape(C, 1), bv.reshape(C, 1)

    w3 = jnp.transpose(cs["conv3_w"]).astype(bf16)           # (C, C)
    b3 = cs["conv3_b"].reshape(C, 1)
    w49 = _oihw_to_taps(cs["conv4_w"]).astype(bf16)          # (9, C, C)
    b4 = cs["conv4_b"].reshape(C, 1)

    w29 = _oihw_to_taps(p["conv2_w"]).astype(bf16)           # (9, C//2, C)
    b2 = p["conv2_b"].reshape(C // 2, 1)
    w3f9 = _oihw_to_taps(p["conv3_w"]).astype(bf16)          # (9, C, C//2)
    b3f = p["conv3_b"].reshape(C, 1)

    sfc, tfc = s_f.reshape(C, 1), t_f.reshape(C, 1)
    m9 = _tap_masks(H, W, HWp)

    x_r = x_nchw.astype(bf16).reshape(N, Cin, HW)
    if HWp != HW:
        x_r = jnp.pad(x_r, ((0, 0), (0, 0), (0, HWp - HW)))

    args = (x_r, m9, w1, b1, wqkv, bqkv, wq9, bqc, wk9, bkc, wv9, bvc,
            w3, b3, w49, b4, sfc, tfc, w29, b2, w3f9, b3f)
    in_specs = [pl.BlockSpec((1, Cin, HWp), lambda n: (n, 0, 0))]
    in_specs += [_const_spec(a) for a in args[1:]]

    out = pl.pallas_call(
        functools.partial(_former_fused_kernel, W=W, C=C),
        out_shape=jax.ShapeDtypeStruct((N, C, HWp), jnp.float32),
        grid=(N,),
        in_specs=in_specs,
        out_specs=pl.BlockSpec((1, C, HWp), lambda n: (n, 0, 0)),
        compiler_params=pltpu.CompilerParams(
            dimension_semantics=("parallel",)),
    )(*args)
    return out[:, :, :HW].reshape(N, C, H, W)


# --------------------------- pure-JAX reference (unfused, f32) ----------------

def _mish_ref(x):
    sp = jnp.maximum(x, 0.0) + jnp.log(1.0 + jnp.exp(-jnp.abs(x)))
    return x * jnp.tanh(sp)


def _lin_ref(x, w, b):
    return jnp.einsum("nhwc,cd->nhwd", x, w, precision=_HI) + b


def _conv2d_ref(x, w_oihw, b):
    y = jax.lax.conv_general_dilated(
        x, jnp.transpose(w_oihw, (2, 3, 1, 0)), (1, 1), "SAME",
        dimension_numbers=("NHWC", "HWIO", "NHWC"), precision=_HI)
    return y + b


def _bn_ref(x, bn, eps=1e-5):
    return (x - bn["m"]) / jnp.sqrt(bn["v"] + eps) * bn["g"] + bn["b"]


def _pb_ref(x, pb, num_heads):
    C = x.shape[-1]
    hd = C // num_heads
    y = _mish_ref(_bn_ref(_lin_ref(x, pb["conv1_w"], pb["conv1_b"]), pb["bn"]))
    outs = [_conv2d_ref(y[..., i * hd:(i + 1) * hd], pb["head_w"][i], pb["head_b"][i])
            for i in range(num_heads)]
    return jnp.concatenate(outs, axis=-1)


def _csam_ref(x, cs, num_heads):
    res = x
    q = _pb_ref(_lin_ref(x, cs["q_w"], cs["q_b"]), cs["pb1"], num_heads)
    k = _pb_ref(_lin_ref(x, cs["k_w"], cs["k_b"]), cs["pb2"], num_heads)
    v = _pb_ref(_lin_ref(x, cs["v_w"], cs["v_b"]), cs["pb3"], num_heads)
    attn = 1.0 / (1.0 + jnp.exp(-(q * k)))
    attn = attn * _mish_ref(_bn_ref(v, cs["bn"]))
    y = _mish_ref(_lin_ref(attn, cs["conv3_w"], cs["conv3_b"]))
    y = _mish_ref(_conv2d_ref(y, cs["conv4_w"], cs["conv4_b"]))
    return res + y


def former_ref(x_nchw, p, num_heads):
    x = jnp.transpose(x_nchw, (0, 2, 3, 1)).astype(jnp.float32)
    a = _mish_ref(_lin_ref(x, p["conv1_w"], p["conv1_b"]))
    b = _bn_ref(a, p["bn"])
    c = _csam_ref(b, p["csam"], num_heads)
    g = a + _bn_ref(c, p["bn"])
    pm = _mish_ref(_conv2d_ref(g, p["conv2_w"], p["conv2_b"]))
    q2 = _mish_ref(_conv2d_ref(pm, p["conv3_w"], p["conv3_b"]))
    out = _bn_ref(g + q2, p["bn"])
    return jnp.transpose(out, (0, 3, 1, 2))


# --------------------------- main ---------------------------------------------

if __name__ == "__main__":
    key = jax.random.PRNGKey(0)
    kx, kp = jax.random.split(key)

    in_ch, o_ch, num_heads = 4, 16, 4
    N, H, W = 2, 16, 16

    x = jax.random.normal(kx, (N, in_ch, H, W), jnp.float32)   # NCHW like PyTorch
    params = init_former(kp, in_ch, o_ch, num_heads)

    fwd = jax.jit(functools.partial(former_bottleneck, num_heads=num_heads))
    y = jax.block_until_ready(fwd(x, params))
    assert y.shape == (N, o_ch, H, W), y.shape
    assert bool(jnp.all(jnp.isfinite(y)))

    ref = jax.jit(functools.partial(former_ref, num_heads=num_heads))
    y_ref = jax.block_until_ready(ref(x, params))

    # bf16 matmul operands + approx EUP reciprocal vs f32 HIGHEST reference:
    # tolerance set at 3% of the output scale.
    scale = float(jnp.max(jnp.abs(y_ref)))
    max_err = float(jnp.max(jnp.abs(y - y_ref)))
    assert max_err <= 3e-2 * scale + 3e-2, (max_err, scale)

    print("KERNEL_OK")
</pallas_src>

<mosaic_0001>
module attributes {stable_mosaic.version = 11 : i64} {
  func.func @_former_fused_kernel(%arg0: i32, %arg1: memref<1x4x256xbf16, #tpu.memory_space<vmem>>, %arg2: memref<9x1x256xf32, #tpu.memory_space<vmem>>, %arg3: memref<16x4xbf16, #tpu.memory_space<vmem>>, %arg4: memref<16x1xf32, #tpu.memory_space<vmem>>, %arg5: memref<48x16xbf16, #tpu.memory_space<vmem>>, %arg6: memref<48x1xf32, #tpu.memory_space<vmem>>, %arg7: memref<9x16x16xbf16, #tpu.memory_space<vmem>>, %arg8: memref<16x1xf32, #tpu.memory_space<vmem>>, %arg9: memref<9x16x16xbf16, #tpu.memory_space<vmem>>, %arg10: memref<16x1xf32, #tpu.memory_space<vmem>>, %arg11: memref<9x16x16xbf16, #tpu.memory_space<vmem>>, %arg12: memref<16x1xf32, #tpu.memory_space<vmem>>, %arg13: memref<16x16xbf16, #tpu.memory_space<vmem>>, %arg14: memref<16x1xf32, #tpu.memory_space<vmem>>, %arg15: memref<9x16x16xbf16, #tpu.memory_space<vmem>>, %arg16: memref<16x1xf32, #tpu.memory_space<vmem>>, %arg17: memref<16x1xf32, #tpu.memory_space<vmem>>, %arg18: memref<16x1xf32, #tpu.memory_space<vmem>>, %arg19: memref<9x8x16xbf16, #tpu.memory_space<vmem>>, %arg20: memref<8x1xf32, #tpu.memory_space<vmem>>, %arg21: memref<9x16x8xbf16, #tpu.memory_space<vmem>>, %arg22: memref<16x1xf32, #tpu.memory_space<vmem>>, %arg23: memref<1x16x256xf32, #tpu.memory_space<vmem>>) attributes {dimension_semantics = [#tpu.dimension_semantics<parallel>], iteration_bounds = array<i64: 2>, scalar_prefetch = 0 : i64, scratch_operands = 0 : i64, tpu.core_type = #tpu.core_type<tc>, window_params = [{transform_indices = @transform_0, window_bounds = array<i64: 1, 4, 256>}, {pipeline_mode = #tpu.pipeline_mode<synchronous>, transform_indices = @transform_1, window_bounds = array<i64: 9, 1, 256>}, {pipeline_mode = #tpu.pipeline_mode<synchronous>, transform_indices = @transform_2, window_bounds = array<i64: 16, 4>}, {pipeline_mode = #tpu.pipeline_mode<synchronous>, transform_indices = @transform_3, window_bounds = array<i64: 16, 1>}, {pipeline_mode = #tpu.pipeline_mode<synchronous>, transform_indices = @transform_4, window_bounds = array<i64: 48, 16>}, {pipeline_mode = #tpu.pipeline_mode<synchronous>, transform_indices = @transform_5, window_bounds = array<i64: 48, 1>}, {pipeline_mode = #tpu.pipeline_mode<synchronous>, transform_indices = @transform_6, window_bounds = array<i64: 9, 16, 16>}, {pipeline_mode = #tpu.pipeline_mode<synchronous>, transform_indices = @transform_7, window_bounds = array<i64: 16, 1>}, {pipeline_mode = #tpu.pipeline_mode<synchronous>, transform_indices = @transform_8, window_bounds = array<i64: 9, 16, 16>}, {pipeline_mode = #tpu.pipeline_mode<synchronous>, transform_indices = @transform_9, window_bounds = array<i64: 16, 1>}, {pipeline_mode = #tpu.pipeline_mode<synchronous>, transform_indices = @transform_10, window_bounds = array<i64: 9, 16, 16>}, {pipeline_mode = #tpu.pipeline_mode<synchronous>, transform_indices = @transform_11, window_bounds = array<i64: 16, 1>}, {pipeline_mode = #tpu.pipeline_mode<synchronous>, transform_indices = @transform_12, window_bounds = array<i64: 16, 16>}, {pipeline_mode = #tpu.pipeline_mode<synchronous>, transform_indices = @transform_13, window_bounds = array<i64: 16, 1>}, {pipeline_mode = #tpu.pipeline_mode<synchronous>, transform_indices = @transform_14, window_bounds = array<i64: 9, 16, 16>}, {pipeline_mode = #tpu.pipeline_mode<synchronous>, transform_indices = @transform_15, window_bounds = array<i64: 16, 1>}, {pipeline_mode = #tpu.pipeline_mode<synchronous>, transform_indices = @transform_16, window_bounds = array<i64: 16, 1>}, {pipeline_mode = #tpu.pipeline_mode<synchronous>, transform_indices = @transform_17, window_bounds = array<i64: 16, 1>}, {pipeline_mode = #tpu.pipeline_mode<synchronous>, transform_indices = @transform_18, window_bounds = array<i64: 9, 8, 16>}, {pipeline_mode = #tpu.pipeline_mode<synchronous>, transform_indices = @transform_19, window_bounds = array<i64: 8, 1>}, {pipeline_mode = #tpu.pipeline_mode<synchronous>, transform_indices = @transform_20, window_bounds = array<i64: 9, 16, 8>}, {pipeline_mode = #tpu.pipeline_mode<synchronous>, transform_indices = @transform_21, window_bounds = array<i64: 16, 1>}, {transform_indices = @transform_22, window_bounds = array<i64: 1, 16, 256>}]} {
    %c0 = arith.constant 0 : index
    %c0_0 = arith.constant 0 : index
    %c0_1 = arith.constant 0 : index
    %0 = vector.load %arg2[%c0, %c0_0, %c0_1] : memref<9x1x256xf32, #tpu.memory_space<vmem>>, vector<9x1x256xf32>
    %c0_2 = arith.constant 0 : index
    %c0_3 = arith.constant 0 : index
    %c0_4 = arith.constant 0 : index
    %1 = vector.load %arg1[%c0_2, %c0_3, %c0_4] : memref<1x4x256xbf16, #tpu.memory_space<vmem>>, vector<1x4x256xbf16>
    %2 = vector.shape_cast %1 : vector<1x4x256xbf16> to vector<4x256xbf16>
    %c0_5 = arith.constant 0 : index
    %c0_6 = arith.constant 0 : index
    %3 = vector.load %arg17[%c0_5, %c0_6] : memref<16x1xf32, #tpu.memory_space<vmem>>, vector<16x1xf32>
    %c0_7 = arith.constant 0 : index
    %c0_8 = arith.constant 0 : index
    %4 = vector.load %arg18[%c0_7, %c0_8] : memref<16x1xf32, #tpu.memory_space<vmem>>, vector<16x1xf32>
    %c0_9 = arith.constant 0 : index
    %c0_10 = arith.constant 0 : index
    %5 = vector.load %arg3[%c0_9, %c0_10] : memref<16x4xbf16, #tpu.memory_space<vmem>>, vector<16x4xbf16>
    %cst = arith.constant dense<0.000000e+00> : vector<16x256xf32>
    %6 = tpu.matmul %5, %2, %cst {dimension_numbers = #tpu.dot_dimension_numbers<[1], [0], [0], [1], [0, 0, 1, 1], [], []>} : vector<16x4xbf16>, vector<4x256xbf16>, vector<16x256xf32> -> vector<16x256xf32>
    %c0_11 = arith.constant 0 : index
    %c0_12 = arith.constant 0 : index
    %7 = vector.load %arg4[%c0_11, %c0_12] : memref<16x1xf32, #tpu.memory_space<vmem>>, vector<16x1xf32>
    %8 = vector.broadcast %7 : vector<16x1xf32> to vector<16x256xf32>
    %9 = arith.addf %6, %8 : vector<16x256xf32>
    %cst_13 = arith.constant 3.000000e+01 : f32
    %10 = vector.broadcast %cst_13 : f32 to vector<16x256xf32>
    %11 = arith.minimumf %9, %10 : vector<16x256xf32>
    %12 = math.exp %11 : vector<16x256xf32>
    %cst_14 = arith.constant 1.000000e+00 : f32
    %13 = vector.broadcast %cst_14 : f32 to vector<16x256xf32>
    %14 = arith.addf %13, %12 : vector<16x256xf32>
    %15 = arith.mulf %14, %14 : vector<16x256xf32>
    %cst_15 = arith.constant 1.000000e+00 : f32
    %16 = vector.broadcast %cst_15 : f32 to vector<16x256xf32>
    %17 = arith.addf %15, %16 : vector<16x256xf32>
    %18 = tpu.reciprocal %17 {approx = true} : vector<16x256xf32> -> vector<16x256xf32>
    %cst_16 = arith.constant 2.000000e+00 : f32
    %19 = vector.broadcast %cst_16 : f32 to vector<16x256xf32>
    %20 = arith.mulf %19, %18 : vector<16x256xf32>
    %cst_17 = arith.constant 1.000000e+00 : f32
    %21 = vector.broadcast %cst_17 : f32 to vector<16x256xf32>
    %22 = arith.subf %21, %20 : vector<16x256xf32>
    %23 = arith.mulf %9, %22 : vector<16x256xf32>
    %c0_18 = arith.constant 0 : index
    %c0_19 = arith.constant 0 : index
    %24 = vector.load %arg5[%c0_18, %c0_19] : memref<48x16xbf16, #tpu.memory_space<vmem>>, vector<48x16xbf16>
    %25 = arith.truncf %23 : vector<16x256xf32> to vector<16x256xbf16>
    %cst_20 = arith.constant dense<0.000000e+00> : vector<48x256xf32>
    %26 = tpu.matmul %24, %25, %cst_20 {dimension_numbers = #tpu.dot_dimension_numbers<[1], [0], [0], [1], [0, 0, 1, 1], [], []>} : vector<48x16xbf16>, vector<16x256xbf16>, vector<48x256xf32> -> vector<48x256xf32>
    %c0_21 = arith.constant 0 : index
    %c0_22 = arith.constant 0 : index
    %27 = vector.load %arg6[%c0_21, %c0_22] : memref<48x1xf32, #tpu.memory_space<vmem>>, vector<48x1xf32>
    %28 = vector.broadcast %27 : vector<48x1xf32> to vector<48x256xf32>
    %29 = arith.addf %26, %28 : vector<48x256xf32>
    %cst_23 = arith.constant 3.000000e+01 : f32
    %30 = vector.broadcast %cst_23 : f32 to vector<48x256xf32>
    %31 = arith.minimumf %29, %30 : vector<48x256xf32>
    %32 = math.exp %31 : vector<48x256xf32>
    %cst_24 = arith.constant 1.000000e+00 : f32
    %33 = vector.broadcast %cst_24 : f32 to vector<48x256xf32>
    %34 = arith.addf %33, %32 : vector<48x256xf32>
    %35 = arith.mulf %34, %34 : vector<48x256xf32>
    %cst_25 = arith.constant 1.000000e+00 : f32
    %36 = vector.broadcast %cst_25 : f32 to vector<48x256xf32>
    %37 = arith.addf %35, %36 : vector<48x256xf32>
    %38 = tpu.reciprocal %37 {approx = true} : vector<48x256xf32> -> vector<48x256xf32>
    %cst_26 = arith.constant 2.000000e+00 : f32
    %39 = vector.broadcast %cst_26 : f32 to vector<48x256xf32>
    %40 = arith.mulf %39, %38 : vector<48x256xf32>
    %cst_27 = arith.constant 1.000000e+00 : f32
    %41 = vector.broadcast %cst_27 : f32 to vector<48x256xf32>
    %42 = arith.subf %41, %40 : vector<48x256xf32>
    %43 = arith.mulf %29, %42 : vector<48x256xf32>
    %c0_28 = arith.constant 0 : index
    %c0_29 = arith.constant 0 : index
    %c0_30 = arith.constant 0 : index
    %44 = vector.load %arg7[%c0_28, %c0_29, %c0_30] : memref<9x16x16xbf16, #tpu.memory_space<vmem>>, vector<9x16x16xbf16>
    %c0_31 = arith.constant 0 : index
    %c0_32 = arith.constant 0 : index
    %c0_33 = arith.constant 0 : index
    %45 = vector.load %arg9[%c0_31, %c0_32, %c0_33] : memref<9x16x16xbf16, #tpu.memory_space<vmem>>, vector<9x16x16xbf16>
    %c0_34 = arith.constant 0 : index
    %c0_35 = arith.constant 0 : index
    %c0_36 = arith.constant 0 : index
    %46 = vector.load %arg11[%c0_34, %c0_35, %c0_36] : memref<9x16x16xbf16, #tpu.memory_space<vmem>>, vector<9x16x16xbf16>
    %cst_37 = arith.constant 0.000000e+00 : f32
    %47 = vector.broadcast %cst_37 : f32 to vector<16x256xf32>
    %cst_38 = arith.constant 0.000000e+00 : f32
    %48 = vector.broadcast %cst_38 : f32 to vector<16x256xf32>
    %cst_39 = arith.constant 0.000000e+00 : f32
    %49 = vector.broadcast %cst_39 : f32 to vector<16x256xf32>
    %c17_i32 = arith.constant 17 : i32
    %50 = tpu.dynamic_rotate %43 by %c17_i32 dim 1 : vector<48x256xf32>, i32 -> vector<48x256xf32>
    %51 = vector.extract_strided_slice %0 {offsets = [0, 0, 0], sizes = [1, 1, 256], strides = [1, 1, 1]} : vector<9x1x256xf32> to vector<1x1x256xf32>
    %52 = vector.shape_cast %51 : vector<1x1x256xf32> to vector<1x256xf32>
    %53 = vector.broadcast %52 : vector<1x256xf32> to vector<48x256xf32>
    %54 = arith.mulf %50, %53 : vector<48x256xf32>
    %55 = arith.truncf %54 : vector<48x256xf32> to vector<48x256xbf16>
    %56 = vector.extract_strided_slice %44 {offsets = [0, 0, 0], sizes = [1, 16, 16], strides = [1, 1, 1]} : vector<9x16x16xbf16> to vector<1x16x16xbf16>
    %57 = vector.shape_cast %56 : vector<1x16x16xbf16> to vector<16x16xbf16>
    %58 = vector.extract_strided_slice %55 {offsets = [0, 0], sizes = [16, 256], strides = [1, 1]} : vector<48x256xbf16> to vector<16x256xbf16>
    %cst_40 = arith.constant dense<0.000000e+00> : vector<16x256xf32>
    %59 = tpu.matmul %57, %58, %cst_40 {dimension_numbers = #tpu.dot_dimension_numbers<[1], [0], [0], [1], [0, 0, 1, 1], [], []>} : vector<16x16xbf16>, vector<16x256xbf16>, vector<16x256xf32> -> vector<16x256xf32>
    %60 = arith.addf %47, %59 : vector<16x256xf32>
    %61 = vector.extract_strided_slice %45 {offsets = [0, 0, 0], sizes = [1, 16, 16], strides = [1, 1, 1]} : vector<9x16x16xbf16> to vector<1x16x16xbf16>
    %62 = vector.shape_cast %61 : vector<1x16x16xbf16> to vector<16x16xbf16>
    %63 = vector.extract_strided_slice %55 {offsets = [16, 0], sizes = [16, 256], strides = [1, 1]} : vector<48x256xbf16> to vector<16x256xbf16>
    %cst_41 = arith.constant dense<0.000000e+00> : vector<16x256xf32>
    %64 = tpu.matmul %62, %63, %cst_41 {dimension_numbers = #tpu.dot_dimension_numbers<[1], [0], [0], [1], [0, 0, 1, 1], [], []>} : vector<16x16xbf16>, vector<16x256xbf16>, vector<16x256xf32> -> vector<16x256xf32>
    %65 = arith.addf %48, %64 : vector<16x256xf32>
    %66 = vector.extract_strided_slice %46 {offsets = [0, 0, 0], sizes = [1, 16, 16], strides = [1, 1, 1]} : vector<9x16x16xbf16> to vector<1x16x16xbf16>
    %67 = vector.shape_cast %66 : vector<1x16x16xbf16> to vector<16x16xbf16>
    %68 = vector.extract_strided_slice %55 {offsets = [32, 0], sizes = [16, 256], strides = [1, 1]} : vector<48x256xbf16> to vector<16x256xbf16>
    %cst_42 = arith.constant dense<0.000000e+00> : vector<16x256xf32>
    %69 = tpu.matmul %67, %68, %cst_42 {dimension_numbers = #tpu.dot_dimension_numbers<[1], [0], [0], [1], [0, 0, 1, 1], [], []>} : vector<16x16xbf16>, vector<16x256xbf16>, vector<16x256xf32> -> vector<16x256xf32>
    %70 = arith.addf %49, %69 : vector<16x256xf32>
    %c16_i32 = arith.constant 16 : i32
    %71 = tpu.dynamic_rotate %43 by %c16_i32 dim 1 : vector<48x256xf32>, i32 -> vector<48x256xf32>
    %72 = vector.extract_strided_slice %0 {offsets = [1, 0, 0], sizes = [1, 1, 256], strides = [1, 1, 1]} : vector<9x1x256xf32> to vector<1x1x256xf32>
    %73 = vector.shape_cast %72 : vector<1x1x256xf32> to vector<1x256xf32>
    %74 = vector.broadcast %73 : vector<1x256xf32> to vector<48x256xf32>
    %75 = arith.mulf %71, %74 : vector<48x256xf32>
    %76 = arith.truncf %75 : vector<48x256xf32> to vector<48x256xbf16>
    %77 = vector.extract_strided_slice %44 {offsets = [1, 0, 0], sizes = [1, 16, 16], strides = [1, 1, 1]} : vector<9x16x16xbf16> to vector<1x16x16xbf16>
    %78 = vector.shape_cast %77 : vector<1x16x16xbf16> to vector<16x16xbf16>
    %79 = vector.extract_strided_slice %76 {offsets = [0, 0], sizes = [16, 256], strides = [1, 1]} : vector<48x256xbf16> to vector<16x256xbf16>
    %cst_43 = arith.constant dense<0.000000e+00> : vector<16x256xf32>
    %80 = tpu.matmul %78, %79, %cst_43 {dimension_numbers = #tpu.dot_dimension_numbers<[1], [0], [0], [1], [0, 0, 1, 1], [], []>} : vector<16x16xbf16>, vector<16x256xbf16>, vector<16x256xf32> -> vector<16x256xf32>
    %81 = arith.addf %60, %80 : vector<16x256xf32>
    %82 = vector.extract_strided_slice %45 {offsets = [1, 0, 0], sizes = [1, 16, 16], strides = [1, 1, 1]} : vector<9x16x16xbf16> to vector<1x16x16xbf16>
    %83 = vector.shape_cast %82 : vector<1x16x16xbf16> to vector<16x16xbf16>
    %84 = vector.extract_strided_slice %76 {offsets = [16, 0], sizes = [16, 256], strides = [1, 1]} : vector<48x256xbf16> to vector<16x256xbf16>
    %cst_44 = arith.constant dense<0.000000e+00> : vector<16x256xf32>
    %85 = tpu.matmul %83, %84, %cst_44 {dimension_numbers = #tpu.dot_dimension_numbers<[1], [0], [0], [1], [0, 0, 1, 1], [], []>} : vector<16x16xbf16>, vector<16x256xbf16>, vector<16x256xf32> -> vector<16x256xf32>
    %86 = arith.addf %65, %85 : vector<16x256xf32>
    %87 = vector.extract_strided_slice %46 {offsets = [1, 0, 0], sizes = [1, 16, 16], strides = [1, 1, 1]} : vector<9x16x16xbf16> to vector<1x16x16xbf16>
    %88 = vector.shape_cast %87 : vector<1x16x16xbf16> to vector<16x16xbf16>
    %89 = vector.extract_strided_slice %76 {offsets = [32, 0], sizes = [16, 256], strides = [1, 1]} : vector<48x256xbf16> to vector<16x256xbf16>
    %cst_45 = arith.constant dense<0.000000e+00> : vector<16x256xf32>
    %90 = tpu.matmul %88, %89, %cst_45 {dimension_numbers = #tpu.dot_dimension_numbers<[1], [0], [0], [1], [0, 0, 1, 1], [], []>} : vector<16x16xbf16>, vector<16x256xbf16>, vector<16x256xf32> -> vector<16x256xf32>
    %91 = arith.addf %70, %90 : vector<16x256xf32>
    %c15_i32 = arith.constant 15 : i32
    %92 = tpu.dynamic_rotate %43 by %c15_i32 dim 1 : vector<48x256xf32>, i32 -> vector<48x256xf32>
    %93 = vector.extract_strided_slice %0 {offsets = [2, 0, 0], sizes = [1, 1, 256], strides = [1, 1, 1]} : vector<9x1x256xf32> to vector<1x1x256xf32>
    %94 = vector.shape_cast %93 : vector<1x1x256xf32> to vector<1x256xf32>
    %95 = vector.broadcast %94 : vector<1x256xf32> to vector<48x256xf32>
    %96 = arith.mulf %92, %95 : vector<48x256xf32>
    %97 = arith.truncf %96 : vector<48x256xf32> to vector<48x256xbf16>
    %98 = vector.extract_strided_slice %44 {offsets = [2, 0, 0], sizes = [1, 16, 16], strides = [1, 1, 1]} : vector<9x16x16xbf16> to vector<1x16x16xbf16>
    %99 = vector.shape_cast %98 : vector<1x16x16xbf16> to vector<16x16xbf16>
    %100 = vector.extract_strided_slice %97 {offsets = [0, 0], sizes = [16, 256], strides = [1, 1]} : vector<48x256xbf16> to vector<16x256xbf16>
    %cst_46 = arith.constant dense<0.000000e+00> : vector<16x256xf32>
    %101 = tpu.matmul %99, %100, %cst_46 {dimension_numbers = #tpu.dot_dimension_numbers<[1], [0], [0], [1], [0, 0, 1, 1], [], []>} : vector<16x16xbf16>, vector<16x256xbf16>, vector<16x256xf32> -> vector<16x256xf32>
    %102 = arith.addf %81, %101 : vector<16x256xf32>
    %103 = vector.extract_strided_slice %45 {offsets = [2, 0, 0], sizes = [1, 16, 16], strides = [1, 1, 1]} : vector<9x16x16xbf16> to vector<1x16x16xbf16>
    %104 = vector.shape_cast %103 : vector<1x16x16xbf16> to vector<16x16xbf16>
    %105 = vector.extract_strided_slice %97 {offsets = [16, 0], sizes = [16, 256], strides = [1, 1]} : vector<48x256xbf16> to vector<16x256xbf16>
    %cst_47 = arith.constant dense<0.000000e+00> : vector<16x256xf32>
    %106 = tpu.matmul %104, %105, %cst_47 {dimension_numbers = #tpu.dot_dimension_numbers<[1], [0], [0], [1], [0, 0, 1, 1], [], []>} : vector<16x16xbf16>, vector<16x256xbf16>, vector<16x256xf32> -> vector<16x256xf32>
    %107 = arith.addf %86, %106 : vector<16x256xf32>
    %108 = vector.extract_strided_slice %46 {offsets = [2, 0, 0], sizes = [1, 16, 16], strides = [1, 1, 1]} : vector<9x16x16xbf16> to vector<1x16x16xbf16>
    %109 = vector.shape_cast %108 : vector<1x16x16xbf16> to vector<16x16xbf16>
    %110 = vector.extract_strided_slice %97 {offsets = [32, 0], sizes = [16, 256], strides = [1, 1]} : vector<48x256xbf16> to vector<16x256xbf16>
    %cst_48 = arith.constant dense<0.000000e+00> : vector<16x256xf32>
    %111 = tpu.matmul %109, %110, %cst_48 {dimension_numbers = #tpu.dot_dimension_numbers<[1], [0], [0], [1], [0, 0, 1, 1], [], []>} : vector<16x16xbf16>, vector<16x256xbf16>, vector<16x256xf32> -> vector<16x256xf32>
    %112 = arith.addf %91, %111 : vector<16x256xf32>
    %c1_i32 = arith.constant 1 : i32
    %113 = tpu.dynamic_rotate %43 by %c1_i32 dim 1 : vector<48x256xf32>, i32 -> vector<48x256xf32>
    %114 = vector.extract_strided_slice %0 {offsets = [3, 0, 0], sizes = [1, 1, 256], strides = [1, 1, 1]} : vector<9x1x256xf32> to vector<1x1x256xf32>
    %115 = vector.shape_cast %114 : vector<1x1x256xf32> to vector<1x256xf32>
    %116 = vector.broadcast %115 : vector<1x256xf32> to vector<48x256xf32>
    %117 = arith.mulf %113, %116 : vector<48x256xf32>
    %118 = arith.truncf %117 : vector<48x256xf32> to vector<48x256xbf16>
    %119 = vector.extract_strided_slice %44 {offsets = [3, 0, 0], sizes = [1, 16, 16], strides = [1, 1, 1]} : vector<9x16x16xbf16> to vector<1x16x16xbf16>
    %120 = vector.shape_cast %119 : vector<1x16x16xbf16> to vector<16x16xbf16>
    %121 = vector.extract_strided_slice %118 {offsets = [0, 0], sizes = [16, 256], strides = [1, 1]} : vector<48x256xbf16> to vector<16x256xbf16>
    %cst_49 = arith.constant dense<0.000000e+00> : vector<16x256xf32>
    %122 = tpu.matmul %120, %121, %cst_49 {dimension_numbers = #tpu.dot_dimension_numbers<[1], [0], [0], [1], [0, 0, 1, 1], [], []>} : vector<16x16xbf16>, vector<16x256xbf16>, vector<16x256xf32> -> vector<16x256xf32>
    %123 = arith.addf %102, %122 : vector<16x256xf32>
    %124 = vector.extract_strided_slice %45 {offsets = [3, 0, 0], sizes = [1, 16, 16], strides = [1, 1, 1]} : vector<9x16x16xbf16> to vector<1x16x16xbf16>
    %125 = vector.shape_cast %124 : vector<1x16x16xbf16> to vector<16x16xbf16>
    %126 = vector.extract_strided_slice %118 {offsets = [16, 0], sizes = [16, 256], strides = [1, 1]} : vector<48x256xbf16> to vector<16x256xbf16>
    %cst_50 = arith.constant dense<0.000000e+00> : vector<16x256xf32>
    %127 = tpu.matmul %125, %126, %cst_50 {dimension_numbers = #tpu.dot_dimension_numbers<[1], [0], [0], [1], [0, 0, 1, 1], [], []>} : vector<16x16xbf16>, vector<16x256xbf16>, vector<16x256xf32> -> vector<16x256xf32>
    %128 = arith.addf %107, %127 : vector<16x256xf32>
    %129 = vector.extract_strided_slice %46 {offsets = [3, 0, 0], sizes = [1, 16, 16], strides = [1, 1, 1]} : vector<9x16x16xbf16> to vector<1x16x16xbf16>
    %130 = vector.shape_cast %129 : vector<1x16x16xbf16> to vector<16x16xbf16>
    %131 = vector.extract_strided_slice %118 {offsets = [32, 0], sizes = [16, 256], strides = [1, 1]} : vector<48x256xbf16> to vector<16x256xbf16>
    %cst_51 = arith.constant dense<0.000000e+00> : vector<16x256xf32>
    %132 = tpu.matmul %130, %131, %cst_51 {dimension_numbers = #tpu.dot_dimension_numbers<[1], [0], [0], [1], [0, 0, 1, 1], [], []>} : vector<16x16xbf16>, vector<16x256xbf16>, vector<16x256xf32> -> vector<16x256xf32>
    %133 = arith.addf %112, %132 : vector<16x256xf32>
    %134 = arith.truncf %43 : vector<48x256xf32> to vector<48x256xbf16>
    %135 = vector.extract_strided_slice %44 {offsets = [4, 0, 0], sizes = [1, 16, 16], strides = [1, 1, 1]} : vector<9x16x16xbf16> to vector<1x16x16xbf16>
    %136 = vector.shape_cast %135 : vector<1x16x16xbf16> to vector<16x16xbf16>
    %137 = vector.extract_strided_slice %134 {offsets = [0, 0], sizes = [16, 256], strides = [1, 1]} : vector<48x256xbf16> to vector<16x256xbf16>
    %cst_52 = arith.constant dense<0.000000e+00> : vector<16x256xf32>
    %138 = tpu.matmul %136, %137, %cst_52 {dimension_numbers = #tpu.dot_dimension_numbers<[1], [0], [0], [1], [0, 0, 1, 1], [], []>} : vector<16x16xbf16>, vector<16x256xbf16>, vector<16x256xf32> -> vector<16x256xf32>
    %139 = arith.addf %123, %138 : vector<16x256xf32>
    %140 = vector.extract_strided_slice %45 {offsets = [4, 0, 0], sizes = [1, 16, 16], strides = [1, 1, 1]} : vector<9x16x16xbf16> to vector<1x16x16xbf16>
    %141 = vector.shape_cast %140 : vector<1x16x16xbf16> to vector<16x16xbf16>
    %142 = vector.extract_strided_slice %134 {offsets = [16, 0], sizes = [16, 256], strides = [1, 1]} : vector<48x256xbf16> to vector<16x256xbf16>
    %cst_53 = arith.constant dense<0.000000e+00> : vector<16x256xf32>
    %143 = tpu.matmul %141, %142, %cst_53 {dimension_numbers = #tpu.dot_dimension_numbers<[1], [0], [0], [1], [0, 0, 1, 1], [], []>} : vector<16x16xbf16>, vector<16x256xbf16>, vector<16x256xf32> -> vector<16x256xf32>
    %144 = arith.addf %128, %143 : vector<16x256xf32>
    %145 = vector.extract_strided_slice %46 {offsets = [4, 0, 0], sizes = [1, 16, 16], strides = [1, 1, 1]} : vector<9x16x16xbf16> to vector<1x16x16xbf16>
    %146 = vector.shape_cast %145 : vector<1x16x16xbf16> to vector<16x16xbf16>
    %147 = vector.extract_strided_slice %134 {offsets = [32, 0], sizes = [16, 256], strides = [1, 1]} : vector<48x256xbf16> to vector<16x256xbf16>
    %cst_54 = arith.constant dense<0.000000e+00> : vector<16x256xf32>
    %148 = tpu.matmul %146, %147, %cst_54 {dimension_numbers = #tpu.dot_dimension_numbers<[1], [0], [0], [1], [0, 0, 1, 1], [], []>} : vector<16x16xbf16>, vector<16x256xbf16>, vector<16x256xf32> -> vector<16x256xf32>
    %149 = arith.addf %133, %148 : vector<16x256xf32>
    %c255_i32 = arith.constant 255 : i32
    %150 = tpu.dynamic_rotate %43 by %c255_i32 dim 1 : vector<48x256xf32>, i32 -> vector<48x256xf32>
    %151 = vector.extract_strided_slice %0 {offsets = [5, 0, 0], sizes = [1, 1, 256], strides = [1, 1, 1]} : vector<9x1x256xf32> to vector<1x1x256xf32>
    %152 = vector.shape_cast %151 : vector<1x1x256xf32> to vector<1x256xf32>
    %153 = vector.broadcast %152 : vector<1x256xf32> to vector<48x256xf32>
    %154 = arith.mulf %150, %153 : vector<48x256xf32>
    %155 = arith.truncf %154 : vector<48x256xf32> to vector<48x256xbf16>
    %156 = vector.extract_strided_slice %44 {offsets = [5, 0, 0], sizes = [1, 16, 16], strides = [1, 1, 1]} : vector<9x16x16xbf16> to vector<1x16x16xbf16>
    %157 = vector.shape_cast %156 : vector<1x16x16xbf16> to vector<16x16xbf16>
    %158 = vector.extract_strided_slice %155 {offsets = [0, 0], sizes = [16, 256], strides = [1, 1]} : vector<48x256xbf16> to vector<16x256xbf16>
    %cst_55 = arith.constant dense<0.000000e+00> : vector<16x256xf32>
    %159 = tpu.matmul %157, %158, %cst_55 {dimension_numbers = #tpu.dot_dimension_numbers<[1], [0], [0], [1], [0, 0, 1, 1], [], []>} : vector<16x16xbf16>, vector<16x256xbf16>, vector<16x256xf32> -> vector<16x256xf32>
    %160 = arith.addf %139, %159 : vector<16x256xf32>
    %161 = vector.extract_strided_slice %45 {offsets = [5, 0, 0], sizes = [1, 16, 16], strides = [1, 1, 1]} : vector<9x16x16xbf16> to vector<1x16x16xbf16>
    %162 = vector.shape_cast %161 : vector<1x16x16xbf16> to vector<16x16xbf16>
    %163 = vector.extract_strided_slice %155 {offsets = [16, 0], sizes = [16, 256], strides = [1, 1]} : vector<48x256xbf16> to vector<16x256xbf16>
    %cst_56 = arith.constant dense<0.000000e+00> : vector<16x256xf32>
    %164 = tpu.matmul %162, %163, %cst_56 {dimension_numbers = #tpu.dot_dimension_numbers<[1], [0], [0], [1], [0, 0, 1, 1], [], []>} : vector<16x16xbf16>, vector<16x256xbf16>, vector<16x256xf32> -> vector<16x256xf32>
    %165 = arith.addf %144, %164 : vector<16x256xf32>
    %166 = vector.extract_strided_slice %46 {offsets = [5, 0, 0], sizes = [1, 16, 16], strides = [1, 1, 1]} : vector<9x16x16xbf16> to vector<1x16x16xbf16>
    %167 = vector.shape_cast %166 : vector<1x16x16xbf16> to vector<16x16xbf16>
    %168 = vector.extract_strided_slice %155 {offsets = [32, 0], sizes = [16, 256], strides = [1, 1]} : vector<48x256xbf16> to vector<16x256xbf16>
    %cst_57 = arith.constant dense<0.000000e+00> : vector<16x256xf32>
    %169 = tpu.matmul %167, %168, %cst_57 {dimension_numbers = #tpu.dot_dimension_numbers<[1], [0], [0], [1], [0, 0, 1, 1], [], []>} : vector<16x16xbf16>, vector<16x256xbf16>, vector<16x256xf32> -> vector<16x256xf32>
    %170 = arith.addf %149, %169 : vector<16x256xf32>
    %c241_i32 = arith.constant 241 : i32
    %171 = tpu.dynamic_rotate %43 by %c241_i32 dim 1 : vector<48x256xf32>, i32 -> vector<48x256xf32>
    %172 = vector.extract_strided_slice %0 {offsets = [6, 0, 0], sizes = [1, 1, 256], strides = [1, 1, 1]} : vector<9x1x256xf32> to vector<1x1x256xf32>
    %173 = vector.shape_cast %172 : vector<1x1x256xf32> to vector<1x256xf32>
    %174 = vector.broadcast %173 : vector<1x256xf32> to vector<48x256xf32>
    %175 = arith.mulf %171, %174 : vector<48x256xf32>
    %176 = arith.truncf %175 : vector<48x256xf32> to vector<48x256xbf16>
    %177 = vector.extract_strided_slice %44 {offsets = [6, 0, 0], sizes = [1, 16, 16], strides = [1, 1, 1]} : vector<9x16x16xbf16> to vector<1x16x16xbf16>
    %178 = vector.shape_cast %177 : vector<1x16x16xbf16> to vector<16x16xbf16>
    %179 = vector.extract_strided_slice %176 {offsets = [0, 0], sizes = [16, 256], strides = [1, 1]} : vector<48x256xbf16> to vector<16x256xbf16>
    %cst_58 = arith.constant dense<0.000000e+00> : vector<16x256xf32>
    %180 = tpu.matmul %178, %179, %cst_58 {dimension_numbers = #tpu.dot_dimension_numbers<[1], [0], [0], [1], [0, 0, 1, 1], [], []>} : vector<16x16xbf16>, vector<16x256xbf16>, vector<16x256xf32> -> vector<16x256xf32>
    %181 = arith.addf %160, %180 : vector<16x256xf32>
    %182 = vector.extract_strided_slice %45 {offsets = [6, 0, 0], sizes = [1, 16, 16], strides = [1, 1, 1]} : vector<9x16x16xbf16> to vector<1x16x16xbf16>
    %183 = vector.shape_cast %182 : vector<1x16x16xbf16> to vector<16x16xbf16>
    %184 = vector.extract_strided_slice %176 {offsets = [16, 0], sizes = [16, 256], strides = [1, 1]} : vector<48x256xbf16> to vector<16x256xbf16>
    %cst_59 = arith.constant dense<0.000000e+00> : vector<16x256xf32>
    %185 = tpu.matmul %183, %184, %cst_59 {dimension_numbers = #tpu.dot_dimension_numbers<[1], [0], [0], [1], [0, 0, 1, 1], [], []>} : vector<16x16xbf16>, vector<16x256xbf16>, vector<16x256xf32> -> vector<16x256xf32>
    %186 = arith.addf %165, %185 : vector<16x256xf32>
    %187 = vector.extract_strided_slice %46 {offsets = [6, 0, 0], sizes = [1, 16, 16], strides = [1, 1, 1]} : vector<9x16x16xbf16> to vector<1x16x16xbf16>
    %188 = vector.shape_cast %187 : vector<1x16x16xbf16> to vector<16x16xbf16>
    %189 = vector.extract_strided_slice %176 {offsets = [32, 0], sizes = [16, 256], strides = [1, 1]} : vector<48x256xbf16> to vector<16x256xbf16>
    %cst_60 = arith.constant dense<0.000000e+00> : vector<16x256xf32>
    %190 = tpu.matmul %188, %189, %cst_60 {dimension_numbers = #tpu.dot_dimension_numbers<[1], [0], [0], [1], [0, 0, 1, 1], [], []>} : vector<16x16xbf16>, vector<16x256xbf16>, vector<16x256xf32> -> vector<16x256xf32>
    %191 = arith.addf %170, %190 : vector<16x256xf32>
    %c240_i32 = arith.constant 240 : i32
    %192 = tpu.dynamic_rotate %43 by %c240_i32 dim 1 : vector<48x256xf32>, i32 -> vector<48x256xf32>
    %193 = vector.extract_strided_slice %0 {offsets = [7, 0, 0], sizes = [1, 1, 256], strides = [1, 1, 1]} : vector<9x1x256xf32> to vector<1x1x256xf32>
    %194 = vector.shape_cast %193 : vector<1x1x256xf32> to vector<1x256xf32>
    %195 = vector.broadcast %194 : vector<1x256xf32> to vector<48x256xf32>
    %196 = arith.mulf %192, %195 : vector<48x256xf32>
    %197 = arith.truncf %196 : vector<48x256xf32> to vector<48x256xbf16>
    %198 = vector.extract_strided_slice %44 {offsets = [7, 0, 0], sizes = [1, 16, 16], strides = [1, 1, 1]} : vector<9x16x16xbf16> to vector<1x16x16xbf16>
    %199 = vector.shape_cast %198 : vector<1x16x16xbf16> to vector<16x16xbf16>
    %200 = vector.extract_strided_slice %197 {offsets = [0, 0], sizes = [16, 256], strides = [1, 1]} : vector<48x256xbf16> to vector<16x256xbf16>
    %cst_61 = arith.constant dense<0.000000e+00> : vector<16x256xf32>
    %201 = tpu.matmul %199, %200, %cst_61 {dimension_numbers = #tpu.dot_dimension_numbers<[1], [0], [0], [1], [0, 0, 1, 1], [], []>} : vector<16x16xbf16>, vector<16x256xbf16>, vector<16x256xf32> -> vector<16x256xf32>
    %202 = arith.addf %181, %201 : vector<16x256xf32>
    %203 = vector.extract_strided_slice %45 {offsets = [7, 0, 0], sizes = [1, 16, 16], strides = [1, 1, 1]} : vector<9x16x16xbf16> to vector<1x16x16xbf16>
    %204 = vector.shape_cast %203 : vector<1x16x16xbf16> to vector<16x16xbf16>
    %205 = vector.extract_strided_slice %197 {offsets = [16, 0], sizes = [16, 256], strides = [1, 1]} : vector<48x256xbf16> to vector<16x256xbf16>
    %cst_62 = arith.constant dense<0.000000e+00> : vector<16x256xf32>
    %206 = tpu.matmul %204, %205, %cst_62 {dimension_numbers = #tpu.dot_dimension_numbers<[1], [0], [0], [1], [0, 0, 1, 1], [], []>} : vector<16x16xbf16>, vector<16x256xbf16>, vector<16x256xf32> -> vector<16x256xf32>
    %207 = arith.addf %186, %206 : vector<16x256xf32>
    %208 = vector.extract_strided_slice %46 {offsets = [7, 0, 0], sizes = [1, 16, 16], strides = [1, 1, 1]} : vector<9x16x16xbf16> to vector<1x16x16xbf16>
    %209 = vector.shape_cast %208 : vector<1x16x16xbf16> to vector<16x16xbf16>
    %210 = vector.extract_strided_slice %197 {offsets = [32, 0], sizes = [16, 256], strides = [1, 1]} : vector<48x256xbf16> to vector<16x256xbf16>
    %cst_63 = arith.constant dense<0.000000e+00> : vector<16x256xf32>
    %211 = tpu.matmul %209, %210, %cst_63 {dimension_numbers = #tpu.dot_dimension_numbers<[1], [0], [0], [1], [0, 0, 1, 1], [], []>} : vector<16x16xbf16>, vector<16x256xbf16>, vector<16x256xf32> -> vector<16x256xf32>
    %212 = arith.addf %191, %211 : vector<16x256xf32>
    %c239_i32 = arith.constant 239 : i32
    %213 = tpu.dynamic_rotate %43 by %c239_i32 dim 1 : vector<48x256xf32>, i32 -> vector<48x256xf32>
    %214 = vector.extract_strided_slice %0 {offsets = [8, 0, 0], sizes = [1, 1, 256], strides = [1, 1, 1]} : vector<9x1x256xf32> to vector<1x1x256xf32>
    %215 = vector.shape_cast %214 : vector<1x1x256xf32> to vector<1x256xf32>
    %216 = vector.broadcast %215 : vector<1x256xf32> to vector<48x256xf32>
    %217 = arith.mulf %213, %216 : vector<48x256xf32>
    %218 = arith.truncf %217 : vector<48x256xf32> to vector<48x256xbf16>
    %219 = vector.extract_strided_slice %44 {offsets = [8, 0, 0], sizes = [1, 16, 16], strides = [1, 1, 1]} : vector<9x16x16xbf16> to vector<1x16x16xbf16>
    %220 = vector.shape_cast %219 : vector<1x16x16xbf16> to vector<16x16xbf16>
    %221 = vector.extract_strided_slice %218 {offsets = [0, 0], sizes = [16, 256], strides = [1, 1]} : vector<48x256xbf16> to vector<16x256xbf16>
    %cst_64 = arith.constant dense<0.000000e+00> : vector<16x256xf32>
    %222 = tpu.matmul %220, %221, %cst_64 {dimension_numbers = #tpu.dot_dimension_numbers<[1], [0], [0], [1], [0, 0, 1, 1], [], []>} : vector<16x16xbf16>, vector<16x256xbf16>, vector<16x256xf32> -> vector<16x256xf32>
    %223 = arith.addf %202, %222 : vector<16x256xf32>
    %224 = vector.extract_strided_slice %45 {offsets = [8, 0, 0], sizes = [1, 16, 16], strides = [1, 1, 1]} : vector<9x16x16xbf16> to vector<1x16x16xbf16>
    %225 = vector.shape_cast %224 : vector<1x16x16xbf16> to vector<16x16xbf16>
    %226 = vector.extract_strided_slice %218 {offsets = [16, 0], sizes = [16, 256], strides = [1, 1]} : vector<48x256xbf16> to vector<16x256xbf16>
    %cst_65 = arith.constant dense<0.000000e+00> : vector<16x256xf32>
    %227 = tpu.matmul %225, %226, %cst_65 {dimension_numbers = #tpu.dot_dimension_numbers<[1], [0], [0], [1], [0, 0, 1, 1], [], []>} : vector<16x16xbf16>, vector<16x256xbf16>, vector<16x256xf32> -> vector<16x256xf32>
    %228 = arith.addf %207, %227 : vector<16x256xf32>
    %229 = vector.extract_strided_slice %46 {offsets = [8, 0, 0], sizes = [1, 16, 16], strides = [1, 1, 1]} : vector<9x16x16xbf16> to vector<1x16x16xbf16>
    %230 = vector.shape_cast %229 : vector<1x16x16xbf16> to vector<16x16xbf16>
    %231 = vector.extract_strided_slice %218 {offsets = [32, 0], sizes = [16, 256], strides = [1, 1]} : vector<48x256xbf16> to vector<16x256xbf16>
    %cst_66 = arith.constant dense<0.000000e+00> : vector<16x256xf32>
    %232 = tpu.matmul %230, %231, %cst_66 {dimension_numbers = #tpu.dot_dimension_numbers<[1], [0], [0], [1], [0, 0, 1, 1], [], []>} : vector<16x16xbf16>, vector<16x256xbf16>, vector<16x256xf32> -> vector<16x256xf32>
    %233 = arith.addf %212, %232 : vector<16x256xf32>
    %c0_67 = arith.constant 0 : index
    %c0_68 = arith.constant 0 : index
    %234 = vector.load %arg8[%c0_67, %c0_68] : memref<16x1xf32, #tpu.memory_space<vmem>>, vector<16x1xf32>
    %235 = vector.broadcast %234 : vector<16x1xf32> to vector<16x256xf32>
    %236 = arith.addf %223, %235 : vector<16x256xf32>
    %c0_69 = arith.constant 0 : index
    %c0_70 = arith.constant 0 : index
    %237 = vector.load %arg10[%c0_69, %c0_70] : memref<16x1xf32, #tpu.memory_space<vmem>>, vector<16x1xf32>
    %238 = vector.broadcast %237 : vector<16x1xf32> to vector<16x256xf32>
    %239 = arith.addf %228, %238 : vector<16x256xf32>
    %c0_71 = arith.constant 0 : index
    %c0_72 = arith.constant 0 : index
    %240 = vector.load %arg12[%c0_71, %c0_72] : memref<16x1xf32, #tpu.memory_space<vmem>>, vector<16x1xf32>
    %241 = vector.broadcast %240 : vector<16x1xf32> to vector<16x256xf32>
    %242 = arith.addf %233, %241 : vector<16x256xf32>
    %243 = arith.mulf %236, %239 : vector<16x256xf32>
    %cst_73 = arith.constant 0.000000e+00 : f32
    %244 = vector.broadcast %cst_73 : f32 to vector<16x256xf32>
    %245 = arith.subf %244, %243 : vector<16x256xf32>
    %cst_74 = arith.constant 3.000000e+01 : f32
    %246 = vector.broadcast %cst_74 : f32 to vector<16x256xf32>
    %247 = arith.minimumf %245, %246 : vector<16x256xf32>
    %248 = math.exp %247 : vector<16x256xf32>
    %cst_75 = arith.constant 1.000000e+00 : f32
    %249 = vector.broadcast %cst_75 : f32 to vector<16x256xf32>
    %250 = arith.addf %249, %248 : vector<16x256xf32>
    %251 = tpu.reciprocal %250 {approx = true} : vector<16x256xf32> -> vector<16x256xf32>
    %cst_76 = arith.constant 3.000000e+01 : f32
    %252 = vector.broadcast %cst_76 : f32 to vector<16x256xf32>
    %253 = arith.minimumf %242, %252 : vector<16x256xf32>
    %254 = math.exp %253 : vector<16x256xf32>
    %cst_77 = arith.constant 1.000000e+00 : f32
    %255 = vector.broadcast %cst_77 : f32 to vector<16x256xf32>
    %256 = arith.addf %255, %254 : vector<16x256xf32>
    %257 = arith.mulf %256, %256 : vector<16x256xf32>
    %cst_78 = arith.constant 1.000000e+00 : f32
    %258 = vector.broadcast %cst_78 : f32 to vector<16x256xf32>
    %259 = arith.addf %257, %258 : vector<16x256xf32>
    %260 = tpu.reciprocal %259 {approx = true} : vector<16x256xf32> -> vector<16x256xf32>
    %cst_79 = arith.constant 2.000000e+00 : f32
    %261 = vector.broadcast %cst_79 : f32 to vector<16x256xf32>
    %262 = arith.mulf %261, %260 : vector<16x256xf32>
    %cst_80 = arith.constant 1.000000e+00 : f32
    %263 = vector.broadcast %cst_80 : f32 to vector<16x256xf32>
    %264 = arith.subf %263, %262 : vector<16x256xf32>
    %265 = arith.mulf %242, %264 : vector<16x256xf32>
    %266 = arith.mulf %251, %265 : vector<16x256xf32>
    %c0_81 = arith.constant 0 : index
    %c0_82 = arith.constant 0 : index
    %267 = vector.load %arg13[%c0_81, %c0_82] : memref<16x16xbf16, #tpu.memory_space<vmem>>, vector<16x16xbf16>
    %268 = arith.truncf %266 : vector<16x256xf32> to vector<16x256xbf16>
    %cst_83 = arith.constant dense<0.000000e+00> : vector<16x256xf32>
    %269 = tpu.matmul %267, %268, %cst_83 {dimension_numbers = #tpu.dot_dimension_numbers<[1], [0], [0], [1], [0, 0, 1, 1], [], []>} : vector<16x16xbf16>, vector<16x256xbf16>, vector<16x256xf32> -> vector<16x256xf32>
    %c0_84 = arith.constant 0 : index
    %c0_85 = arith.constant 0 : index
    %270 = vector.load %arg14[%c0_84, %c0_85] : memref<16x1xf32, #tpu.memory_space<vmem>>, vector<16x1xf32>
    %271 = vector.broadcast %270 : vector<16x1xf32> to vector<16x256xf32>
    %272 = arith.addf %269, %271 : vector<16x256xf32>
    %cst_86 = arith.constant 3.000000e+01 : f32
    %273 = vector.broadcast %cst_86 : f32 to vector<16x256xf32>
    %274 = arith.minimumf %272, %273 : vector<16x256xf32>
    %275 = math.exp %274 : vector<16x256xf32>
    %cst_87 = arith.constant 1.000000e+00 : f32
    %276 = vector.broadcast %cst_87 : f32 to vector<16x256xf32>
    %277 = arith.addf %276, %275 : vector<16x256xf32>
    %278 = arith.mulf %277, %277 : vector<16x256xf32>
    %cst_88 = arith.constant 1.000000e+00 : f32
    %279 = vector.broadcast %cst_88 : f32 to vector<16x256xf32>
    %280 = arith.addf %278, %279 : vector<16x256xf32>
    %281 = tpu.reciprocal %280 {approx = true} : vector<16x256xf32> -> vector<16x256xf32>
    %cst_89 = arith.constant 2.000000e+00 : f32
    %282 = vector.broadcast %cst_89 : f32 to vector<16x256xf32>
    %283 = arith.mulf %282, %281 : vector<16x256xf32>
    %cst_90 = arith.constant 1.000000e+00 : f32
    %284 = vector.broadcast %cst_90 : f32 to vector<16x256xf32>
    %285 = arith.subf %284, %283 : vector<16x256xf32>
    %286 = arith.mulf %272, %285 : vector<16x256xf32>
    %c0_91 = arith.constant 0 : index
    %c0_92 = arith.constant 0 : index
    %c0_93 = arith.constant 0 : index
    %287 = vector.load %arg15[%c0_91, %c0_92, %c0_93] : memref<9x16x16xbf16, #tpu.memory_space<vmem>>, vector<9x16x16xbf16>
    %c0_94 = arith.constant 0 : index
    %c0_95 = arith.constant 0 : index
    %288 = vector.load %arg16[%c0_94, %c0_95] : memref<16x1xf32, #tpu.memory_space<vmem>>, vector<16x1xf32>
    %cst_96 = arith.constant 0.000000e+00 : f32
    %289 = vector.broadcast %cst_96 : f32 to vector<16x256xf32>
    %c17_i32_97 = arith.constant 17 : i32
    %290 = tpu.dynamic_rotate %286 by %c17_i32_97 dim 1 : vector<16x256xf32>, i32 -> vector<16x256xf32>
    %291 = vector.extract_strided_slice %0 {offsets = [0, 0, 0], sizes = [1, 1, 256], strides = [1, 1, 1]} : vector<9x1x256xf32> to vector<1x1x256xf32>
    %292 = vector.shape_cast %291 : vector<1x1x256xf32> to vector<1x256xf32>
    %293 = vector.broadcast %292 : vector<1x256xf32> to vector<16x256xf32>
    %294 = arith.mulf %290, %293 : vector<16x256xf32>
    %295 = vector.extract_strided_slice %287 {offsets = [0, 0, 0], sizes = [1, 16, 16], strides = [1, 1, 1]} : vector<9x16x16xbf16> to vector<1x16x16xbf16>
    %296 = vector.shape_cast %295 : vector<1x16x16xbf16> to vector<16x16xbf16>
    %297 = arith.truncf %294 : vector<16x256xf32> to vector<16x256xbf16>
    %cst_98 = arith.constant dense<0.000000e+00> : vector<16x256xf32>
    %298 = tpu.matmul %296, %297, %cst_98 {dimension_numbers = #tpu.dot_dimension_numbers<[1], [0], [0], [1], [0, 0, 1, 1], [], []>} : vector<16x16xbf16>, vector<16x256xbf16>, vector<16x256xf32> -> vector<16x256xf32>
    %299 = arith.addf %289, %298 : vector<16x256xf32>
    %c16_i32_99 = arith.constant 16 : i32
    %300 = tpu.dynamic_rotate %286 by %c16_i32_99 dim 1 : vector<16x256xf32>, i32 -> vector<16x256xf32>
    %301 = vector.extract_strided_slice %0 {offsets = [1, 0, 0], sizes = [1, 1, 256], strides = [1, 1, 1]} : vector<9x1x256xf32> to vector<1x1x256xf32>
    %302 = vector.shape_cast %301 : vector<1x1x256xf32> to vector<1x256xf32>
    %303 = vector.broadcast %302 : vector<1x256xf32> to vector<16x256xf32>
    %304 = arith.mulf %300, %303 : vector<16x256xf32>
    %305 = vector.extract_strided_slice %287 {offsets = [1, 0, 0], sizes = [1, 16, 16], strides = [1, 1, 1]} : vector<9x16x16xbf16> to vector<1x16x16xbf16>
    %306 = vector.shape_cast %305 : vector<1x16x16xbf16> to vector<16x16xbf16>
    %307 = arith.truncf %304 : vector<16x256xf32> to vector<16x256xbf16>
    %cst_100 = arith.constant dense<0.000000e+00> : vector<16x256xf32>
    %308 = tpu.matmul %306, %307, %cst_100 {dimension_numbers = #tpu.dot_dimension_numbers<[1], [0], [0], [1], [0, 0, 1, 1], [], []>} : vector<16x16xbf16>, vector<16x256xbf16>, vector<16x256xf32> -> vector<16x256xf32>
    %309 = arith.addf %299, %308 : vector<16x256xf32>
    %c15_i32_101 = arith.constant 15 : i32
    %310 = tpu.dynamic_rotate %286 by %c15_i32_101 dim 1 : vector<16x256xf32>, i32 -> vector<16x256xf32>
    %311 = vector.extract_strided_slice %0 {offsets = [2, 0, 0], sizes = [1, 1, 256], strides = [1, 1, 1]} : vector<9x1x256xf32> to vector<1x1x256xf32>
    %312 = vector.shape_cast %311 : vector<1x1x256xf32> to vector<1x256xf32>
    %313 = vector.broadcast %312 : vector<1x256xf32> to vector<16x256xf32>
    %314 = arith.mulf %310, %313 : vector<16x256xf32>
    %315 = vector.extract_strided_slice %287 {offsets = [2, 0, 0], sizes = [1, 16, 16], strides = [1, 1, 1]} : vector<9x16x16xbf16> to vector<1x16x16xbf16>
    %316 = vector.shape_cast %315 : vector<1x16x16xbf16> to vector<16x16xbf16>
    %317 = arith.truncf %314 : vector<16x256xf32> to vector<16x256xbf16>
    %cst_102 = arith.constant dense<0.000000e+00> : vector<16x256xf32>
    %318 = tpu.matmul %316, %317, %cst_102 {dimension_numbers = #tpu.dot_dimension_numbers<[1], [0], [0], [1], [0, 0, 1, 1], [], []>} : vector<16x16xbf16>, vector<16x256xbf16>, vector<16x256xf32> -> vector<16x256xf32>
    %319 = arith.addf %309, %318 : vector<16x256xf32>
    %c1_i32_103 = arith.constant 1 : i32
    %320 = tpu.dynamic_rotate %286 by %c1_i32_103 dim 1 : vector<16x256xf32>, i32 -> vector<16x256xf32>
    %321 = vector.extract_strided_slice %0 {offsets = [3, 0, 0], sizes = [1, 1, 256], strides = [1, 1, 1]} : vector<9x1x256xf32> to vector<1x1x256xf32>
    %322 = vector.shape_cast %321 : vector<1x1x256xf32> to vector<1x256xf32>
    %323 = vector.broadcast %322 : vector<1x256xf32> to vector<16x256xf32>
    %324 = arith.mulf %320, %323 : vector<16x256xf32>
    %325 = vector.extract_strided_slice %287 {offsets = [3, 0, 0], sizes = [1, 16, 16], strides = [1, 1, 1]} : vector<9x16x16xbf16> to vector<1x16x16xbf16>
    %326 = vector.shape_cast %325 : vector<1x16x16xbf16> to vector<16x16xbf16>
    %327 = arith.truncf %324 : vector<16x256xf32> to vector<16x256xbf16>
    %cst_104 = arith.constant dense<0.000000e+00> : vector<16x256xf32>
    %328 = tpu.matmul %326, %327, %cst_104 {dimension_numbers = #tpu.dot_dimension_numbers<[1], [0], [0], [1], [0, 0, 1, 1], [], []>} : vector<16x16xbf16>, vector<16x256xbf16>, vector<16x256xf32> -> vector<16x256xf32>
    %329 = arith.addf %319, %328 : vector<16x256xf32>
    %330 = vector.extract_strided_slice %287 {offsets = [4, 0, 0], sizes = [1, 16, 16], strides = [1, 1, 1]} : vector<9x16x16xbf16> to vector<1x16x16xbf16>
    %331 = vector.shape_cast %330 : vector<1x16x16xbf16> to vector<16x16xbf16>
    %332 = arith.truncf %286 : vector<16x256xf32> to vector<16x256xbf16>
    %cst_105 = arith.constant dense<0.000000e+00> : vector<16x256xf32>
    %333 = tpu.matmul %331, %332, %cst_105 {dimension_numbers = #tpu.dot_dimension_numbers<[1], [0], [0], [1], [0, 0, 1, 1], [], []>} : vector<16x16xbf16>, vector<16x256xbf16>, vector<16x256xf32> -> vector<16x256xf32>
    %334 = arith.addf %329, %333 : vector<16x256xf32>
    %c255_i32_106 = arith.constant 255 : i32
    %335 = tpu.dynamic_rotate %286 by %c255_i32_106 dim 1 : vector<16x256xf32>, i32 -> vector<16x256xf32>
    %336 = vector.extract_strided_slice %0 {offsets = [5, 0, 0], sizes = [1, 1, 256], strides = [1, 1, 1]} : vector<9x1x256xf32> to vector<1x1x256xf32>
    %337 = vector.shape_cast %336 : vector<1x1x256xf32> to vector<1x256xf32>
    %338 = vector.broadcast %337 : vector<1x256xf32> to vector<16x256xf32>
    %339 = arith.mulf %335, %338 : vector<16x256xf32>
    %340 = vector.extract_strided_slice %287 {offsets = [5, 0, 0], sizes = [1, 16, 16], strides = [1, 1, 1]} : vector<9x16x16xbf16> to vector<1x16x16xbf16>
    %341 = vector.shape_cast %340 : vector<1x16x16xbf16> to vector<16x16xbf16>
    %342 = arith.truncf %339 : vector<16x256xf32> to vector<16x256xbf16>
    %cst_107 = arith.constant dense<0.000000e+00> : vector<16x256xf32>
    %343 = tpu.matmul %341, %342, %cst_107 {dimension_numbers = #tpu.dot_dimension_numbers<[1], [0], [0], [1], [0, 0, 1, 1], [], []>} : vector<16x16xbf16>, vector<16x256xbf16>, vector<16x256xf32> -> vector<16x256xf32>
    %344 = arith.addf %334, %343 : vector<16x256xf32>
    %c241_i32_108 = arith.constant 241 : i32
    %345 = tpu.dynamic_rotate %286 by %c241_i32_108 dim 1 : vector<16x256xf32>, i32 -> vector<16x256xf32>
    %346 = vector.extract_strided_slice %0 {offsets = [6, 0, 0], sizes = [1, 1, 256], strides = [1, 1, 1]} : vector<9x1x256xf32> to vector<1x1x256xf32>
    %347 = vector.shape_cast %346 : vector<1x1x256xf32> to vector<1x256xf32>
    %348 = vector.broadcast %347 : vector<1x256xf32> to vector<16x256xf32>
    %349 = arith.mulf %345, %348 : vector<16x256xf32>
    %350 = vector.extract_strided_slice %287 {offsets = [6, 0, 0], sizes = [1, 16, 16], strides = [1, 1, 1]} : vector<9x16x16xbf16> to vector<1x16x16xbf16>
    %351 = vector.shape_cast %350 : vector<1x16x16xbf16> to vector<16x16xbf16>
    %352 = arith.truncf %349 : vector<16x256xf32> to vector<16x256xbf16>
    %cst_109 = arith.constant dense<0.000000e+00> : vector<16x256xf32>
    %353 = tpu.matmul %351, %352, %cst_109 {dimension_numbers = #tpu.dot_dimension_numbers<[1], [0], [0], [1], [0, 0, 1, 1], [], []>} : vector<16x16xbf16>, vector<16x256xbf16>, vector<16x256xf32> -> vector<16x256xf32>
    %354 = arith.addf %344, %353 : vector<16x256xf32>
    %c240_i32_110 = arith.constant 240 : i32
    %355 = tpu.dynamic_rotate %286 by %c240_i32_110 dim 1 : vector<16x256xf32>, i32 -> vector<16x256xf32>
    %356 = vector.extract_strided_slice %0 {offsets = [7, 0, 0], sizes = [1, 1, 256], strides = [1, 1, 1]} : vector<9x1x256xf32> to vector<1x1x256xf32>
    %357 = vector.shape_cast %356 : vector<1x1x256xf32> to vector<1x256xf32>
    %358 = vector.broadcast %357 : vector<1x256xf32> to vector<16x256xf32>
    %359 = arith.mulf %355, %358 : vector<16x256xf32>
    %360 = vector.extract_strided_slice %287 {offsets = [7, 0, 0], sizes = [1, 16, 16], strides = [1, 1, 1]} : vector<9x16x16xbf16> to vector<1x16x16xbf16>
    %361 = vector.shape_cast %360 : vector<1x16x16xbf16> to vector<16x16xbf16>
    %362 = arith.truncf %359 : vector<16x256xf32> to vector<16x256xbf16>
    %cst_111 = arith.constant dense<0.000000e+00> : vector<16x256xf32>
    %363 = tpu.matmul %361, %362, %cst_111 {dimension_numbers = #tpu.dot_dimension_numbers<[1], [0], [0], [1], [0, 0, 1, 1], [], []>} : vector<16x16xbf16>, vector<16x256xbf16>, vector<16x256xf32> -> vector<16x256xf32>
    %364 = arith.addf %354, %363 : vector<16x256xf32>
    %c239_i32_112 = arith.constant 239 : i32
    %365 = tpu.dynamic_rotate %286 by %c239_i32_112 dim 1 : vector<16x256xf32>, i32 -> vector<16x256xf32>
    %366 = vector.extract_strided_slice %0 {offsets = [8, 0, 0], sizes = [1, 1, 256], strides = [1, 1, 1]} : vector<9x1x256xf32> to vector<1x1x256xf32>
    %367 = vector.shape_cast %366 : vector<1x1x256xf32> to vector<1x256xf32>
    %368 = vector.broadcast %367 : vector<1x256xf32> to vector<16x256xf32>
    %369 = arith.mulf %365, %368 : vector<16x256xf32>
    %370 = vector.extract_strided_slice %287 {offsets = [8, 0, 0], sizes = [1, 16, 16], strides = [1, 1, 1]} : vector<9x16x16xbf16> to vector<1x16x16xbf16>
    %371 = vector.shape_cast %370 : vector<1x16x16xbf16> to vector<16x16xbf16>
    %372 = arith.truncf %369 : vector<16x256xf32> to vector<16x256xbf16>
    %cst_113 = arith.constant dense<0.000000e+00> : vector<16x256xf32>
    %373 = tpu.matmul %371, %372, %cst_113 {dimension_numbers = #tpu.dot_dimension_numbers<[1], [0], [0], [1], [0, 0, 1, 1], [], []>} : vector<16x16xbf16>, vector<16x256xbf16>, vector<16x256xf32> -> vector<16x256xf32>
    %374 = arith.addf %364, %373 : vector<16x256xf32>
    %375 = vector.broadcast %288 : vector<16x1xf32> to vector<16x256xf32>
    %376 = arith.addf %374, %375 : vector<16x256xf32>
    %cst_114 = arith.constant 3.000000e+01 : f32
    %377 = vector.broadcast %cst_114 : f32 to vector<16x256xf32>
    %378 = arith.minimumf %376, %377 : vector<16x256xf32>
    %379 = math.exp %378 : vector<16x256xf32>
    %cst_115 = arith.constant 1.000000e+00 : f32
    %380 = vector.broadcast %cst_115 : f32 to vector<16x256xf32>
    %381 = arith.addf %380, %379 : vector<16x256xf32>
    %382 = arith.mulf %381, %381 : vector<16x256xf32>
    %cst_116 = arith.constant 1.000000e+00 : f32
    %383 = vector.broadcast %cst_116 : f32 to vector<16x256xf32>
    %384 = arith.addf %382, %383 : vector<16x256xf32>
    %385 = tpu.reciprocal %384 {approx = true} : vector<16x256xf32> -> vector<16x256xf32>
    %cst_117 = arith.constant 2.000000e+00 : f32
    %386 = vector.broadcast %cst_117 : f32 to vector<16x256xf32>
    %387 = arith.mulf %386, %385 : vector<16x256xf32>
    %cst_118 = arith.constant 1.000000e+00 : f32
    %388 = vector.broadcast %cst_118 : f32 to vector<16x256xf32>
    %389 = arith.subf %388, %387 : vector<16x256xf32>
    %390 = arith.mulf %376, %389 : vector<16x256xf32>
    %391 = vector.broadcast %3 : vector<16x1xf32> to vector<16x256xf32>
    %392 = arith.mulf %391, %23 : vector<16x256xf32>
    %393 = vector.broadcast %4 : vector<16x1xf32> to vector<16x256xf32>
    %394 = arith.addf %392, %393 : vector<16x256xf32>
    %395 = arith.addf %394, %390 : vector<16x256xf32>
    %396 = vector.broadcast %3 : vector<16x1xf32> to vector<16x256xf32>
    %397 = arith.mulf %396, %395 : vector<16x256xf32>
    %398 = arith.addf %23, %397 : vector<16x256xf32>
    %399 = vector.broadcast %4 : vector<16x1xf32> to vector<16x256xf32>
    %400 = arith.addf %398, %399 : vector<16x256xf32>
    %c0_119 = arith.constant 0 : index
    %c0_120 = arith.constant 0 : index
    %c0_121 = arith.constant 0 : index
    %401 = vector.load %arg19[%c0_119, %c0_120, %c0_121] : memref<9x8x16xbf16, #tpu.memory_space<vmem>>, vector<9x8x16xbf16>
    %c0_122 = arith.constant 0 : index
    %c0_123 = arith.constant 0 : index
    %402 = vector.load %arg20[%c0_122, %c0_123] : memref<8x1xf32, #tpu.memory_space<vmem>>, vector<8x1xf32>
    %cst_124 = arith.constant 0.000000e+00 : f32
    %403 = vector.broadcast %cst_124 : f32 to vector<8x256xf32>
    %c17_i32_125 = arith.constant 17 : i32
    %404 = tpu.dynamic_rotate %400 by %c17_i32_125 dim 1 : vector<16x256xf32>, i32 -> vector<16x256xf32>
    %405 = vector.extract_strided_slice %0 {offsets = [0, 0, 0], sizes = [1, 1, 256], strides = [1, 1, 1]} : vector<9x1x256xf32> to vector<1x1x256xf32>
    %406 = vector.shape_cast %405 : vector<1x1x256xf32> to vector<1x256xf32>
    %407 = vector.broadcast %406 : vector<1x256xf32> to vector<16x256xf32>
    %408 = arith.mulf %404, %407 : vector<16x256xf32>
    %409 = vector.extract_strided_slice %401 {offsets = [0, 0, 0], sizes = [1, 8, 16], strides = [1, 1, 1]} : vector<9x8x16xbf16> to vector<1x8x16xbf16>
    %410 = vector.shape_cast %409 : vector<1x8x16xbf16> to vector<8x16xbf16>
    %411 = arith.truncf %408 : vector<16x256xf32> to vector<16x256xbf16>
    %cst_126 = arith.constant dense<0.000000e+00> : vector<8x256xf32>
    %412 = tpu.matmul %410, %411, %cst_126 {dimension_numbers = #tpu.dot_dimension_numbers<[1], [0], [0], [1], [0, 0, 1, 1], [], []>} : vector<8x16xbf16>, vector<16x256xbf16>, vector<8x256xf32> -> vector<8x256xf32>
    %413 = arith.addf %403, %412 : vector<8x256xf32>
    %c16_i32_127 = arith.constant 16 : i32
    %414 = tpu.dynamic_rotate %400 by %c16_i32_127 dim 1 : vector<16x256xf32>, i32 -> vector<16x256xf32>
    %415 = vector.extract_strided_slice %0 {offsets = [1, 0, 0], sizes = [1, 1, 256], strides = [1, 1, 1]} : vector<9x1x256xf32> to vector<1x1x256xf32>
    %416 = vector.shape_cast %415 : vector<1x1x256xf32> to vector<1x256xf32>
    %417 = vector.broadcast %416 : vector<1x256xf32> to vector<16x256xf32>
    %418 = arith.mulf %414, %417 : vector<16x256xf32>
    %419 = vector.extract_strided_slice %401 {offsets = [1, 0, 0], sizes = [1, 8, 16], strides = [1, 1, 1]} : vector<9x8x16xbf16> to vector<1x8x16xbf16>
    %420 = vector.shape_cast %419 : vector<1x8x16xbf16> to vector<8x16xbf16>
    %421 = arith.truncf %418 : vector<16x256xf32> to vector<16x256xbf16>
    %cst_128 = arith.constant dense<0.000000e+00> : vector<8x256xf32>
    %422 = tpu.matmul %420, %421, %cst_128 {dimension_numbers = #tpu.dot_dimension_numbers<[1], [0], [0], [1], [0, 0, 1, 1], [], []>} : vector<8x16xbf16>, vector<16x256xbf16>, vector<8x256xf32> -> vector<8x256xf32>
    %423 = arith.addf %413, %422 : vector<8x256xf32>
    %c15_i32_129 = arith.constant 15 : i32
    %424 = tpu.dynamic_rotate %400 by %c15_i32_129 dim 1 : vector<16x256xf32>, i32 -> vector<16x256xf32>
    %425 = vector.extract_strided_slice %0 {offsets = [2, 0, 0], sizes = [1, 1, 256], strides = [1, 1, 1]} : vector<9x1x256xf32> to vector<1x1x256xf32>
    %426 = vector.shape_cast %425 : vector<1x1x256xf32> to vector<1x256xf32>
    %427 = vector.broadcast %426 : vector<1x256xf32> to vector<16x256xf32>
    %428 = arith.mulf %424, %427 : vector<16x256xf32>
    %429 = vector.extract_strided_slice %401 {offsets = [2, 0, 0], sizes = [1, 8, 16], strides = [1, 1, 1]} : vector<9x8x16xbf16> to vector<1x8x16xbf16>
    %430 = vector.shape_cast %429 : vector<1x8x16xbf16> to vector<8x16xbf16>
    %431 = arith.truncf %428 : vector<16x256xf32> to vector<16x256xbf16>
    %cst_130 = arith.constant dense<0.000000e+00> : vector<8x256xf32>
    %432 = tpu.matmul %430, %431, %cst_130 {dimension_numbers = #tpu.dot_dimension_numbers<[1], [0], [0], [1], [0, 0, 1, 1], [], []>} : vector<8x16xbf16>, vector<16x256xbf16>, vector<8x256xf32> -> vector<8x256xf32>
    %433 = arith.addf %423, %432 : vector<8x256xf32>
    %c1_i32_131 = arith.constant 1 : i32
    %434 = tpu.dynamic_rotate %400 by %c1_i32_131 dim 1 : vector<16x256xf32>, i32 -> vector<16x256xf32>
    %435 = vector.extract_strided_slice %0 {offsets = [3, 0, 0], sizes = [1, 1, 256], strides = [1, 1, 1]} : vector<9x1x256xf32> to vector<1x1x256xf32>
    %436 = vector.shape_cast %435 : vector<1x1x256xf32> to vector<1x256xf32>
    %437 = vector.broadcast %436 : vector<1x256xf32> to vector<16x256xf32>
    %438 = arith.mulf %434, %437 : vector<16x256xf32>
    %439 = vector.extract_strided_slice %401 {offsets = [3, 0, 0], sizes = [1, 8, 16], strides = [1, 1, 1]} : vector<9x8x16xbf16> to vector<1x8x16xbf16>
    %440 = vector.shape_cast %439 : vector<1x8x16xbf16> to vector<8x16xbf16>
    %441 = arith.truncf %438 : vector<16x256xf32> to vector<16x256xbf16>
    %cst_132 = arith.constant dense<0.000000e+00> : vector<8x256xf32>
    %442 = tpu.matmul %440, %441, %cst_132 {dimension_numbers = #tpu.dot_dimension_numbers<[1], [0], [0], [1], [0, 0, 1, 1], [], []>} : vector<8x16xbf16>, vector<16x256xbf16>, vector<8x256xf32> -> vector<8x256xf32>
    %443 = arith.addf %433, %442 : vector<8x256xf32>
    %444 = vector.extract_strided_slice %401 {offsets = [4, 0, 0], sizes = [1, 8, 16], strides = [1, 1, 1]} : vector<9x8x16xbf16> to vector<1x8x16xbf16>
    %445 = vector.shape_cast %444 : vector<1x8x16xbf16> to vector<8x16xbf16>
    %446 = arith.truncf %400 : vector<16x256xf32> to vector<16x256xbf16>
    %cst_133 = arith.constant dense<0.000000e+00> : vector<8x256xf32>
    %447 = tpu.matmul %445, %446, %cst_133 {dimension_numbers = #tpu.dot_dimension_numbers<[1], [0], [0], [1], [0, 0, 1, 1], [], []>} : vector<8x16xbf16>, vector<16x256xbf16>, vector<8x256xf32> -> vector<8x256xf32>
    %448 = arith.addf %443, %447 : vector<8x256xf32>
    %c255_i32_134 = arith.constant 255 : i32
    %449 = tpu.dynamic_rotate %400 by %c255_i32_134 dim 1 : vector<16x256xf32>, i32 -> vector<16x256xf32>
    %450 = vector.extract_strided_slice %0 {offsets = [5, 0, 0], sizes = [1, 1, 256], strides = [1, 1, 1]} : vector<9x1x256xf32> to vector<1x1x256xf32>
    %451 = vector.shape_cast %450 : vector<1x1x256xf32> to vector<1x256xf32>
    %452 = vector.broadcast %451 : vector<1x256xf32> to vector<16x256xf32>
    %453 = arith.mulf %449, %452 : vector<16x256xf32>
    %454 = vector.extract_strided_slice %401 {offsets = [5, 0, 0], sizes = [1, 8, 16], strides = [1, 1, 1]} : vector<9x8x16xbf16> to vector<1x8x16xbf16>
    %455 = vector.shape_cast %454 : vector<1x8x16xbf16> to vector<8x16xbf16>
    %456 = arith.truncf %453 : vector<16x256xf32> to vector<16x256xbf16>
    %cst_135 = arith.constant dense<0.000000e+00> : vector<8x256xf32>
    %457 = tpu.matmul %455, %456, %cst_135 {dimension_numbers = #tpu.dot_dimension_numbers<[1], [0], [0], [1], [0, 0, 1, 1], [], []>} : vector<8x16xbf16>, vector<16x256xbf16>, vector<8x256xf32> -> vector<8x256xf32>
    %458 = arith.addf %448, %457 : vector<8x256xf32>
    %c241_i32_136 = arith.constant 241 : i32
    %459 = tpu.dynamic_rotate %400 by %c241_i32_136 dim 1 : vector<16x256xf32>, i32 -> vector<16x256xf32>
    %460 = vector.extract_strided_slice %0 {offsets = [6, 0, 0], sizes = [1, 1, 256], strides = [1, 1, 1]} : vector<9x1x256xf32> to vector<1x1x256xf32>
    %461 = vector.shape_cast %460 : vector<1x1x256xf32> to vector<1x256xf32>
    %462 = vector.broadcast %461 : vector<1x256xf32> to vector<16x256xf32>
    %463 = arith.mulf %459, %462 : vector<16x256xf32>
    %464 = vector.extract_strided_slice %401 {offsets = [6, 0, 0], sizes = [1, 8, 16], strides = [1, 1, 1]} : vector<9x8x16xbf16> to vector<1x8x16xbf16>
    %465 = vector.shape_cast %464 : vector<1x8x16xbf16> to vector<8x16xbf16>
    %466 = arith.truncf %463 : vector<16x256xf32> to vector<16x256xbf16>
    %cst_137 = arith.constant dense<0.000000e+00> : vector<8x256xf32>
    %467 = tpu.matmul %465, %466, %cst_137 {dimension_numbers = #tpu.dot_dimension_numbers<[1], [0], [0], [1], [0, 0, 1, 1], [], []>} : vector<8x16xbf16>, vector<16x256xbf16>, vector<8x256xf32> -> vector<8x256xf32>
    %468 = arith.addf %458, %467 : vector<8x256xf32>
    %c240_i32_138 = arith.constant 240 : i32
    %469 = tpu.dynamic_rotate %400 by %c240_i32_138 dim 1 : vector<16x256xf32>, i32 -> vector<16x256xf32>
    %470 = vector.extract_strided_slice %0 {offsets = [7, 0, 0], sizes = [1, 1, 256], strides = [1, 1, 1]} : vector<9x1x256xf32> to vector<1x1x256xf32>
    %471 = vector.shape_cast %470 : vector<1x1x256xf32> to vector<1x256xf32>
    %472 = vector.broadcast %471 : vector<1x256xf32> to vector<16x256xf32>
    %473 = arith.mulf %469, %472 : vector<16x256xf32>
    %474 = vector.extract_strided_slice %401 {offsets = [7, 0, 0], sizes = [1, 8, 16], strides = [1, 1, 1]} : vector<9x8x16xbf16> to vector<1x8x16xbf16>
    %475 = vector.shape_cast %474 : vector<1x8x16xbf16> to vector<8x16xbf16>
    %476 = arith.truncf %473 : vector<16x256xf32> to vector<16x256xbf16>
    %cst_139 = arith.constant dense<0.000000e+00> : vector<8x256xf32>
    %477 = tpu.matmul %475, %476, %cst_139 {dimension_numbers = #tpu.dot_dimension_numbers<[1], [0], [0], [1], [0, 0, 1, 1], [], []>} : vector<8x16xbf16>, vector<16x256xbf16>, vector<8x256xf32> -> vector<8x256xf32>
    %478 = arith.addf %468, %477 : vector<8x256xf32>
    %c239_i32_140 = arith.constant 239 : i32
    %479 = tpu.dynamic_rotate %400 by %c239_i32_140 dim 1 : vector<16x256xf32>, i32 -> vector<16x256xf32>
    %480 = vector.extract_strided_slice %0 {offsets = [8, 0, 0], sizes = [1, 1, 256], strides = [1, 1, 1]} : vector<9x1x256xf32> to vector<1x1x256xf32>
    %481 = vector.shape_cast %480 : vector<1x1x256xf32> to vector<1x256xf32>
    %482 = vector.broadcast %481 : vector<1x256xf32> to vector<16x256xf32>
    %483 = arith.mulf %479, %482 : vector<16x256xf32>
    %484 = vector.extract_strided_slice %401 {offsets = [8, 0, 0], sizes = [1, 8, 16], strides = [1, 1, 1]} : vector<9x8x16xbf16> to vector<1x8x16xbf16>
    %485 = vector.shape_cast %484 : vector<1x8x16xbf16> to vector<8x16xbf16>
    %486 = arith.truncf %483 : vector<16x256xf32> to vector<16x256xbf16>
    %cst_141 = arith.constant dense<0.000000e+00> : vector<8x256xf32>
    %487 = tpu.matmul %485, %486, %cst_141 {dimension_numbers = #tpu.dot_dimension_numbers<[1], [0], [0], [1], [0, 0, 1, 1], [], []>} : vector<8x16xbf16>, vector<16x256xbf16>, vector<8x256xf32> -> vector<8x256xf32>
    %488 = arith.addf %478, %487 : vector<8x256xf32>
    %489 = vector.broadcast %402 : vector<8x1xf32> to vector<8x256xf32>
    %490 = arith.addf %488, %489 : vector<8x256xf32>
    %cst_142 = arith.constant 3.000000e+01 : f32
    %491 = vector.broadcast %cst_142 : f32 to vector<8x256xf32>
    %492 = arith.minimumf %490, %491 : vector<8x256xf32>
    %493 = math.exp %492 : vector<8x256xf32>
    %cst_143 = arith.constant 1.000000e+00 : f32
    %494 = vector.broadcast %cst_143 : f32 to vector<8x256xf32>
    %495 = arith.addf %494, %493 : vector<8x256xf32>
    %496 = arith.mulf %495, %495 : vector<8x256xf32>
    %cst_144 = arith.constant 1.000000e+00 : f32
    %497 = vector.broadcast %cst_144 : f32 to vector<8x256xf32>
    %498 = arith.addf %496, %497 : vector<8x256xf32>
    %499 = tpu.reciprocal %498 {approx = true} : vector<8x256xf32> -> vector<8x256xf32>
    %cst_145 = arith.constant 2.000000e+00 : f32
    %500 = vector.broadcast %cst_145 : f32 to vector<8x256xf32>
    %501 = arith.mulf %500, %499 : vector<8x256xf32>
    %cst_146 = arith.constant 1.000000e+00 : f32
    %502 = vector.broadcast %cst_146 : f32 to vector<8x256xf32>
    %503 = arith.subf %502, %501 : vector<8x256xf32>
    %504 = arith.mulf %490, %503 : vector<8x256xf32>
    %c0_147 = arith.constant 0 : index
    %c0_148 = arith.constant 0 : index
    %c0_149 = arith.constant 0 : index
    %505 = vector.load %arg21[%c0_147, %c0_148, %c0_149] : memref<9x16x8xbf16, #tpu.memory_space<vmem>>, vector<9x16x8xbf16>
    %c0_150 = arith.constant 0 : index
    %c0_151 = arith.constant 0 : index
    %506 = vector.load %arg22[%c0_150, %c0_151] : memref<16x1xf32, #tpu.memory_space<vmem>>, vector<16x1xf32>
    %cst_152 = arith.constant 0.000000e+00 : f32
    %507 = vector.broadcast %cst_152 : f32 to vector<16x256xf32>
    %c17_i32_153 = arith.constant 17 : i32
    %508 = tpu.dynamic_rotate %504 by %c17_i32_153 dim 1 : vector<8x256xf32>, i32 -> vector<8x256xf32>
    %509 = vector.extract_strided_slice %0 {offsets = [0, 0, 0], sizes = [1, 1, 256], strides = [1, 1, 1]} : vector<9x1x256xf32> to vector<1x1x256xf32>
    %510 = vector.shape_cast %509 : vector<1x1x256xf32> to vector<1x256xf32>
    %511 = vector.broadcast %510 : vector<1x256xf32> to vector<8x256xf32>
    %512 = arith.mulf %508, %511 : vector<8x256xf32>
    %513 = vector.extract_strided_slice %505 {offsets = [0, 0, 0], sizes = [1, 16, 8], strides = [1, 1, 1]} : vector<9x16x8xbf16> to vector<1x16x8xbf16>
    %514 = vector.shape_cast %513 : vector<1x16x8xbf16> to vector<16x8xbf16>
    %515 = arith.truncf %512 : vector<8x256xf32> to vector<8x256xbf16>
    %cst_154 = arith.constant dense<0.000000e+00> : vector<16x256xf32>
    %516 = tpu.matmul %514, %515, %cst_154 {dimension_numbers = #tpu.dot_dimension_numbers<[1], [0], [0], [1], [0, 0, 1, 1], [], []>} : vector<16x8xbf16>, vector<8x256xbf16>, vector<16x256xf32> -> vector<16x256xf32>
    %517 = arith.addf %507, %516 : vector<16x256xf32>
    %c16_i32_155 = arith.constant 16 : i32
    %518 = tpu.dynamic_rotate %504 by %c16_i32_155 dim 1 : vector<8x256xf32>, i32 -> vector<8x256xf32>
    %519 = vector.extract_strided_slice %0 {offsets = [1, 0, 0], sizes = [1, 1, 256], strides = [1, 1, 1]} : vector<9x1x256xf32> to vector<1x1x256xf32>
    %520 = vector.shape_cast %519 : vector<1x1x256xf32> to vector<1x256xf32>
    %521 = vector.broadcast %520 : vector<1x256xf32> to vector<8x256xf32>
    %522 = arith.mulf %518, %521 : vector<8x256xf32>
    %523 = vector.extract_strided_slice %505 {offsets = [1, 0, 0], sizes = [1, 16, 8], strides = [1, 1, 1]} : vector<9x16x8xbf16> to vector<1x16x8xbf16>
    %524 = vector.shape_cast %523 : vector<1x16x8xbf16> to vector<16x8xbf16>
    %525 = arith.truncf %522 : vector<8x256xf32> to vector<8x256xbf16>
    %cst_156 = arith.constant dense<0.000000e+00> : vector<16x256xf32>
    %526 = tpu.matmul %524, %525, %cst_156 {dimension_numbers = #tpu.dot_dimension_numbers<[1], [0], [0], [1], [0, 0, 1, 1], [], []>} : vector<16x8xbf16>, vector<8x256xbf16>, vector<16x256xf32> -> vector<16x256xf32>
    %527 = arith.addf %517, %526 : vector<16x256xf32>
    %c15_i32_157 = arith.constant 15 : i32
    %528 = tpu.dynamic_rotate %504 by %c15_i32_157 dim 1 : vector<8x256xf32>, i32 -> vector<8x256xf32>
    %529 = vector.extract_strided_slice %0 {offsets = [2, 0, 0], sizes = [1, 1, 256], strides = [1, 1, 1]} : vector<9x1x256xf32> to vector<1x1x256xf32>
    %530 = vector.shape_cast %529 : vector<1x1x256xf32> to vector<1x256xf32>
    %531 = vector.broadcast %530 : vector<1x256xf32> to vector<8x256xf32>
    %532 = arith.mulf %528, %531 : vector<8x256xf32>
    %533 = vector.extract_strided_slice %505 {offsets = [2, 0, 0], sizes = [1, 16, 8], strides = [1, 1, 1]} : vector<9x16x8xbf16> to vector<1x16x8xbf16>
    %534 = vector.shape_cast %533 : vector<1x16x8xbf16> to vector<16x8xbf16>
    %535 = arith.truncf %532 : vector<8x256xf32> to vector<8x256xbf16>
    %cst_158 = arith.constant dense<0.000000e+00> : vector<16x256xf32>
    %536 = tpu.matmul %534, %535, %cst_158 {dimension_numbers = #tpu.dot_dimension_numbers<[1], [0], [0], [1], [0, 0, 1, 1], [], []>} : vector<16x8xbf16>, vector<8x256xbf16>, vector<16x256xf32> -> vector<16x256xf32>
    %537 = arith.addf %527, %536 : vector<16x256xf32>
    %c1_i32_159 = arith.constant 1 : i32
    %538 = tpu.dynamic_rotate %504 by %c1_i32_159 dim 1 : vector<8x256xf32>, i32 -> vector<8x256xf32>
    %539 = vector.extract_strided_slice %0 {offsets = [3, 0, 0], sizes = [1, 1, 256], strides = [1, 1, 1]} : vector<9x1x256xf32> to vector<1x1x256xf32>
    %540 = vector.shape_cast %539 : vector<1x1x256xf32> to vector<1x256xf32>
    %541 = vector.broadcast %540 : vector<1x256xf32> to vector<8x256xf32>
    %542 = arith.mulf %538, %541 : vector<8x256xf32>
    %543 = vector.extract_strided_slice %505 {offsets = [3, 0, 0], sizes = [1, 16, 8], strides = [1, 1, 1]} : vector<9x16x8xbf16> to vector<1x16x8xbf16>
    %544 = vector.shape_cast %543 : vector<1x16x8xbf16> to vector<16x8xbf16>
    %545 = arith.truncf %542 : vector<8x256xf32> to vector<8x256xbf16>
    %cst_160 = arith.constant dense<0.000000e+00> : vector<16x256xf32>
    %546 = tpu.matmul %544, %545, %cst_160 {dimension_numbers = #tpu.dot_dimension_numbers<[1], [0], [0], [1], [0, 0, 1, 1], [], []>} : vector<16x8xbf16>, vector<8x256xbf16>, vector<16x256xf32> -> vector<16x256xf32>
    %547 = arith.addf %537, %546 : vector<16x256xf32>
    %548 = vector.extract_strided_slice %505 {offsets = [4, 0, 0], sizes = [1, 16, 8], strides = [1, 1, 1]} : vector<9x16x8xbf16> to vector<1x16x8xbf16>
    %549 = vector.shape_cast %548 : vector<1x16x8xbf16> to vector<16x8xbf16>
    %550 = arith.truncf %504 : vector<8x256xf32> to vector<8x256xbf16>
    %cst_161 = arith.constant dense<0.000000e+00> : vector<16x256xf32>
    %551 = tpu.matmul %549, %550, %cst_161 {dimension_numbers = #tpu.dot_dimension_numbers<[1], [0], [0], [1], [0, 0, 1, 1], [], []>} : vector<16x8xbf16>, vector<8x256xbf16>, vector<16x256xf32> -> vector<16x256xf32>
    %552 = arith.addf %547, %551 : vector<16x256xf32>
    %c255_i32_162 = arith.constant 255 : i32
    %553 = tpu.dynamic_rotate %504 by %c255_i32_162 dim 1 : vector<8x256xf32>, i32 -> vector<8x256xf32>
    %554 = vector.extract_strided_slice %0 {offsets = [5, 0, 0], sizes = [1, 1, 256], strides = [1, 1, 1]} : vector<9x1x256xf32> to vector<1x1x256xf32>
    %555 = vector.shape_cast %554 : vector<1x1x256xf32> to vector<1x256xf32>
    %556 = vector.broadcast %555 : vector<1x256xf32> to vector<8x256xf32>
    %557 = arith.mulf %553, %556 : vector<8x256xf32>
    %558 = vector.extract_strided_slice %505 {offsets = [5, 0, 0], sizes = [1, 16, 8], strides = [1, 1, 1]} : vector<9x16x8xbf16> to vector<1x16x8xbf16>
    %559 = vector.shape_cast %558 : vector<1x16x8xbf16> to vector<16x8xbf16>
    %560 = arith.truncf %557 : vector<8x256xf32> to vector<8x256xbf16>
    %cst_163 = arith.constant dense<0.000000e+00> : vector<16x256xf32>
    %561 = tpu.matmul %559, %560, %cst_163 {dimension_numbers = #tpu.dot_dimension_numbers<[1], [0], [0], [1], [0, 0, 1, 1], [], []>} : vector<16x8xbf16>, vector<8x256xbf16>, vector<16x256xf32> -> vector<16x256xf32>
    %562 = arith.addf %552, %561 : vector<16x256xf32>
    %c241_i32_164 = arith.constant 241 : i32
    %563 = tpu.dynamic_rotate %504 by %c241_i32_164 dim 1 : vector<8x256xf32>, i32 -> vector<8x256xf32>
    %564 = vector.extract_strided_slice %0 {offsets = [6, 0, 0], sizes = [1, 1, 256], strides = [1, 1, 1]} : vector<9x1x256xf32> to vector<1x1x256xf32>
    %565 = vector.shape_cast %564 : vector<1x1x256xf32> to vector<1x256xf32>
    %566 = vector.broadcast %565 : vector<1x256xf32> to vector<8x256xf32>
    %567 = arith.mulf %563, %566 : vector<8x256xf32>
    %568 = vector.extract_strided_slice %505 {offsets = [6, 0, 0], sizes = [1, 16, 8], strides = [1, 1, 1]} : vector<9x16x8xbf16> to vector<1x16x8xbf16>
    %569 = vector.shape_cast %568 : vector<1x16x8xbf16> to vector<16x8xbf16>
    %570 = arith.truncf %567 : vector<8x256xf32> to vector<8x256xbf16>
    %cst_165 = arith.constant dense<0.000000e+00> : vector<16x256xf32>
    %571 = tpu.matmul %569, %570, %cst_165 {dimension_numbers = #tpu.dot_dimension_numbers<[1], [0], [0], [1], [0, 0, 1, 1], [], []>} : vector<16x8xbf16>, vector<8x256xbf16>, vector<16x256xf32> -> vector<16x256xf32>
    %572 = arith.addf %562, %571 : vector<16x256xf32>
    %c240_i32_166 = arith.constant 240 : i32
    %573 = tpu.dynamic_rotate %504 by %c240_i32_166 dim 1 : vector<8x256xf32>, i32 -> vector<8x256xf32>
    %574 = vector.extract_strided_slice %0 {offsets = [7, 0, 0], sizes = [1, 1, 256], strides = [1, 1, 1]} : vector<9x1x256xf32> to vector<1x1x256xf32>
    %575 = vector.shape_cast %574 : vector<1x1x256xf32> to vector<1x256xf32>
    %576 = vector.broadcast %575 : vector<1x256xf32> to vector<8x256xf32>
    %577 = arith.mulf %573, %576 : vector<8x256xf32>
    %578 = vector.extract_strided_slice %505 {offsets = [7, 0, 0], sizes = [1, 16, 8], strides = [1, 1, 1]} : vector<9x16x8xbf16> to vector<1x16x8xbf16>
    %579 = vector.shape_cast %578 : vector<1x16x8xbf16> to vector<16x8xbf16>
    %580 = arith.truncf %577 : vector<8x256xf32> to vector<8x256xbf16>
    %cst_167 = arith.constant dense<0.000000e+00> : vector<16x256xf32>
    %581 = tpu.matmul %579, %580, %cst_167 {dimension_numbers = #tpu.dot_dimension_numbers<[1], [0], [0], [1], [0, 0, 1, 1], [], []>} : vector<16x8xbf16>, vector<8x256xbf16>, vector<16x256xf32> -> vector<16x256xf32>
    %582 = arith.addf %572, %581 : vector<16x256xf32>
    %c239_i32_168 = arith.constant 239 : i32
    %583 = tpu.dynamic_rotate %504 by %c239_i32_168 dim 1 : vector<8x256xf32>, i32 -> vector<8x256xf32>
    %584 = vector.extract_strided_slice %0 {offsets = [8, 0, 0], sizes = [1, 1, 256], strides = [1, 1, 1]} : vector<9x1x256xf32> to vector<1x1x256xf32>
    %585 = vector.shape_cast %584 : vector<1x1x256xf32> to vector<1x256xf32>
    %586 = vector.broadcast %585 : vector<1x256xf32> to vector<8x256xf32>
    %587 = arith.mulf %583, %586 : vector<8x256xf32>
    %588 = vector.extract_strided_slice %505 {offsets = [8, 0, 0], sizes = [1, 16, 8], strides = [1, 1, 1]} : vector<9x16x8xbf16> to vector<1x16x8xbf16>
    %589 = vector.shape_cast %588 : vector<1x16x8xbf16> to vector<16x8xbf16>
    %590 = arith.truncf %587 : vector<8x256xf32> to vector<8x256xbf16>
    %cst_169 = arith.constant dense<0.000000e+00> : vector<16x256xf32>
    %591 = tpu.matmul %589, %590, %cst_169 {dimension_numbers = #tpu.dot_dimension_numbers<[1], [0], [0], [1], [0, 0, 1, 1], [], []>} : vector<16x8xbf16>, vector<8x256xbf16>, vector<16x256xf32> -> vector<16x256xf32>
    %592 = arith.addf %582, %591 : vector<16x256xf32>
    %593 = vector.broadcast %506 : vector<16x1xf32> to vector<16x256xf32>
    %594 = arith.addf %592, %593 : vector<16x256xf32>
    %cst_170 = arith.constant 3.000000e+01 : f32
    %595 = vector.broadcast %cst_170 : f32 to vector<16x256xf32>
    %596 = arith.minimumf %594, %595 : vector<16x256xf32>
    %597 = math.exp %596 : vector<16x256xf32>
    %cst_171 = arith.constant 1.000000e+00 : f32
    %598 = vector.broadcast %cst_171 : f32 to vector<16x256xf32>
    %599 = arith.addf %598, %597 : vector<16x256xf32>
    %600 = arith.mulf %599, %599 : vector<16x256xf32>
    %cst_172 = arith.constant 1.000000e+00 : f32
    %601 = vector.broadcast %cst_172 : f32 to vector<16x256xf32>
    %602 = arith.addf %600, %601 : vector<16x256xf32>
    %603 = tpu.reciprocal %602 {approx = true} : vector<16x256xf32> -> vector<16x256xf32>
    %cst_173 = arith.constant 2.000000e+00 : f32
    %604 = vector.broadcast %cst_173 : f32 to vector<16x256xf32>
    %605 = arith.mulf %604, %603 : vector<16x256xf32>
    %cst_174 = arith.constant 1.000000e+00 : f32
    %606 = vector.broadcast %cst_174 : f32 to vector<16x256xf32>
    %607 = arith.subf %606, %605 : vector<16x256xf32>
    %608 = arith.mulf %594, %607 : vector<16x256xf32>
    %609 = arith.addf %400, %608 : vector<16x256xf32>
    %610 = vector.broadcast %3 : vector<16x1xf32> to vector<16x256xf32>
    %611 = arith.mulf %610, %609 : vector<16x256xf32>
    %612 = vector.broadcast %4 : vector<16x1xf32> to vector<16x256xf32>
    %613 = arith.addf %611, %612 : vector<16x256xf32>
    %c0_175 = arith.constant 0 : index
    %c0_176 = arith.constant 0 : index
    %c0_177 = arith.constant 0 : index
    %614 = vector.load %arg23[%c0_175, %c0_176, %c0_177] : memref<1x16x256xf32, #tpu.memory_space<vmem>>, vector<1x16x256xf32>
    %615 = vector.shape_cast %614 : vector<1x16x256xf32> to vector<16x256xf32>
    %616 = vector.shape_cast %613 : vector<16x256xf32> to vector<1x16x256xf32>
    tpu.vector_store %arg23[%c0_175, %c0_176, %c0_177], %616 {strides = array<i32>} : memref<1x16x256xf32, #tpu.memory_space<vmem>>, vector<1x16x256xf32>,
    return
  }
  func.func @transform_0(%arg0: i32) -> (i32, i32, i32) {
    %c0_i32 = arith.constant 0 : i32
    %c0_i32_0 = arith.constant 0 : i32
    %c0_i32_1 = arith.constant 0 : i32
    return %arg0, %c0_i32, %c0_i32_0 : i32, i32, i32
  }
  func.func @transform_1(%arg0: i32) -> (i32, i32, i32) {
    %c0_i32 = arith.constant 0 : i32
    %c0_i32_0 = arith.constant 0 : i32
    %c0_i32_1 = arith.constant 0 : i32
    %c0_i32_2 = arith.constant 0 : i32
    return %c0_i32, %c0_i32_0, %c0_i32_1 : i32, i32, i32
  }
  func.func @transform_2(%arg0: i32) -> (i32, i32) {
    %c0_i32 = arith.constant 0 : i32
    %c0_i32_0 = arith.constant 0 : i32
    %c0_i32_1 = arith.constant 0 : i32
    return %c0_i32, %c0_i32_0 : i32, i32
  }
  func.func @transform_3(%arg0: i32) -> (i32, i32) {
    %c0_i32 = arith.constant 0 : i32
    %c0_i32_0 = arith.constant 0 : i32
    %c0_i32_1 = arith.constant 0 : i32
    return %c0_i32, %c0_i32_0 : i32, i32
  }
  func.func @transform_4(%arg0: i32) -> (i32, i32) {
    %c0_i32 = arith.constant 0 : i32
    %c0_i32_0 = arith.constant 0 : i32
    %c0_i32_1 = arith.constant 0 : i32
    return %c0_i32, %c0_i32_0 : i32, i32
  }
  func.func @transform_5(%arg0: i32) -> (i32, i32) {
    %c0_i32 = arith.constant 0 : i32
    %c0_i32_0 = arith.constant 0 : i32
    %c0_i32_1 = arith.constant 0 : i32
    return %c0_i32, %c0_i32_0 : i32, i32
  }
  func.func @transform_6(%arg0: i32) -> (i32, i32, i32) {
    %c0_i32 = arith.constant 0 : i32
    %c0_i32_0 = arith.constant 0 : i32
    %c0_i32_1 = arith.constant 0 : i32
    %c0_i32_2 = arith.constant 0 : i32
    return %c0_i32, %c0_i32_0, %c0_i32_1 : i32, i32, i32
  }
  func.func @transform_7(%arg0: i32) -> (i32, i32) {
    %c0_i32 = arith.constant 0 : i32
    %c0_i32_0 = arith.constant 0 : i32
    %c0_i32_1 = arith.constant 0 : i32
    return %c0_i32, %c0_i32_0 : i32, i32
  }
  func.func @transform_8(%arg0: i32) -> (i32, i32, i32) {
    %c0_i32 = arith.constant 0 : i32
    %c0_i32_0 = arith.constant 0 : i32
    %c0_i32_1 = arith.constant 0 : i32
    %c0_i32_2 = arith.constant 0 : i32
    return %c0_i32, %c0_i32_0, %c0_i32_1 : i32, i32, i32
  }
  func.func @transform_9(%arg0: i32) -> (i32, i32) {
    %c0_i32 = arith.constant 0 : i32
    %c0_i32_0 = arith.constant 0 : i32
    %c0_i32_1 = arith.constant 0 : i32
    return %c0_i32, %c0_i32_0 : i32, i32
  }
  func.func @transform_10(%arg0: i32) -> (i32, i32, i32) {
    %c0_i32 = arith.constant 0 : i32
    %c0_i32_0 = arith.constant 0 : i32
    %c0_i32_1 = arith.constant 0 : i32
    %c0_i32_2 = arith.constant 0 : i32
    return %c0_i32, %c0_i32_0, %c0_i32_1 : i32, i32, i32
  }
  func.func @transform_11(%arg0: i32) -> (i32, i32) {
    %c0_i32 = arith.constant 0 : i32
    %c0_i32_0 = arith.constant 0 : i32
    %c0_i32_1 = arith.constant 0 : i32
    return %c0_i32, %c0_i32_0 : i32, i32
  }
  func.func @transform_12(%arg0: i32) -> (i32, i32) {
    %c0_i32 = arith.constant 0 : i32
    %c0_i32_0 = arith.constant 0 : i32
    %c0_i32_1 = arith.constant 0 : i32
    return %c0_i32, %c0_i32_0 : i32, i32
  }
  func.func @transform_13(%arg0: i32) -> (i32, i32) {
    %c0_i32 = arith.constant 0 : i32
    %c0_i32_0 = arith.constant 0 : i32
    %c0_i32_1 = arith.constant 0 : i32
    return %c0_i32, %c0_i32_0 : i32, i32
  }
  func.func @transform_14(%arg0: i32) -> (i32, i32, i32) {
    %c0_i32 = arith.constant 0 : i32
    %c0_i32_0 = arith.constant 0 : i32
    %c0_i32_1 = arith.constant 0 : i32
    %c0_i32_2 = arith.constant 0 : i32
    return %c0_i32, %c0_i32_0, %c0_i32_1 : i32, i32, i32
  }
  func.func @transform_15(%arg0: i32) -> (i32, i32) {
    %c0_i32 = arith.constant 0 : i32
    %c0_i32_0 = arith.constant 0 : i32
    %c0_i32_1 = arith.constant 0 : i32
    return %c0_i32, %c0_i32_0 : i32, i32
  }
  func.func @transform_16(%arg0: i32) -> (i32, i32) {
    %c0_i32 = arith.constant 0 : i32
    %c0_i32_0 = arith.constant 0 : i32
    %c0_i32_1 = arith.constant 0 : i32
    return %c0_i32, %c0_i32_0 : i32, i32
  }
  func.func @transform_17(%arg0: i32) -> (i32, i32) {
    %c0_i32 = arith.constant 0 : i32
    %c0_i32_0 = arith.constant 0 : i32
    %c0_i32_1 = arith.constant 0 : i32
    return %c0_i32, %c0_i32_0 : i32, i32
  }
  func.func @transform_18(%arg0: i32) -> (i32, i32, i32) {
    %c0_i32 = arith.constant 0 : i32
    %c0_i32_0 = arith.constant 0 : i32
    %c0_i32_1 = arith.constant 0 : i32
    %c0_i32_2 = arith.constant 0 : i32
    return %c0_i32, %c0_i32_0, %c0_i32_1 : i32, i32, i32
  }
  func.func @transform_19(%arg0: i32) -> (i32, i32) {
    %c0_i32 = arith.constant 0 : i32
    %c0_i32_0 = arith.constant 0 : i32
    %c0_i32_1 = arith.constant 0 : i32
    return %c0_i32, %c0_i32_0 : i32, i32
  }
  func.func @transform_20(%arg0: i32) -> (i32, i32, i32) {
    %c0_i32 = arith.constant 0 : i32
    %c0_i32_0 = arith.constant 0 : i32
    %c0_i32_1 = arith.constant 0 : i32
    %c0_i32_2 = arith.constant 0 : i32
    return %c0_i32, %c0_i32_0, %c0_i32_1 : i32, i32, i32
  }
  func.func @transform_21(%arg0: i32) -> (i32, i32) {
    %c0_i32 = arith.constant 0 : i32
    %c0_i32_0 = arith.constant 0 : i32
    %c0_i32_1 = arith.constant 0 : i32
    return %c0_i32, %c0_i32_0 : i32, i32
  }
  func.func @transform_22(%arg0: i32) -> (i32, i32, i32) {
    %c0_i32 = arith.constant 0 : i32
    %c0_i32_0 = arith.constant 0 : i32
    %c0_i32_1 = arith.constant 0 : i32
    return %arg0, %c0_i32, %c0_i32_0 : i32, i32, i32
  }
}

</mosaic_0001>

<bundles_post_ra>
// kernel: former_bottleneck.1
= control target key start
LH: loop header
LB: loop body
LE: loop exit
PB: predicated region body
PF: predicated region fallthrough
CT: control target
= control target key end

     0   :  { %s7400_s0 = inlined_call_operand.vmem [shape: bf16[2,4,256], index: 0, kind: input, shape index: {}]   ;;  %s7401_s1 = inlined_call_operand.vmem [shape: f32[9,1,256], index: 1, kind: input, shape index: {}]   ;;  %s7402_s2 = inlined_call_operand.vmem [shape: bf16[16,4], index: 2, kind: input, shape index: {}]   ;;  %s7403_s3 = inlined_call_operand.vmem [shape: f32[16,1], index: 3, kind: input, shape index: {}]   ;;  %s7404_s4 = inlined_call_operand.vmem [shape: bf16[48,16], index: 4, kind: input, shape index: {}]   ;;  %s7405_s5 = inlined_call_operand.vmem [shape: f32[48,1], index: 5, kind: input, shape index: {}]   ;;  %s7406_s6 = inlined_call_operand.vmem [shape: bf16[9,16,16], index: 6, kind: input, shape index: {}]   ;;  %s7407_s7 = inlined_call_operand.vmem [shape: f32[16,1], index: 7, kind: input, shape index: {}]   ;;  %s7408_s8 = inlined_call_operand.vmem [shape: bf16[9,16,16], index: 8, kind: input, shape index: {}]   ;;  %s7409_s9 = inlined_call_operand.vmem [shape: f32[16,1], index: 9, kind: input, shape index: {}]   ;;  %s7410_s10 = inlined_call_operand.vmem [shape: bf16[9,16,16], index: 10, kind: input, shape index: {}]   ;;  %s7411_s11 = inlined_call_operand.vmem [shape: f32[16,1], index: 11, kind: input, shape index: {}]   ;;  %s7412_s12 = inlined_call_operand.vmem [shape: bf16[16,16], index: 12, kind: input, shape index: {}]   ;;  %s7413_s13 = inlined_call_operand.vmem [shape: f32[16,1], index: 13, kind: input, shape index: {}]   ;;  %s7414_s14 = inlined_call_operand.vmem [shape: bf16[9,16,16], index: 14, kind: input, shape index: {}]   ;;  %s7415_s15 = inlined_call_operand.vmem [shape: f32[16,1], index: 15, kind: input, shape index: {}]   ;;  %s7416_s16 = inlined_call_operand.vmem [shape: f32[16,1], index: 16, kind: input, shape index: {}]   ;;  %s7417_s17 = inlined_call_operand.vmem [shape: f32[16,1], index: 17, kind: input, shape index: {}]   ;;  %s7418_s18 = inlined_call_operand.vmem [shape: bf16[9,8,16], index: 18, kind: input, shape index: {}]   ;;  %s7419_s19 = inlined_call_operand.vmem [shape: f32[8,1], index: 19, kind: input, shape index: {}]   ;;  %s7420_s20 = inlined_call_operand.vmem [shape: bf16[9,16,8], index: 20, kind: input, shape index: {}]   ;;  %s7421_s21 = inlined_call_operand.vmem [shape: f32[16,1], index: 21, kind: input, shape index: {}]   ;;  %s7422_s22 = inlined_call_operand.vmem [shape: f32[2,16,256], index: 22, kind: output, shape index: {}]  }
   0x1   :  { %7489 = sst [smem:[#allocation33_spill]] %s7400_s0 }
   0x2   :  { %7490 = sst [smem:[#allocation34_spill]] %s7401_s1 }
   0x3   :  { %7491 = sst [smem:[#allocation35_spill]] %s7402_s2 }
   0x4   :  { %7492 = sst [smem:[#allocation36_spill]] %s7403_s3  ;;  %s5509_s3 = smov 0  }
   0x5   :  { %7493 = sst [smem:[#allocation37_spill]] %s7404_s4 }
   0x6   :  { %7494 = sst [smem:[#allocation38_spill]] %s7405_s5 }
   0x7   :  { %7495 = sst [smem:[#allocation39_spill]] %s7406_s6 }
   0x8   :  { %7496 = sst [smem:[#allocation40_spill]] %s7407_s7 }
   0x9   :  { %7497 = sst [smem:[#allocation41_spill]] %s7408_s8 }
   0xa   :  { %7498 = sst [smem:[#allocation42_spill]] %s7409_s9 }
   0xb   :  { %7499 = sst [smem:[#allocation43_spill]] %s7410_s10 }
   0xc   :  { %7500 = sst [smem:[#allocation44_spill]] %s7411_s11 }
   0xd   :  { %7501 = sst [smem:[#allocation45_spill]] %s7412_s12 }
   0xe   :  { %7502 = sst [smem:[#allocation46_spill]] %s7413_s13 }
   0xf LB: > { %s4824_s28 = sadd.s32 4294967295, %s5383_s3   ;;  %p4828_p0 = scmp.ge.s32.totalorder %s5383_s3, 1  ;;  %s5383_s3 = sphi %s5509_s3, %s32_s3  }
  0x10   : > { %p612_p1 = scmp.lt.s32.totalorder %s5383_s3, 3 }
  0x12   : > { %p613_p2 = pnand %p4828_p0, %p612_p1 }
  0x14   : > { %616 = sbr.rel (%p613_p2) target bundleno = 2203 (0x89b), region = 108 }
  0x19   : > { %s7503_s4 = sld [smem:[#allocation36_spill]]  ;;  %p674_p3 = scmp.lt.s32.totalorder %s4824_s28, 1  ;;  %v5385_v1 = vmov 0   ;;  %vm725_vm0 = vcmask 1041408   ;;  %vm721_vm1 = vcmask 31744   ;;  %vm857_vm2 = vcmask 130048  }
  0x1a   : > { %5222 = vset.pattern.permute.xlu0 %v5385_v1  ;;  %5223 = vset.pattern.permute.xlu1 %v5385_v1  ;;  %s7504_s5 = sld [smem:[#allocation33_spill]]  ;;  %s7442_s26 = smov 17   ;;  %vm4238_vm11 = vcmask 1043456   ;;  %vm4234_vm12 = vcmask 64512  }
  0x1b   : > { %s7588_s28 = smov (!%p674_p3, %s4824_s28), 1  ;;  %5224 = vset.pattern.permute.xlu2 %v5385_v1  ;;  %s7505_s27 = sld [smem:[#allocation35_spill]] }
  0x1c   : > { %s5153_s0 = sshll.u32 %s7588_s28, 2  ;;  %s7506_s23 = sld [smem:[#allocation38_spill]] }
  0x1d   : > { %s7432_s2 = smov 16   ;;  %s7430_s29 = smov 15  }
  0x1e   : > { %s7428_s30 = smov 1   ;;  %s7518_s6 = sld [smem:[#allocation39_spill]] }
  0x1f   : > { %v700_v0 = vld [vmem:[%s7503_s4] sm:$0xff]  ;;  %v701_v3 = vld [vmem:[%s7503_s4 + $0x8] sm:$0xff]  ;;  %s7434_s1 = smov 113   ;;  %s7519_s8 = sld [smem:[#allocation41_spill]] }
  0x20   : > { %704 = vperm.xlu0 %5222, %v700_v0   ;;  %s678_s24 = scalar_lea.vmem %s7504_s5, %s5153_s0  ;;  %s7513_s5 = sld [smem:[#allocation34_spill]] }
  0x21   : > { %v693_v2 = vld [vmem:[%s678_s24] sm:$0xf]  ;;  %s7438_s24 = smov 127   ;;  %s7522_s10 = sld [smem:[#allocation43_spill]] }
  0x22   : > { %718 = vst [vmem:[#allocation1] ss:$4 sm:$0xff] %v693_v2  ;;  %v5155_v8 = vld [vmem:[%s7505_s27] sm:$0xff]  ;;  %v807_v38 = vld [vmem:[%s7506_s23 + $0x8] sm:$0xff]  ;;  %s7511_s27 = sld [smem:[#allocation37_spill]]  ;;  %v808_v2 = vld [vmem:[%s7506_s23 + $0x10] sm:$0xff] }
  0x23   : > { %v810_v9 = vld [vmem:[%s7506_s23 + $0x20] sm:$0xff]  ;;  %v811_v49 = vld [vmem:[%s7506_s23 + $0x28] sm:$0xff]  ;;  %824 = vperm.xlu2 %5224, %v808_v2   ;;  %s7440_s25 = smov 111   ;;  %s7527_s7 = sld [smem:[#allocation40_spill]] }
  0x24   : > { %v806_v32 = vld [vmem:[%s7506_s23] sm:$0xff]  ;;  %s7528_s11 = sld [smem:[#allocation44_spill]]  ;;  %s7559_s0 = smov 16  }
  0x25   : > { %814 = vperm.xlu1 %5223, %v806_v32   ;;  %s7529_s9 = sld [smem:[#allocation42_spill]] }
  0x26   : > { %s7532_s13 = sld [smem:[#allocation46_spill]] }
  0x27   : > { %s7557_s12 = sld [smem:[#allocation45_spill]] }
  0x28   : > { %709 = vperm.xlu0 %5222, %v701_v3   ;;  %v5156_v1 = vld [vmem:[%s7511_s27] sm:$0xff]  ;;  %v809_v3 = vld [vmem:[%s7506_s23 + $0x18] sm:$0xff] }
  0x29   : > { %v719_v4 = vld.sshfl [vmem:[#allocation1] sm:$0xff pattern:$0x73625140]  ;;  %v720_v5 = vld.sshfl [vmem:[#allocation1 + $0x8] sm:$0xff pattern:$0x73625140] }
  0x2a   : > { %v726_v6 = vsel %vm725_vm0, %v719_v4, 0  ;;  %v728_v7 = vsel %vm725_vm0, %v720_v5, 0  ;;  %v5157_v4 = vld [vmem:[%s7511_s27 + $0x8] sm:$0xff]  ;;  %v5158_v5 = vld [vmem:[%s7511_s27 + $0x10] sm:$0xff] }
  0x2b   : > { %737 = vmatpush.bf16.msra.mxu0 %v726_v6  ;;  %751 = vmatpush.bf16.msra.mxu1 %v728_v7 }
  0x2c   : > { %829 = vperm.xlu2 %5224, %v809_v3  }
  0x2d   : > { %819 = vperm.xlu1 %5223, %v807_v38  }
  0x2e   : > { %4837 = vmatmul.msk.bf16.vlgmr.msra.gmra.mxu0 %vm721_vm1, %v5155_v8  ;;  %4838 = vmatmul.msk.bf16.vlgmr.msra.gmra.mxu1 %vm721_vm1, %v5155_v8 }
  0x30   : > { %834 = vperm.xlu0 %5222, %v810_v9  }
  0x35   : > { %839 = vperm.xlu1 %5223, %v811_v49  }
  0x92   : > { %v705_v10 = vpop.permute.xlu0 %704 }
  0x97   : > { %v815_v6 = vpop.permute.xlu1 %814 }
  0x9a   : > { %v710_v19 = vpop.permute.xlu0 %709 }
  0xab   : > { %v739_v11 = vpop.f32.mrf.mxu0  ;;  %v753_v12 = vpop.f32.mrf.mxu1 }
  0xac   : > { %v740_v13 = vadd.f32 %v739_v11, %v705_v10  ;;  %v754_v14 = vadd.f32 %v753_v12, %v705_v10 }
  0xae   : > { %v758_v15 = vmin.f32 %v740_v13, 30.0  ;;  %v759_v16 = vmin.f32 %v754_v14, 30.0 }
  0xb0   : > { %v762_v17 = vmul.f32 1.442695, %v758_v15  ;;  %v764_v18 = vmul.f32 1.442695, %v759_v16  ;;  %v820_v15 = vpop.permute.xlu1 %819 }
  0xb2   : > { %5225 = vpow2.f32 %v762_v17 }
  0xb3   : > { %5227 = vpow2.f32 %v764_v18  ;;  %v741_v20 = vpop.f32.mrf.mxu0  ;;  %v755_v21 = vpop.f32.mrf.mxu1 }
  0xb4   : > { %v742_v22 = vadd.f32 %v741_v20, %v710_v19  ;;  %v756_v23 = vadd.f32 %v755_v21, %v710_v19 }
  0xb6   : > { %v760_v24 = vmin.f32 %v742_v22, 30.0  ;;  %v761_v25 = vmin.f32 %v756_v23, 30.0 }
  0xb8   : > { %v5226_v26 = vpop.eup %5225  ;;  %v766_v27 = vmul.f32 1.442695, %v760_v24  ;;  %v768_v28 = vmul.f32 1.442695, %v761_v25 }
  0xb9   : > { %v5228_v29 = vpop.eup %5227  ;;  %v770_v30 = vadd.f32 1.0, %v5226_v26 }
  0xba   : > { %v771_v31 = vadd.f32 1.0, %v5228_v29  ;;  %5229 = vpow2.f32 %v766_v27  ;;  %v825_v27 = vpop.permute.xlu2 %824 }
  0xbb   : > { %v774_v33 = vmul.f32 %v770_v30, %v770_v30  ;;  %5231 = vpow2.f32 %v768_v28 }
  0xbc   : > { %v775_v34 = vmul.f32 %v771_v31, %v771_v31 }
  0xbd   : > { %v778_v35 = vadd.f32 1.0, %v774_v33 }
  0xbe   : > { %v779_v36 = vadd.f32 1.0, %v775_v34 }
  0xbf   : > { %5233 = vrcp.f32 %v778_v35 }
  0xc0   : > { %v5230_v37 = vpop.eup %5229  ;;  %5235 = vrcp.f32 %v779_v36 }
  0xc1   : > { %v5232_v39 = vpop.eup %5231  ;;  %v772_v40 = vadd.f32 1.0, %v5230_v37 }
  0xc2   : > { %v773_v41 = vadd.f32 1.0, %v5232_v39 }
  0xc3   : > { %v776_v42 = vmul.f32 %v772_v40, %v772_v40 }
  0xc4   : > { %v777_v43 = vmul.f32 %v773_v41, %v773_v41 }
  0xc5   : > { %v780_v44 = vadd.f32 1.0, %v776_v42  ;;  %v5234_v46 = vpop.eup %5233 }
  0xc6   : > { %v781_v45 = vadd.f32 1.0, %v777_v43  ;;  %v5236_v47 = vpop.eup %5235  ;;  %v786_v48 = vmul.f32 2.0, %v5234_v46 }
  0xc7   : > { %5237 = vrcp.f32 %v780_v44  ;;  %v787_v50 = vmul.f32 2.0, %v5236_v47 }
  0xc8   : > { %5239 = vrcp.f32 %v781_v45  ;;  %v790_v53 = vsub.f32 1.0, %v786_v48 }
  0xc9   : > { %v791_v55 = vsub.f32 1.0, %v787_v50  ;;  %v830_v50 = vpop.permute.xlu2 %829 }
  0xca   : > { %v5544_v59 = vmul.f32 %v790_v53, %v740_v13 }
  0xcb   : > { %v5548_v61 = vmul.f32 %v791_v55, %v754_v14 }
  0xcc   : > { %7507 = vst [vmem:[#allocation2_spill] sm:$0xff] %v5544_v59 }
  0xcd   : > { %v5238_v51 = vpop.eup %5237  ;;  %7509 = vst [vmem:[#allocation4_spill] sm:$0xff] %v5548_v61 }
  0xce   : > { %v5240_v52 = vpop.eup %5239  ;;  %v788_v54 = vmul.f32 2.0, %v5238_v51 }
  0xcf   : > { %v789_v56 = vmul.f32 2.0, %v5240_v52 }
  0xd0   : > { %v792_v57 = vsub.f32 1.0, %v788_v54 }
  0xd1   : > { %v793_v58 = vsub.f32 1.0, %v789_v56 }
  0xd2   : > { %v5546_v60 = vmul.f32 %v792_v57, %v742_v22 }
  0xd3   : > { %v5550_v62 = vmul.f32 %v793_v58, %v756_v23 }
  0xd4   : > { %7508 = vst [vmem:[#allocation3_spill] sm:$0xff] %v5546_v60  ;;  %v804_v63 = vpack.c.bf16 %v5546_v60, %v5544_v59 }
  0xd5   : > { %7510 = vst [vmem:[#allocation5_spill] sm:$0xff] %v5550_v62  ;;  %v805_v0 = vpack.c.bf16 %v5550_v62, %v5548_v61 }
  0xd6   : > { %874 = vmatpush.bf16.msra.mxu2 %v804_v63 }
  0xd7   : > { %898 = vmatpush.bf16.msra.mxu3 %v805_v0 }
  0xd9   : > { %4851 = vmatmul.msk.bf16.vlgmr.msra.gmra.mxu2 %vm857_vm2, %v5156_v1 }
  0xda   : > { %4854 = vmatmul.msk.bf16.vlgmr.msra.gmra.mxu3 %vm857_vm2, %v5156_v1 }
  0xe9   : > { %4852 = vmatmul.msk.bf16.gmra.mxu2 %vm857_vm2, %v5157_v4 }
  0xea   : > { %4855 = vmatmul.msk.bf16.gmra.mxu3 %vm857_vm2, %v5157_v4 }
  0xf9   : > { %4853 = vmatmul.msk.bf16.gmra.mxu2 %vm857_vm2, %v5158_v5 }
  0xfa   : > { %4856 = vmatmul.msk.bf16.gmra.mxu3 %vm857_vm2, %v5158_v5 }
 0x15c   : > { %v876_v7 = vpop.f32.mrf.mxu2 }
 0x15d   : > { %v5577_v8 = vadd.f32 %v876_v7, %v815_v6  ;;  %v900_v9 = vpop.f32.mrf.mxu3 }
 0x15e   : > { %v5579_v10 = vadd.f32 %v900_v9, %v815_v6 }
 0x15f   : > { %v915_v11 = vmin.f32 %v5577_v8, 30.0 }
 0x160   : > { %v916_v12 = vmin.f32 %v5579_v10, 30.0 }
 0x161   : > { %v927_v13 = vmul.f32 1.442695, %v915_v11 }
 0x162   : > { %v929_v14 = vmul.f32 1.442695, %v916_v12 }
 0x163   : > { %5241 = vpow2.f32 %v927_v13 }
 0x164   : > { %5243 = vpow2.f32 %v929_v14  ;;  %v878_v16 = vpop.f32.mrf.mxu2  ;;  %v835_v14 = vpop.permute.xlu0 %834 }
 0x165   : > { %v5583_v17 = vadd.f32 %v878_v16, %v820_v15  ;;  %v902_v18 = vpop.f32.mrf.mxu3 }
 0x166   : > { %v5585_v19 = vadd.f32 %v902_v18, %v820_v15 }
 0x167   : > { %v917_v20 = vmin.f32 %v5583_v17, 30.0 }
 0x168   : > { %v918_v21 = vmin.f32 %v5585_v19, 30.0 }
 0x169   : > { %v5242_v22 = vpop.eup %5241  ;;  %v931_v23 = vmul.f32 1.442695, %v917_v20 }
 0x16a   : > { %v5244_v24 = vpop.eup %5243  ;;  %v951_v25 = vadd.f32 1.0, %v5242_v22  ;;  %v933_v26 = vmul.f32 1.442695, %v918_v21 }
 0x16b   : > { %v952_v28 = vadd.f32 1.0, %v5244_v24  ;;  %5245 = vpow2.f32 %v931_v23 }
 0x16c   : > { %v963_v29 = vmul.f32 %v951_v25, %v951_v25  ;;  %5247 = vpow2.f32 %v933_v26  ;;  %v881_v30 = vpop.f32.mrf.mxu2 }
 0x16d   : > { %v964_v31 = vmul.f32 %v952_v28, %v952_v28  ;;  %v5589_v32 = vadd.f32 %v881_v30, %v825_v27  ;;  %v905_v33 = vpop.f32.mrf.mxu3 }
 0x16e   : > { %v975_v34 = vadd.f32 1.0, %v963_v29  ;;  %v5591_v35 = vadd.f32 %v905_v33, %v825_v27 }
 0x16f   : > { %v976_v36 = vadd.f32 1.0, %v964_v31  ;;  %v919_v37 = vmin.f32 %v5589_v32, 30.0 }
 0x170   : > { %5249 = vrcp.f32 %v975_v34  ;;  %v920_v38 = vmin.f32 %v5591_v35, 30.0 }
 0x171   : > { %v5246_v39 = vpop.eup %5245  ;;  %5251 = vrcp.f32 %v976_v36  ;;  %v935_v40 = vmul.f32 1.442695, %v919_v37 }
 0x172   : > { %v5248_v41 = vpop.eup %5247  ;;  %v953_v42 = vadd.f32 1.0, %v5246_v39  ;;  %v937_v43 = vmul.f32 1.442695, %v920_v38 }
 0x173   : > { %v954_v44 = vadd.f32 1.0, %v5248_v41  ;;  %5253 = vpow2.f32 %v935_v40  ;;  %v840_v41 = vpop.permute.xlu1 %839 }
 0x174   : > { %v965_v45 = vmul.f32 %v953_v42, %v953_v42  ;;  %v883_v46 = vpop.f32.mrf.mxu2  ;;  %5255 = vpow2.f32 %v937_v43 }
 0x175   : > { %v966_v47 = vmul.f32 %v954_v44, %v954_v44  ;;  %v907_v54 = vpop.f32.mrf.mxu3  ;;  %v5595_v58 = vadd.f32 %v883_v46, %v830_v50 }
 0x176   : > { %v5250_v48 = vpop.eup %5249  ;;  %v977_v49 = vadd.f32 1.0, %v965_v45  ;;  %v5597_v1 = vadd.f32 %v907_v54, %v830_v50 }
 0x177   : > { %v5252_v51 = vpop.eup %5251  ;;  %v999_v52 = vmul.f32 2.0, %v5250_v48  ;;  %v978_v53 = vadd.f32 1.0, %v966_v47  ;;  %v921_v6 = vmin.f32 %v5595_v58, 30.0 }
 0x178   : > { %v1000_v55 = vmul.f32 2.0, %v5252_v51  ;;  %5257 = vrcp.f32 %v977_v49  ;;  %v922_v11 = vmin.f32 %v5597_v1, 30.0 }
 0x179   : > { %v5254_v56 = vpop.eup %5253  ;;  %v1011_v57 = vsub.f32 1.0, %v999_v52  ;;  %5259 = vrcp.f32 %v978_v53  ;;  %v939_v16 = vmul.f32 1.442695, %v921_v6 }
 0x17a   : > { %v1012_v63 = vsub.f32 1.0, %v1000_v55  ;;  %v955_v0 = vadd.f32 1.0, %v5254_v56  ;;  %v5256_v2 = vpop.eup %5255  ;;  %v941_v21 = vmul.f32 1.442695, %v922_v11 }
 0x17b   : > { %v5600_v3 = vmul.f32 %v1011_v57, %v5577_v8  ;;  %v956_v9 = vadd.f32 1.0, %v5256_v2 }
 0x17c   : > { %v5603_v4 = vmul.f32 %v1012_v63, %v5579_v10  ;;  %v967_v5 = vmul.f32 %v955_v0, %v955_v0  ;;  %v886_v8 = vpop.f32.mrf.mxu2 }
 0x17d   : > { %1089 = vrot.lane.b32.xlu0 %v5600_v3, %s7442_s26  ;;  %1151 = vrot.lane.b32.xlu2 %v5600_v3, %s7432_s2  ;;  %v5613_v18 = vadd.f32 %v886_v8, %v835_v14  ;;  %v968_v20 = vmul.f32 %v956_v9, %v956_v9  ;;  %v910_v24 = vpop.f32.mrf.mxu3 }
 0x17e   : > { %v5258_v7 = vpop.eup %5257  ;;  %1163 = vrot.lane.b32.xlu1 %v5603_v4, %s7432_s2  ;;  %v979_v12 = vadd.f32 1.0, %v967_v5  ;;  %v5625_v29 = vadd.f32 %v910_v24, %v835_v14 }
 0x17f   : > { %v1001_v10 = vmul.f32 2.0, %v5258_v7  ;;  %v5260_v13 = vpop.eup %5259  ;;  %v923_v25 = vmin.f32 %v5613_v18, 30.0  ;;  %v980_v26 = vadd.f32 1.0, %v968_v20 }
 0x180   : > { %v1002_v23 = vmul.f32 2.0, %v5260_v13  ;;  %5261 = vrcp.f32 %v979_v12  ;;  %v924_v36 = vmin.f32 %v5625_v29, 30.0 }
 0x181   : > { %v1013_v15 = vsub.f32 1.0, %v1001_v10  ;;  %5263 = vpow2.f32 %v939_v16  ;;  %v943_v28 = vmul.f32 1.442695, %v923_v25 }
 0x182   : > { %5265 = vpow2.f32 %v941_v21  ;;  %v945_v43 = vmul.f32 1.442695, %v924_v36 }
 0x183   : > { %v5616_v22 = vmul.f32 %v1013_v15, %v5583_v17  ;;  %v1014_v17 = vsub.f32 1.0, %v1002_v23  ;;  %5267 = vrcp.f32 %v980_v26 }
 0x184   : > { %5269 = vpow2.f32 %v943_v28  ;;  %v888_v40 = vpop.f32.mrf.mxu2 }
 0x185   : > { %1153 = vrot.lane.b32.xlu0 %v5616_v22, %s7432_s2  ;;  %1101 = vrot.lane.b32.xlu2 %v5603_v4, %s7442_s26  ;;  %v5628_v31 = vmul.f32 %v1014_v17, %v5585_v19  ;;  %v912_v38 = vpop.f32.mrf.mxu3  ;;  %v5639_v46 = vadd.f32 %v888_v40, %v840_v41  ;;  %5271 = vpow2.f32 %v945_v43 }
 0x186   : > { %1499 = vrot.lane.b32.xlu1 %v5603_v4, %s7430_s29  ;;  %v5262_v27 = vpop.eup %5261  ;;  %v5637_v44 = vadd.f32 %v912_v38, %v840_v41 }
 0x187   : > { %v5264_v30 = vpop.eup %5263  ;;  %v1003_v34 = vmul.f32 2.0, %v5262_v27  ;;  %v925_v54 = vmin.f32 %v5639_v46, 30.0 }
 0x188   : > { %v5266_v33 = vpop.eup %5265  ;;  %v957_v37 = vadd.f32 1.0, %v5264_v30  ;;  %v926_v51 = vmin.f32 %v5637_v44, 30.0 }
 0x189   : > { %v958_v39 = vadd.f32 1.0, %v5266_v33  ;;  %v5268_v19 = vpop.eup %5267  ;;  %v1015_v42 = vsub.f32 1.0, %v1003_v34  ;;  %v947_v63 = vmul.f32 1.442695, %v925_v54 }
 0x18a   : > { %v969_v45 = vmul.f32 %v957_v37, %v957_v37  ;;  %v5270_v47 = vpop.eup %5269  ;;  %v1004_v48 = vmul.f32 2.0, %v5268_v19 }
 0x18b   : > { %v970_v49 = vmul.f32 %v958_v39, %v958_v39  ;;  %v5642_v50 = vmul.f32 %v1015_v42, %v5589_v32  ;;  %v959_v53 = vadd.f32 1.0, %v5270_v47  ;;  %v949_v32 = vmul.f32 1.442695, %v926_v51  ;;  %v5272_v0 = vpop.eup %5271  ;;  %v686_v47 = vld [vmem:[%s7513_s5 + $0x2] sm:$0x3] }
 0x18c   : > { %v981_v52 = vadd.f32 1.0, %v969_v45  ;;  %v1016_v55 = vsub.f32 1.0, %v1004_v48  ;;  %v960_v6 = vadd.f32 1.0, %v5272_v0  ;;  %v1113_v45 = vlaneseq }
 0x18d   : > { %1103 = vrot.lane.b32.xlu0 %v5628_v31, %s7442_s26  ;;  %1487 = vrot.lane.b32.xlu2 %v5600_v3, %s7430_s29  ;;  %v982_v56 = vadd.f32 1.0, %v970_v49  ;;  %v971_v57 = vmul.f32 %v959_v53, %v959_v53  ;;  %v5749_v53 = vperm.slane %v686_v47, 1 }
 0x18e   : > { %1091 = vrot.lane.b32.xlu1 %v5616_v22, %s7442_s26  ;;  %5273 = vrcp.f32 %v981_v52  ;;  %v5653_v2 = vmul.f32 %v1016_v55, %v5591_v35  ;;  %v972_v11 = vmul.f32 %v960_v6, %v960_v6  ;;  %v5747_v52 = vperm.slane %v686_v47, 0 }
 0x18f   : > { %5275 = vrcp.f32 %v982_v56  ;;  %v983_v5 = vadd.f32 1.0, %v971_v57  ;;  %7515 = vst [vmem:[#allocation8_spill] sm:$0xff] %v5749_v53  ;;  %v685_v57 = vld [vmem:[%s7513_s5] sm:$0x3] }
 0x190   : > { %5277 = vpow2.f32 %v949_v32  ;;  %v984_v13 = vadd.f32 1.0, %v972_v11  ;;  %7514 = vst [vmem:[#allocation7_spill] sm:$0xff] %v5747_v52 }
 0x191   : > { %5279 = vpow2.f32 %v947_v63 }
 0x192   : > { %5281 = vrcp.f32 %v983_v5 }
 0x193   : > { %5283 = vrcp.f32 %v984_v13 }
 0x194   : > { %v5274_v7 = vpop.eup %5273 }
 0x195   : > { %1489 = vrot.lane.b32.xlu0 %v5616_v22, %s7430_s29  ;;  %1165 = vrot.lane.b32.xlu2 %v5628_v31, %s7432_s2  ;;  %v5276_v9 = vpop.eup %5275  ;;  %v1005_v8 = vmul.f32 2.0, %v5274_v7 }
 0x196   : > { %1155 = vrot.lane.b32.xlu1 %v5642_v50, %s7432_s2  ;;  %v5278_v35 = vpop.eup %5277  ;;  %v1006_v12 = vmul.f32 2.0, %v5276_v9 }
 0x197   : > { %v5280_v10 = vpop.eup %5279  ;;  %v962_v14 = vadd.f32 1.0, %v5278_v35  ;;  %v1017_v15 = vsub.f32 1.0, %v1005_v8  ;;  %v5777_v8 = vperm.slane %v685_v57, 0 }
 0x198   : > { %v961_v16 = vadd.f32 1.0, %v5280_v10  ;;  %v5282_v20 = vpop.eup %5281  ;;  %v1018_v21 = vsub.f32 1.0, %v1006_v12  ;;  %v5779_v10 = vperm.slane %v685_v57, 1  ;;  %v5159_v57 = vld [vmem:[%s7518_s6] sm:$0xff] }
 0x199   : > { %v974_v23 = vmul.f32 %v962_v14, %v962_v14  ;;  %v5668_v24 = vmul.f32 %v1017_v15, %v5595_v58  ;;  %v1007_v25 = vmul.f32 2.0, %v5282_v20  ;;  %v5284_v33 = vpop.eup %5283  ;;  %7516 = vst [vmem:[#allocation9_spill] sm:$0xff] %v5777_v8 }
 0x19a   : > { %v973_v26 = vmul.f32 %v961_v16, %v961_v16  ;;  %v5671_v17 = vmul.f32 %v1018_v21, %v5597_v1  ;;  %v1008_v34 = vmul.f32 2.0, %v5284_v33  ;;  %7517 = vst [vmem:[#allocation10_spill] sm:$0xff] %v5779_v10 }
 0x19b   : > { %v986_v27 = vadd.f32 1.0, %v974_v23  ;;  %v1019_v28 = vsub.f32 1.0, %v1007_v25 }
 0x19c   : > { %v985_v30 = vadd.f32 1.0, %v973_v26  ;;  %v1020_v1 = vsub.f32 1.0, %v1008_v34  ;;  %v5160_v34 = vld [vmem:[%s7518_s6 + $0x8] sm:$0xff] }
 0x19d   : > { %1167 = vrot.lane.b32.xlu0 %v5653_v2, %s7432_s2  ;;  %1501 = vrot.lane.b32.xlu2 %v5628_v31, %s7430_s29  ;;  %5285 = vrcp.f32 %v986_v27  ;;  %v5680_v58 = vmul.f32 %v1019_v28, %v5613_v18 }
 0x19e   : > { %1105 = vrot.lane.b32.xlu1 %v5653_v2, %s7442_s26  ;;  %5287 = vrcp.f32 %v985_v30  ;;  %v5689_v38 = vmul.f32 %v1020_v1, %v5625_v29 }
 0x1a3   : > { %v5286_v36 = vpop.eup %5285 }
 0x1a4   : > { %v5288_v37 = vpop.eup %5287  ;;  %v1010_v39 = vmul.f32 2.0, %v5286_v36 }
 0x1a5   : > { %1491 = vrot.lane.b32.xlu0 %v5642_v50, %s7430_s29  ;;  %1093 = vrot.lane.b32.xlu2 %v5642_v50, %s7442_s26  ;;  %v1009_v18 = vmul.f32 2.0, %v5288_v37 }
 0x1a6   : > { %1503 = vrot.lane.b32.xlu1 %v5653_v2, %s7430_s29  ;;  %v1022_v40 = vsub.f32 1.0, %v1010_v39 }
 0x1a7   : > { %v1021_v19 = vsub.f32 1.0, %v1009_v18 }
 0x1a8   : > { %v5698_v41 = vmul.f32 %v1022_v40, %v5637_v44 }
 0x1a9   : > { %v5701_v42 = vmul.f32 %v1021_v19, %v5639_v46  ;;  %v5735_v46 = vand.u32 127, %v1113_v45 }
 0x1ab   : > { %7512 = vst [vmem:[#allocation6_spill] sm:$0xff] %v5735_v46  ;;  %vm1175_vm3 = vcmp.lt.s32.totalorder %v5735_v46, 16  ;;  %vm1115_vm4 = vcmp.lt.s32.totalorder %v5735_v46, 17  ;;  %vm1511_vm5 = vcmp.lt.s32.totalorder %v5735_v46, 15  ;;  %vm1721_vm6 = vcmp.lt.s32.totalorder %v5735_v46, 1 }
 0x1ac   : > { %vm2087_vm7 = vcmp.lt.s32.totalorder %v5735_v46, 127  ;;  %vm2297_vm8 = vcmp.lt.s32.totalorder %v5735_v46, 113  ;;  %vm2507_vm9 = vcmp.lt.s32.totalorder %v5735_v46, 112  ;;  %vm2717_vm10 = vcmp.lt.s32.totalorder %v5735_v46, 111 }
 0x1ad   : > { %1095 = vrot.lane.b32.xlu0 %v5668_v24, %s7442_s26  ;;  %1157 = vrot.lane.b32.xlu2 %v5668_v24, %s7432_s2 }
 0x1ae   : > { %1169 = vrot.lane.b32.xlu1 %v5671_v17, %s7432_s2 }
 0x1b5   : > { %1159 = vrot.lane.b32.xlu0 %v5680_v58, %s7432_s2  ;;  %1107 = vrot.lane.b32.xlu2 %v5671_v17, %s7442_s26 }
 0x1b6   : > { %1493 = vrot.lane.b32.xlu1 %v5668_v24, %s7430_s29 }
 0x1bd   : > { %1109 = vrot.lane.b32.xlu0 %v5689_v38, %s7442_s26  ;;  %1505 = vrot.lane.b32.xlu2 %v5671_v17, %s7430_s29 }
 0x1be   : > { %1097 = vrot.lane.b32.xlu1 %v5680_v58, %s7442_s26 }
 0x1c5   : > { %1173 = vrot.lane.b32.xlu0 %v5698_v41, %s7432_s2  ;;  %1171 = vrot.lane.b32.xlu2 %v5689_v38, %s7432_s2 }
 0x1c6   : > { %1161 = vrot.lane.b32.xlu1 %v5701_v42, %s7432_s2  ;;  %s7436_s2 = smov 112  }
 0x1cd   : > { %1507 = vrot.lane.b32.xlu0 %v5689_v38, %s7430_s29  ;;  %1495 = vrot.lane.b32.xlu2 %v5680_v58, %s7430_s29 }
 0x1ce   : > { %1701 = vrot.lane.b32.xlu1 %v5642_v50, %s7428_s30 }
 0x1d5   : > { %1699 = vrot.lane.b32.xlu0 %v5616_v22, %s7428_s30  ;;  %1099 = vrot.lane.b32.xlu2 %v5701_v42, %s7442_s26 }
 0x1d6   : > { %1111 = vrot.lane.b32.xlu1 %v5698_v41, %s7442_s26  ;;  %s7560_s26 = smov 15  }
 0x1d7   : > { %v1152_v29 = vpop.permute.xlu2 %1151 }
 0x1dd   : > { %1709 = vrot.lane.b32.xlu0 %v5603_v4, %s7428_s30  ;;  %1697 = vrot.lane.b32.xlu2 %v5600_v3, %s7428_s30 }
 0x1de   : > { %1711 = vrot.lane.b32.xlu1 %v5628_v31, %s7428_s30 }
 0x1df   : > { %v1102_v43 = vpop.permute.xlu2 %1101 }
 0x1e5   : > { %1497 = vrot.lane.b32.xlu0 %v5701_v42, %s7430_s29  ;;  %1703 = vrot.lane.b32.xlu2 %v5668_v24, %s7428_s30 }
 0x1e6   : > { %1509 = vrot.lane.b32.xlu1 %v5698_v41, %s7430_s29  ;;  %s7562_s29 = smov 127  }
 0x1e7   : > { %v5733_v44 = vpop.permute.xlu2 %1487 }
 0x1ed   : > { %1715 = vrot.lane.b32.xlu0 %v5671_v17, %s7428_s30  ;;  %1713 = vrot.lane.b32.xlu2 %v5653_v2, %s7428_s30 }
 0x1ee   : > { %1705 = vrot.lane.b32.xlu1 %v5680_v58, %s7428_s30 }
 0x1ef   : > { %v1090_v48 = vpop.permute.xlu0 %1089  ;;  %v1166_v49 = vpop.permute.xlu2 %1165 }
 0x1f0   : > { %v1164_v51 = vpop.permute.xlu1 %1163  ;;  %v1116_v12 = vsel %vm1115_vm4, %v1090_v48, %v1102_v43  ;;  %v1122_v13 = vsel %vm1115_vm4, %v1102_v43, %v1090_v48 }
 0x1f1   : > { %v1176_v54 = vsel %vm1175_vm3, %v1152_v29, %v1164_v51  ;;  %v1182_v55 = vsel %vm1175_vm3, %v1164_v51, %v1152_v29  ;;  %v1133_v23 = vmul.f32 %v5777_v8, %v1122_v13  ;;  %v1134_v25 = vmul.f32 %v5779_v10, %v1116_v12 }
 0x1f2   : > { %v1193_v56 = vmul.f32 %v5747_v52, %v1182_v55  ;;  %v1194_v32 = vmul.f32 %v5749_v53, %v1176_v54 }
 0x1f3   : > { %v1145_v37 = vpack.c.bf16 %v1134_v25, %v1133_v23 }
 0x1f4   : > { %v1205_v35 = vpack.c.bf16 %v1194_v32, %v1193_v56 }
 0x1f5   : > { %1717 = vrot.lane.b32.xlu0 %v5689_v38, %s7428_s30  ;;  %2063 = vrot.lane.b32.xlu2 %v5600_v3, %s7438_s24  ;;  %v1264_v19 = vunpack.c.l.b16 %v1145_v37  ;;  %v1265_v29 = vunpack.c.h.b16 %v1145_v37 }
 0x1f6   : > { %2067 = vrot.lane.b32.xlu1 %v5642_v50, %s7438_s24  ;;  %v1218_v15 = vunpack.c.l.b16 %v1205_v35  ;;  %v1219_v20 = vunpack.c.h.b16 %v1205_v35 }
 0x1f7   : > { %v1154_v63 = vpop.permute.xlu0 %1153  ;;  %v5766_v0 = vpop.permute.xlu2 %1501 }
 0x1f8   : > { %v5769_v5 = vpop.permute.xlu1 %1499  ;;  %v1177_v6 = vsel %vm1175_vm3, %v1154_v63, %v1166_v49  ;;  %v1183_v7 = vsel %vm1175_vm3, %v1166_v49, %v1154_v63 }
 0x1f9   : > { %v1195_v9 = vmul.f32 %v5747_v52, %v1183_v7  ;;  %v1196_v11 = vmul.f32 %v5749_v53, %v1177_v6 }
 0x1fb   : > { %v1206_v14 = vpack.c.bf16 %v1196_v11, %v1195_v9 }
 0x1fd   : > { %2065 = vrot.lane.b32.xlu0 %v5616_v22, %s7438_s24  ;;  %2069 = vrot.lane.b32.xlu2 %v5668_v24, %s7438_s24  ;;  %v1220_v16 = vunpack.c.l.b16 %v1206_v14  ;;  %v1221_v21 = vunpack.c.h.b16 %v1206_v14 }
 0x1fe   : > { %2077 = vrot.lane.b32.xlu1 %v5628_v31, %s7438_s24 }
 0x1ff   : > { %v1104_v26 = vpop.permute.xlu0 %1103  ;;  %v1094_v27 = vpop.permute.xlu2 %1093  ;;  %v1222_v28 = vpack.c.b16 %v1220_v16, %v1218_v15  ;;  %v1223_v30 = vpack.c.b16 %v1221_v21, %v1219_v20 }
 0x200   : > { %v1092_v33 = vpop.permute.xlu1 %1091 }
 0x201   : > { %v1117_v1 = vsel %vm1115_vm4, %v1092_v33, %v1104_v26  ;;  %v1123_v36 = vsel %vm1115_vm4, %v1104_v26, %v1092_v33  ;;  %1236 = vmatpush.bf16.msrb.mxu0 %v1222_v28  ;;  %1250 = vmatpush.bf16.msrb.mxu1 %v1223_v30 }
 0x202   : > { %v1135_v39 = vmul.f32 %v5777_v8, %v1123_v36  ;;  %v1136_v18 = vmul.f32 %v5779_v10, %v1117_v1 }
 0x204   : > { %v1146_v40 = vpack.c.bf16 %v1136_v18, %v1135_v39  ;;  %4861 = vmatmul.msk.bf16.vlgmr.msrb.gmra.mxu0 %vm857_vm2, %v5160_v34  ;;  %4862 = vmatmul.msk.bf16.vlgmr.msrb.gmra.mxu1 %vm857_vm2, %v5160_v34 }
 0x205   : > { %2075 = vrot.lane.b32.xlu0 %v5603_v4, %s7438_s24  ;;  %1707 = vrot.lane.b32.xlu2 %v5701_v42, %s7428_s30 }
 0x206   : > { %v1266_v43 = vunpack.c.l.b16 %v1146_v40  ;;  %v1267_v45 = vunpack.c.h.b16 %v1146_v40  ;;  %1719 = vrot.lane.b32.xlu1 %v5698_v41, %s7428_s30  ;;  %s7563_s30 = smov 113  }
 0x207   : > { %v5810_v47 = vpop.permute.xlu0 %1489  ;;  %v1158_v48 = vpop.permute.xlu2 %1157 }
 0x208   : > { %v1156_v49 = vpop.permute.xlu1 %1155  ;;  %v1268_v51 = vpack.c.b16 %v1266_v43, %v1264_v19  ;;  %v1269_v54 = vpack.c.b16 %v1267_v45, %v1265_v29 }
 0x20a   : > { %1282 = vmatpush.bf16.msra.mxu0 %v1268_v51  ;;  %1296 = vmatpush.bf16.msra.mxu1 %v1269_v54 }
 0x20d   : > { %2081 = vrot.lane.b32.xlu0 %v5671_v17, %s7438_s24  ;;  %2079 = vrot.lane.b32.xlu2 %v5653_v2, %s7438_s24 }
 0x20e   : > { %2071 = vrot.lane.b32.xlu1 %v5680_v58, %s7438_s24 }
 0x20f   : > { %v1168_v55 = vpop.permute.xlu0 %1167  ;;  %v1108_v56 = vpop.permute.xlu2 %1107 }
 0x210   : > { %v1106_v32 = vpop.permute.xlu1 %1105  ;;  %v1178_v35 = vsel %vm1175_vm3, %v1156_v49, %v1168_v55  ;;  %v1184_v12 = vsel %vm1175_vm3, %v1168_v55, %v1156_v49 }
 0x211   : > { %v1118_v9 = vsel %vm1115_vm4, %v1094_v27, %v1106_v32  ;;  %v1124_v11 = vsel %vm1115_vm4, %v1106_v32, %v1094_v27  ;;  %v1197_v15 = vmul.f32 %v5747_v52, %v1184_v12  ;;  %v1198_v16 = vmul.f32 %v5749_v53, %v1178_v35  ;;  %v5168_v35 = vld [vmem:[%s7519_s8] sm:$0xff]  ;;  %v5169_v12 = vld [vmem:[%s7519_s8 + $0x8] sm:$0xff] }
 0x212   : > { %v1137_v13 = vmul.f32 %v5777_v8, %v1124_v11  ;;  %v1138_v14 = vmul.f32 %v5779_v10, %v1118_v9 }
 0x213   : > { %v1207_v1 = vpack.c.bf16 %v1198_v16, %v1197_v15  ;;  %v687_v15 = vld [vmem:[%s7513_s5 + $0x4] sm:$0x3] }
 0x214   : > { %4867 = vmatmul.msk.bf16.vlgmr.msra.gmra.mxu0 %vm857_vm2, %v5159_v57  ;;  %4868 = vmatmul.msk.bf16.vlgmr.msra.gmra.mxu1 %vm857_vm2, %v5159_v57  ;;  %v1147_v27 = vpack.c.bf16 %v1138_v14, %v1137_v13 }
 0x215   : > { %2083 = vrot.lane.b32.xlu0 %v5689_v38, %s7438_s24  ;;  %2273 = vrot.lane.b32.xlu2 %v5600_v3, %s7434_s1  ;;  %v1310_v45 = vunpack.c.l.b16 %v1207_v1 }
 0x216   : > { %2285 = vrot.lane.b32.xlu1 %v5603_v4, %s7434_s1  ;;  %v1356_v40 = vunpack.c.l.b16 %v1147_v27  ;;  %v1357_v29 = vunpack.c.h.b16 %v1147_v27 }
 0x217   : > { %v5829_v63 = vpop.permute.xlu0 %1491  ;;  %v5831_v6 = vpop.permute.xlu2 %1505 }
 0x218   : > { %v5833_v7 = vpop.permute.xlu1 %1503 }
 0x21d   : > { %2275 = vrot.lane.b32.xlu0 %v5616_v22, %s7434_s1  ;;  %2287 = vrot.lane.b32.xlu2 %v5628_v31, %s7434_s1 }
 0x21e   : > { %2279 = vrot.lane.b32.xlu1 %v5668_v24, %s7434_s1 }
 0x21f   : > { %v1096_v20 = vpop.permute.xlu0 %1095  ;;  %v1172_v21 = vpop.permute.xlu2 %1171 }
 0x220   : > { %v1170_v23 = vpop.permute.xlu1 %1169  ;;  %v1119_v25 = vsel %vm1115_vm4, %v1096_v20, %v1108_v56  ;;  %v1125_v26 = vsel %vm1115_vm4, %v1108_v56, %v1096_v20  ;;  %v1513_v20 = vsel %vm1511_vm5, %v5810_v47, %v5766_v0 }
 0x221   : > { %v1179_v28 = vsel %vm1175_vm3, %v1158_v48, %v1170_v23  ;;  %v1185_v30 = vsel %vm1175_vm3, %v1170_v23, %v1158_v48  ;;  %v1139_v33 = vmul.f32 %v5777_v8, %v1125_v26  ;;  %v1140_v34 = vmul.f32 %v5779_v10, %v1119_v25 }
 0x222   : > { %v1199_v36 = vmul.f32 %v5747_v52, %v1185_v30  ;;  %v1200_v37 = vmul.f32 %v5749_v53, %v1179_v28  ;;  %v1311_v48 = vunpack.c.h.b16 %v1207_v1  ;;  %v1519_v23 = vsel %vm1511_vm5, %v5766_v0, %v5810_v47 }
 0x223   : > { %v1148_v39 = vpack.c.bf16 %v1140_v34, %v1139_v33  ;;  %v5907_v25 = vperm.slane %v687_v15, 0  ;;  %v5909_v26 = vperm.slane %v687_v15, 1  ;;  %v1512_v30 = vsel %vm1511_vm5, %v5733_v44, %v5769_v5 }
 0x224   : > { %v1208_v18 = vpack.c.bf16 %v1200_v37, %v1199_v36  ;;  %v1518_v0 = vsel %vm1511_vm5, %v5769_v5, %v5733_v44 }
 0x225   : > { %2277 = vrot.lane.b32.xlu0 %v5642_v50, %s7434_s1  ;;  %2281 = vrot.lane.b32.xlu2 %v5680_v58, %s7434_s1  ;;  %v1358_v19 = vunpack.c.l.b16 %v1148_v39  ;;  %v1359_v43 = vunpack.c.h.b16 %v1148_v39  ;;  %7520 = vst [vmem:[#allocation11_spill] sm:$0xff] %v5907_v25  ;;  %v1531_v47 = vmul.f32 %v5907_v25, %v1519_v23  ;;  %v1532_v33 = vmul.f32 %v5909_v26, %v1513_v20 }
 0x226   : > { %v1312_v49 = vunpack.c.l.b16 %v1208_v18  ;;  %v1313_v51 = vunpack.c.h.b16 %v1208_v18  ;;  %2289 = vrot.lane.b32.xlu1 %v5653_v2, %s7434_s1  ;;  %7521 = vst [vmem:[#allocation12_spill] sm:$0xff] %v5909_v26  ;;  %v1529_v1 = vmul.f32 %v5907_v25, %v1518_v0  ;;  %v1530_v44 = vmul.f32 %v5909_v26, %v1512_v30 }
 0x227   : > { %v1160_v54 = vpop.permute.xlu0 %1159  ;;  %v5871_v55 = vpop.permute.xlu2 %1495  ;;  %v1360_v56 = vpack.c.b16 %v1358_v19, %v1356_v40  ;;  %v1361_v32 = vpack.c.b16 %v1359_v43, %v1357_v29  ;;  %v1542_v39 = vpack.c.bf16 %v1532_v33, %v1531_v47  ;;  %v5178_v33 = vld [vmem:[%s7522_s10 + $0x8] sm:$0xff] }
 0x228   : > { %v5873_v57 = vpop.permute.xlu1 %1493  ;;  %v1314_v9 = vpack.c.b16 %v1312_v49, %v1310_v45  ;;  %v1315_v11 = vpack.c.b16 %v1313_v51, %v1311_v48  ;;  %v1180_v27 = vsel %vm1175_vm3, %v1160_v54, %v1172_v21  ;;  %v1186_v28 = vsel %vm1175_vm3, %v1172_v21, %v1160_v54 }
 0x229   : > { %1374 = vmatpush.bf16.msrb.mxu2 %v1360_v56  ;;  %1388 = vmatpush.bf16.msrb.mxu3 %v1361_v32  ;;  %v1201_v21 = vmul.f32 %v5747_v52, %v1186_v28  ;;  %v1202_v34 = vmul.f32 %v5749_v53, %v1180_v27  ;;  %v1541_v45 = vpack.c.bf16 %v1530_v44, %v1529_v1  ;;  %v1556_v49 = vunpack.c.l.b16 %v1542_v39 }
 0x22a   : > { %1328 = vmatpush.bf16.msrb.mxu0 %v1314_v9  ;;  %1342 = vmatpush.bf16.msrb.mxu1 %v1315_v11  ;;  %v1557_v51 = vunpack.c.h.b16 %v1542_v39  ;;  %v1515_v23 = vsel %vm1511_vm5, %v5873_v57, %v5831_v6 }
 0x22b   : > { %v1209_v19 = vpack.c.bf16 %v1202_v34, %v1201_v21  ;;  %v1554_v11 = vunpack.c.l.b16 %v1541_v45  ;;  %v1514_v21 = vsel %vm1511_vm5, %v5829_v63, %v5833_v7  ;;  %v1536_v34 = vmul.f32 %v5909_v26, %v1515_v23 }
 0x22c   : > { %4879 = vmatmul.msk.bf16.vlgmr.msrb.gmra.mxu2 %vm857_vm2, %v5168_v35  ;;  %4880 = vmatmul.msk.bf16.vlgmr.msrb.gmra.mxu3 %vm857_vm2, %v5168_v35  ;;  %v1555_v35 = vunpack.c.h.b16 %v1541_v45 }
 0x22d   : > { %2293 = vrot.lane.b32.xlu0 %v5689_v38, %s7434_s1  ;;  %2291 = vrot.lane.b32.xlu2 %v5671_v17, %s7434_s1  ;;  %v1402_v54 = vunpack.c.l.b16 %v1209_v19  ;;  %v1403_v56 = vunpack.c.h.b16 %v1209_v19  ;;  %v1558_v0 = vpack.c.b16 %v1556_v49, %v1554_v11  ;;  %v688_v49 = vld [vmem:[%s7513_s5 + $0x6] sm:$0x3] }
 0x22e   : > { %2487 = vrot.lane.b32.xlu1 %v5642_v50, %s7436_s2  ;;  %4873 = vmatmul.msk.bf16.vlgmr.msrb.gmra.mxu0 %vm857_vm2, %v5169_v12  ;;  %v1559_v47 = vpack.c.b16 %v1557_v51, %v1555_v35  ;;  %v6008_v11 = vperm.slane %v688_v49, 0 }
 0x22f   : > { %v5889_v13 = vpop.permute.xlu0 %1109  ;;  %v5891_v14 = vpop.permute.xlu2 %1099  ;;  %4874 = vmatmul.msk.bf16.vlgmr.msrb.gmra.mxu1 %vm857_vm2, %v5169_v12  ;;  %v1521_v12 = vsel %vm1511_vm5, %v5831_v6, %v5873_v57  ;;  %v1520_v6 = vsel %vm1511_vm5, %v5833_v7, %v5829_v63  ;;  %v1534_v63 = vmul.f32 %v5909_v26, %v1514_v21 }
 0x230   : > { %v1098_v16 = vpop.permute.xlu1 %1097  ;;  %v1535_v57 = vmul.f32 %v5907_v25, %v1521_v12  ;;  %7523 = vst [vmem:[#allocation13_spill] sm:$0xff] %v6008_v11 }
 0x231   : > { %v1120_v1 = vsel %vm1115_vm4, %v1098_v16, %v5889_v13  ;;  %v1126_v44 = vsel %vm1115_vm4, %v5889_v13, %v1098_v16 }
 0x232   : > { %v1141_v7 = vmul.f32 %v5777_v8, %v1126_v44  ;;  %v1544_v13 = vpack.c.bf16 %v1536_v34, %v1535_v57 }
 0x234   : > { %v1606_v51 = vunpack.c.l.b16 %v1544_v13 }
 0x235   : > { %2485 = vrot.lane.b32.xlu0 %v5616_v22, %s7436_s2  ;;  %2073 = vrot.lane.b32.xlu2 %v5701_v42, %s7438_s24 }
 0x236   : > { %2085 = vrot.lane.b32.xlu1 %v5698_v41, %s7438_s24  ;;  %s7565_s24 = smov 111  }
 0x237   : > { %v1174_v5 = vpop.permute.xlu0 %1173  ;;  %v5935_v36 = vpop.permute.xlu2 %1697 }
 0x238   : > { %v1162_v37 = vpop.permute.xlu1 %1161 }
 0x239   : > { %v1181_v18 = vsel %vm1175_vm3, %v1162_v37, %v1174_v5  ;;  %v1187_v40 = vsel %vm1175_vm3, %v1174_v5, %v1162_v37  ;;  %v1533_v5 = vmul.f32 %v5907_v25, %v1520_v6  ;;  %v1142_v37 = vmul.f32 %v5779_v10, %v1120_v1 }
 0x23a   : > { %v1203_v29 = vmul.f32 %v5747_v52, %v1187_v40  ;;  %v1204_v43 = vmul.f32 %v5749_v53, %v1181_v18 }
 0x23b   : > { %v1543_v40 = vpack.c.bf16 %v1534_v63, %v1533_v5 }
 0x23c   : > { %v1210_v48 = vpack.c.bf16 %v1204_v43, %v1203_v29  ;;  %v1149_v43 = vpack.c.bf16 %v1142_v37, %v1141_v7 }
 0x23d   : > { %2495 = vrot.lane.b32.xlu0 %v5603_v4, %s7436_s2  ;;  %2483 = vrot.lane.b32.xlu2 %v5600_v3, %s7436_s2 }
 0x23e   : > { %v1404_v32 = vunpack.c.l.b16 %v1210_v48  ;;  %v1405_v9 = vunpack.c.h.b16 %v1210_v48  ;;  %2497 = vrot.lane.b32.xlu1 %v5628_v31, %s7436_s2  ;;  %v1448_v35 = vunpack.c.l.b16 %v1149_v43 }
 0x23f   : > { %v5953_v15 = vpop.permute.xlu0 %1507  ;;  %v5955_v20 = vpop.permute.xlu2 %1703 }
 0x240   : > { %v5961_v27 = vpop.permute.xlu1 %1701  ;;  %v1406_v28 = vpack.c.b16 %v1404_v32, %v1402_v54  ;;  %v1407_v30 = vpack.c.b16 %v1405_v9, %v1403_v56  ;;  %v1607_v54 = vunpack.c.h.b16 %v1544_v13  ;;  %v1604_v32 = vunpack.c.l.b16 %v1543_v40  ;;  %v5177_v13 = vld [vmem:[%s7522_s10] sm:$0xff] }
 0x241   : > { %v1605_v9 = vunpack.c.h.b16 %v1543_v40 }
 0x242   : > { %1420 = vmatpush.bf16.msra.mxu0 %v1406_v28  ;;  %1434 = vmatpush.bf16.msra.mxu1 %v1407_v30  ;;  %v1516_v28 = vsel %vm1511_vm5, %v5871_v55, %v5953_v15  ;;  %v6018_v30 = vperm.slane %v688_v49, 1 }
 0x243   : > { %v1609_v21 = vpack.c.b16 %v1607_v54, %v1605_v9 }
 0x244   : > { %7524 = vst [vmem:[#allocation14_spill] sm:$0xff] %v6018_v30 }
 0x245   : > { %4885 = vmatmul.msk.bf16.vlgmr.msra.gmra.mxu0 %vm857_vm2, %v5178_v33  ;;  %4886 = vmatmul.msk.bf16.vlgmr.msra.gmra.mxu1 %vm857_vm2, %v5178_v33  ;;  %v1608_v33 = vpack.c.b16 %v1606_v51, %v1604_v32 }
 0x246   : > { %1572 = vmatpush.bf16.msrb.mxu0 %v1558_v0  ;;  %1586 = vmatpush.bf16.msrb.mxu1 %v1559_v47 }
 0x247   : > { %2295 = vrot.lane.b32.xlu1 %v5698_v41, %s7434_s1  ;;  %2283 = vrot.lane.b32.xlu0 %v5701_v42, %s7434_s1  ;;  %v1700_v16 = vpop.permute.xlu0 %1699  ;;  %v5994_v39 = vpop.permute.xlu2 %1713  ;;  %s7558_s1 = smov 17  }
 0x248   : > { %2489 = vrot.lane.b32.xlu2 %v5668_v24, %s7436_s2  ;;  %v1112_v18 = vpop.permute.xlu1 %1111 }
 0x249   : > { %v1121_v19 = vsel %vm1115_vm4, %v5891_v14, %v1112_v18  ;;  %v1127_v29 = vsel %vm1115_vm4, %v1112_v18, %v5891_v14  ;;  %v1449_v14 = vunpack.c.h.b16 %v1149_v43 }
 0x24a   : > { %v1143_v45 = vmul.f32 %v5777_v8, %v1127_v29  ;;  %v1144_v48 = vmul.f32 %v5779_v10, %v1121_v19 }
 0x24c   : > { %v1150_v56 = vpack.c.bf16 %v1144_v48, %v1143_v45  ;;  %v1538_v45 = vmul.f32 %v5909_v26, %v1516_v28  ;;  %v1730_v28 = vsel %vm1721_vm6, %v5994_v39, %v5961_v27 }
 0x24e   : > { %v1450_v12 = vunpack.c.l.b16 %v1150_v56  ;;  %v1451_v23 = vunpack.c.h.b16 %v1150_v56 }
 0x24f   : > { %2491 = vrot.lane.b32.xlu1 %v5680_v58, %s7436_s2  ;;  %2501 = vrot.lane.b32.xlu0 %v5671_v17, %s7436_s2  ;;  %v1710_v0 = vpop.permute.xlu0 %1709  ;;  %v6022_v47 = vpop.permute.xlu2 %2063 }
 0x250   : > { %2499 = vrot.lane.b32.xlu2 %v5653_v2, %s7436_s2  ;;  %v1712_v6 = vpop.permute.xlu1 %1711  ;;  %v1722_v57 = vsel %vm1721_vm6, %v5935_v36, %v1710_v0  ;;  %v1728_v34 = vsel %vm1721_vm6, %v1710_v0, %v5935_v36  ;;  %v1452_v1 = vpack.c.b16 %v1450_v12, %v1448_v35  ;;  %v1453_v44 = vpack.c.b16 %v1451_v23, %v1449_v14 }
 0x251   : > { %v1723_v5 = vsel %vm1721_vm6, %v1700_v16, %v1712_v6  ;;  %v1729_v63 = vsel %vm1721_vm6, %v1712_v6, %v1700_v16  ;;  %v1739_v7 = vmul.f32 %v6008_v11, %v1728_v34  ;;  %v1740_v37 = vmul.f32 %v6018_v30, %v1722_v57  ;;  %v5161_v16 = vld [vmem:[%s7518_s6 + $0x10] sm:$0xff] }
 0x252   : > { %v1522_v36 = vsel %vm1511_vm5, %v5953_v15, %v5871_v55  ;;  %v1741_v18 = vmul.f32 %v6008_v11, %v1729_v63  ;;  %v1742_v40 = vmul.f32 %v6018_v30, %v1723_v5  ;;  %1466 = vmatpush.bf16.msra.mxu2 %v1452_v1  ;;  %1480 = vmatpush.bf16.msra.mxu3 %v1453_v44 }
 0x253   : > { %v1751_v19 = vpack.c.bf16 %v1740_v37, %v1739_v7  ;;  %v1537_v43 = vmul.f32 %v5907_v25, %v1522_v36  ;;  %v1724_v14 = vsel %vm1721_vm6, %v5961_v27, %v5994_v39  ;;  %v1743_v6 = vmul.f32 %v6008_v11, %v1730_v28 }
 0x254   : > { %v1752_v29 = vpack.c.bf16 %v1742_v40, %v1741_v18  ;;  %v1744_v57 = vmul.f32 %v6018_v30, %v1724_v14  ;;  %v1908_v63 = vpack.c.bf16 %v5628_v31, %v5616_v22 }
 0x255   : > { %v1764_v48 = vunpack.c.l.b16 %v1751_v19  ;;  %v1765_v55 = vunpack.c.h.b16 %v1751_v19  ;;  %4891 = vmatmul.msk.bf16.vlgmr.msra.gmra.mxu2 %vm857_vm2, %v5177_v13  ;;  %4892 = vmatmul.msk.bf16.vlgmr.msra.gmra.mxu3 %vm857_vm2, %v5177_v13  ;;  %v1545_v35 = vpack.c.bf16 %v1538_v45, %v1537_v43 }
 0x256   : > { %1622 = vmatpush.bf16.msrb.mxu2 %v1608_v33  ;;  %1636 = vmatpush.bf16.msrb.mxu3 %v1609_v21  ;;  %v1766_v15 = vunpack.c.l.b16 %v1752_v29  ;;  %v1767_v49 = vunpack.c.h.b16 %v1752_v29  ;;  %v1753_v40 = vpack.c.bf16 %v1744_v57, %v1743_v6  ;;  %v1922_v43 = vunpack.c.l.b16 %v1908_v63  ;;  %v5162_v6 = vld [vmem:[%s7518_s6 + $0x18] sm:$0xff] }
 0x257   : > { %4897 = vmatmul.msk.bf16.vlgmr.msrb.gmra.mxu0 %vm857_vm2, %v5161_v16  ;;  %4898 = vmatmul.msk.bf16.vlgmr.msrb.gmra.mxu1 %vm857_vm2, %v5161_v16  ;;  %v1498_v51 = vpop.permute.xlu0 %1497  ;;  %v6058_v54 = vpop.permute.xlu2 %2069  ;;  %v1654_v34 = vunpack.c.l.b16 %v1545_v35  ;;  %v1655_v1 = vunpack.c.h.b16 %v1545_v35  ;;  %v1923_v45 = vunpack.c.h.b16 %v1908_v63 }
 0x258   : > { %2705 = vrot.lane.b32.xlu1 %v5603_v4, %s7440_s25  ;;  %2503 = vrot.lane.b32.xlu0 %v5689_v38, %s7436_s2  ;;  %v1510_v56 = vpop.permute.xlu1 %1509  ;;  %v1768_v32 = vpack.c.b16 %v1766_v15, %v1764_v48  ;;  %v1769_v9 = vpack.c.b16 %v1767_v49, %v1765_v55  ;;  %v1814_v48 = vunpack.c.l.b16 %v1753_v40  ;;  %v1815_v55 = vunpack.c.h.b16 %v1753_v40 }
 0x259   : > { %2693 = vrot.lane.b32.xlu2 %v5600_v3, %s7440_s25  ;;  %v1517_v12 = vsel %vm1511_vm5, %v1498_v51, %v1510_v56  ;;  %v1523_v23 = vsel %vm1511_vm5, %v1510_v56, %v1498_v51  ;;  %v1910_v40 = vpack.c.bf16 %v5671_v17, %v5668_v24 }
 0x25a   : > { %v1539_v0 = vmul.f32 %v5907_v25, %v1523_v23  ;;  %v1540_v33 = vmul.f32 %v5909_v26, %v1517_v12  ;;  %1782 = vmatpush.bf16.msra.mxu2 %v1768_v32  ;;  %1796 = vmatpush.bf16.msra.mxu3 %v1769_v9  ;;  %v1912_v23 = vpack.c.bf16 %v5698_v41, %v5701_v42 }
 0x25c   : > { %v1546_v21 = vpack.c.bf16 %v1540_v33, %v1539_v0  ;;  %v1911_v33 = vpack.c.bf16 %v5689_v38, %v5680_v58  ;;  %v2022_v57 = vunpack.c.l.b16 %v1912_v23 }
 0x25e   : > { %v1656_v44 = vunpack.c.l.b16 %v1546_v21  ;;  %v1657_v5 = vunpack.c.h.b16 %v1546_v21 }
 0x25f   : > { %v1716_v27 = vpop.permute.xlu0 %1715  ;;  %v6082_v39 = vpop.permute.xlu2 %1707 }
 0x260   : > { %2699 = vrot.lane.b32.xlu1 %v5668_v24, %s7440_s25  ;;  %2695 = vrot.lane.b32.xlu0 %v5616_v22, %s7440_s25  ;;  %v1706_v7 = vpop.permute.xlu1 %1705  ;;  %v1725_v37 = vsel %vm1721_vm6, %v5955_v20, %v1716_v27  ;;  %v1731_v13 = vsel %vm1721_vm6, %v1716_v27, %v5955_v20  ;;  %v1658_v36 = vpack.c.b16 %v1656_v44, %v1654_v34  ;;  %v5170_v22 = vld [vmem:[%s7519_s8 + $0x10] sm:$0xff]  ;;  %v2023_v34 = vunpack.c.h.b16 %v1912_v23 }
 0x261   : > { %2707 = vrot.lane.b32.xlu2 %v5628_v31, %s7440_s25  ;;  %v1659_v18 = vpack.c.b16 %v1657_v5, %v1655_v1  ;;  %v1745_v16 = vmul.f32 %v6008_v11, %v1731_v13  ;;  %v1746_v19 = vmul.f32 %v6018_v30, %v1725_v37  ;;  %v5179_v31 = vld [vmem:[%s7522_s10 + $0x10] sm:$0xff]  ;;  %v1907_v20 = vpack.c.bf16 %v5603_v4, %v5600_v3 }
 0x262   : > { %1672 = vmatpush.bf16.msra.mxu0 %v1658_v36  ;;  %v2020_v5 = vunpack.c.l.b16 %v1911_v33  ;;  %v2021_v27 = vunpack.c.h.b16 %v1911_v33  ;;  %v6144_v13 = vpack.c.bf16 %v5653_v2, %v5642_v50  ;;  %v1973_v33 = vunpack.c.h.b16 %v1910_v40 }
 0x263   : > { %1686 = vmatpush.bf16.msra.mxu1 %v1659_v18  ;;  %v1754_v29 = vpack.c.bf16 %v1746_v19, %v1745_v16  ;;  %v1920_v51 = vunpack.c.l.b16 %v1907_v20  ;;  %v1921_v9 = vunpack.c.h.b16 %v1907_v20 }
 0x264   : > { %v2024_v63 = vpack.c.b16 %v2022_v57, %v2020_v5  ;;  %v2025_v37 = vpack.c.b16 %v2023_v34, %v2021_v27 }
 0x265   : > { %v1816_v15 = vunpack.c.l.b16 %v1754_v29  ;;  %v1817_v49 = vunpack.c.h.b16 %v1754_v29  ;;  %4903 = vmatmul.msk.bf16.vlgmr.msrb.gmra.mxu2 %vm857_vm2, %v5170_v22  ;;  %4904 = vmatmul.msk.bf16.vlgmr.msrb.gmra.mxu3 %vm857_vm2, %v5170_v22  ;;  %v1924_v14 = vpack.c.b16 %v1922_v43, %v1920_v51  ;;  %v1925_v12 = vpack.c.b16 %v1923_v45, %v1921_v9  ;;  %v2936_v9 = vld [vmem:[%s7528_s11 + $0x8] sm:$0xff] }
 0x267   : > { %4909 = vmatmul.msk.bf16.vlgmr.msra.gmra.mxu0 %vm857_vm2, %v5179_v31  ;;  %4910 = vmatmul.msk.bf16.vlgmr.msra.gmra.mxu1 %vm857_vm2, %v5179_v31  ;;  %v1718_v3 = vpop.permute.xlu0 %1717  ;;  %v2080_v4 = vpop.permute.xlu2 %2079  ;;  %v1818_v56 = vpack.c.b16 %v1816_v15, %v1814_v48  ;;  %v1819_v32 = vpack.c.b16 %v1817_v49, %v1815_v55  ;;  %v1972_v49 = vunpack.c.l.b16 %v1910_v40 }
 0x268   : > { %2505 = vrot.lane.b32.xlu1 %v5698_v41, %s7436_s2  ;;  %2697 = vrot.lane.b32.xlu0 %v5642_v50, %s7440_s25  ;;  %v2068_v35 = vpop.permute.xlu1 %2067  ;;  %v1726_v1 = vsel %vm1721_vm6, %v1706_v7, %v1718_v3  ;;  %v1732_v44 = vsel %vm1721_vm6, %v1718_v3, %v1706_v7 }
 0x269   : > { %2493 = vrot.lane.b32.xlu2 %v5701_v42, %s7436_s2  ;;  %1832 = vmatpush.bf16.msrb.mxu0 %v1818_v56  ;;  %v1747_v7 = vmul.f32 %v6008_v11, %v1732_v44  ;;  %v1748_v36 = vmul.f32 %v6018_v30, %v1726_v1  ;;  %v2090_v19 = vsel %vm2087_vm7, %v2068_v35, %v2080_v4  ;;  %s7564_s2 = smov 112  }
 0x26a   : > { %1846 = vmatpush.bf16.msrb.mxu1 %v1819_v32  ;;  %v2096_v50 = vsel %vm2087_vm7, %v2080_v4, %v2068_v35  ;;  %v2903_v32 = vld [vmem:[%s7527_s7] sm:$0xff]  ;;  %v1970_v35 = vunpack.c.l.b16 %v6144_v13 }
 0x26b   : > { %v1755_v55 = vpack.c.bf16 %v1748_v36, %v1747_v7 }
 0x26c   : > { %v1974_v1 = vpack.c.b16 %v1972_v49, %v1970_v35  ;;  %v690_v49 = vld [vmem:[%s7513_s5 + $0xc] sm:$0x3] }
 0x26d   : > { %1938 = vmatpush.bf16.msra.mxu0 %v1924_v14  ;;  %v1864_v14 = vunpack.c.l.b16 %v1755_v55 }
 0x26e   : > { %1952 = vmatpush.bf16.msra.mxu1 %v1925_v12 }
 0x26f   : > { %v2066_v28 = vpop.permute.xlu0 %2065  ;;  %v6120_v0 = vpop.permute.xlu2 %2273 }
 0x270   : > { %2709 = vrot.lane.b32.xlu1 %v5653_v2, %s7440_s25  ;;  %2703 = vrot.lane.b32.xlu0 %v5701_v42, %s7440_s25  ;;  %v2078_v21 = vpop.permute.xlu1 %2077  ;;  %v5171_v42 = vld [vmem:[%s7519_s8 + $0x18] sm:$0xff] }
 0x271   : > { %2701 = vrot.lane.b32.xlu2 %v5680_v58, %s7440_s25  ;;  %v689_v58 = vld [vmem:[%s7513_s5 + $0xa] sm:$0x3]  ;;  %v2089_v2 = vsel %vm2087_vm7, %v2066_v28, %v2078_v21  ;;  %v2095_v20 = vsel %vm2087_vm7, %v2078_v21, %v2066_v28  ;;  %v2935_v28 = vld [vmem:[%s7528_s11] sm:$0xff]  ;;  %v1865_v21 = vunpack.c.h.b16 %v1755_v55 }
 0x272   : > { %v6148_v18 = vperm.slane %v689_v58, 0  ;;  %v6154_v16 = vperm.slane %v689_v58, 1  ;;  %v2919_v55 = vld [vmem:[%s7529_s9] sm:$0xff] }
 0x274   : > { %7525 = vst [vmem:[#allocation15_spill] sm:$0xff] %v6148_v18  ;;  %v2110_v51 = vmul.f32 %v6154_v16, %v2096_v50  ;;  %v2107_v3 = vmul.f32 %v6148_v18, %v2089_v2  ;;  %v2108_v4 = vmul.f32 %v6154_v16, %v2095_v20  ;;  %v5180_v50 = vld [vmem:[%s7522_s10 + $0x18] sm:$0xff] }
 0x275   : > { %4915 = vmatmul.msk.bf16.vlgmr.msra.gmra.mxu2 %vm857_vm2, %v5162_v6  ;;  %4916 = vmatmul.msk.bf16.vlgmr.msra.gmra.mxu3 %vm857_vm2, %v5162_v6  ;;  %7526 = vst [vmem:[#allocation16_spill] sm:$0xff] %v6154_v16 }
 0x276   : > { %v2118_v57 = vpack.c.bf16 %v2108_v4, %v2107_v3 }
 0x277   : > { %4921 = vmatmul.msk.bf16.vlgmr.msrb.gmra.mxu0 %vm857_vm2, %v5171_v42  ;;  %4922 = vmatmul.msk.bf16.vlgmr.msrb.gmra.mxu1 %vm857_vm2, %v5171_v42  ;;  %v2076_v22 = vpop.permute.xlu0 %2075  ;;  %v6162_v31 = vpop.permute.xlu2 %2287 }
 0x278   : > { %2038 = vmatpush.bf16.msrb.mxu0 %v2024_v63  ;;  %2052 = vmatpush.bf16.msrb.mxu1 %v2025_v37  ;;  %v1720_v24 = vpop.permute.xlu1 %1719  ;;  %v2088_v29 = vsel %vm2087_vm7, %v6022_v47, %v2076_v22  ;;  %v2094_v43 = vsel %vm2087_vm7, %v2076_v22, %v6022_v47  ;;  %v1971_v63 = vunpack.c.h.b16 %v6144_v13  ;;  %v5163_v13 = vld [vmem:[%s7518_s6 + $0x20] sm:$0xff]  ;;  %v2132_v22 = vunpack.c.l.b16 %v2118_v57 }
 0x279   : > { %2715 = vrot.lane.b32.xlu1 %v5698_v41, %s7440_s25  ;;  %2713 = vrot.lane.b32.xlu0 %v5689_v38, %s7440_s25  ;;  %v1727_v45 = vsel %vm1721_vm6, %v6082_v39, %v1720_v24  ;;  %v1733_v38 = vsel %vm1721_vm6, %v1720_v24, %v6082_v39  ;;  %v2105_v41 = vmul.f32 %v6148_v18, %v2088_v29 }
 0x27a   : > { %2711 = vrot.lane.b32.xlu2 %v5671_v17, %s7440_s25  ;;  %v2106_v48 = vmul.f32 %v6154_v16, %v2094_v43  ;;  %v1749_v15 = vmul.f32 %v6008_v11, %v1733_v38  ;;  %v1750_v47 = vmul.f32 %v6018_v30, %v1727_v45  ;;  %v2109_v17 = vmul.f32 %v6148_v18, %v2090_v19  ;;  %s7561_s25 = smov 1  }
 0x27b   : > { %v2133_v45 = vunpack.c.h.b16 %v2118_v57 }
 0x27c   : > { %v1756_v56 = vpack.c.bf16 %v1750_v47, %v1749_v15  ;;  %v2117_v39 = vpack.c.bf16 %v2106_v48, %v2105_v41  ;;  %v2119_v6 = vpack.c.bf16 %v2110_v51, %v2109_v17  ;;  %v2920_v48 = vld [vmem:[%s7529_s9 + $0x8] sm:$0xff] }
 0x27d   : > { %v2904_v47 = vld [vmem:[%s7527_s7 + $0x8] sm:$0xff] }
 0x27e   : > { %v1866_v12 = vunpack.c.l.b16 %v1756_v56  ;;  %v1867_v23 = vunpack.c.h.b16 %v1756_v56  ;;  %v2130_v37 = vunpack.c.l.b16 %v2117_v39  ;;  %v2131_v20 = vunpack.c.h.b16 %v2117_v39 }
 0x27f   : > { %v2082_v34 = vpop.permute.xlu0 %2081  ;;  %v6202_v42 = vpop.permute.xlu2 %2281  ;;  %v2180_v29 = vunpack.c.l.b16 %v2119_v6  ;;  %v2181_v43 = vunpack.c.h.b16 %v2119_v6  ;;  %v3027_v6 = vld [vmem:[%s7532_s13] sm:$0xff] }
 0x280   : > { %v6204_v44 = vpop.permute.xlu1 %2071  ;;  %v2091_v58 = vsel %vm2087_vm7, %v6058_v54, %v2082_v34  ;;  %v2097_v5 = vsel %vm2087_vm7, %v2082_v34, %v6058_v54  ;;  %v1868_v27 = vpack.c.b16 %v1866_v12, %v1864_v14  ;;  %v1869_v19 = vpack.c.b16 %v1867_v23, %v1865_v21  ;;  %v3028_v21 = vld [vmem:[%s7532_s13 + $0x8] sm:$0xff] }
 0x281   : > { %2907 = vperm.xlu1 %5223, %v2903_v32   ;;  %2944 = vperm.xlu0 %5222, %v2936_v9   ;;  %v2111_v7 = vmul.f32 %v6148_v18, %v2091_v58  ;;  %v2112_v36 = vmul.f32 %v6154_v16, %v2097_v5  ;;  %v6215_v40 = vpop.f32.mrf.mxu0  ;;  %v6220_v2 = vpop.f32.mrf.mxu1  ;;  %v1975_v54 = vpack.c.b16 %v1973_v33, %v1971_v63  ;;  %v6244_v32 = vperm.slane %v690_v49, 0 }
 0x282   : > { %2939 = vperm.xlu2 %5224, %v2935_v28   ;;  %1882 = vmatpush.bf16.msrb.mxu2 %v1868_v27  ;;  %v2134_v15 = vpack.c.b16 %v2132_v22, %v2130_v37  ;;  %v2135_v17 = vpack.c.b16 %v2133_v45, %v2131_v20  ;;  %v6246_v9 = vperm.slane %v690_v49, 1 }
 0x283   : > { %v2120_v24 = vpack.c.bf16 %v2112_v36, %v2111_v7  ;;  %1896 = vmatpush.bf16.msrb.mxu3 %v1869_v19  ;;  %7530 = vst [vmem:[#allocation17_spill] sm:$0xff] %v6244_v32  ;;  %v5172_v7 = vld [vmem:[%s7519_s8 + $0x20] sm:$0xff] }
 0x284   : > { %7531 = vst [vmem:[#allocation18_spill] sm:$0xff] %v6246_v9 }
 0x285   : > { %v2182_v38 = vunpack.c.l.b16 %v2120_v24  ;;  %v2183_v41 = vunpack.c.h.b16 %v2120_v24  ;;  %4927 = vmatmul.msk.bf16.vlgmr.msrb.gmra.mxu2 %vm857_vm2, %v5180_v50 }
 0x286   : > { %1988 = vmatpush.bf16.msra.mxu2 %v1974_v1  ;;  %4928 = vmatmul.msk.bf16.vlgmr.msrb.gmra.mxu3 %vm857_vm2, %v5180_v50  ;;  %v5181_v50 = vld [vmem:[%s7522_s10 + $0x20] sm:$0xff] }
 0x287   : > { %2002 = vmatpush.bf16.msra.mxu3 %v1975_v54  ;;  %4933 = vmatmul.msk.bf16.vlgmr.msra.gmra.mxu0 %vm857_vm2, %v5163_v13  ;;  %v6242_v51 = vpop.permute.xlu0 %2083  ;;  %v2292_v3 = vpop.permute.xlu2 %2291  ;;  %v2184_v4 = vpack.c.b16 %v2182_v38, %v2180_v29  ;;  %v2185_v56 = vpack.c.b16 %v2183_v41, %v2181_v43 }
 0x288   : > { %4934 = vmatmul.msk.bf16.vlgmr.msra.gmra.mxu1 %vm857_vm2, %v5163_v13  ;;  %v2286_v39 = vpop.permute.xlu1 %2285 }
 0x289   : > { %2928 = vperm.xlu1 %5223, %v2920_v48   ;;  %2923 = vperm.xlu0 %5222, %v2919_v55   ;;  %v6248_v35 = vpop.f32.mrf.mxu0  ;;  %v6250_v14 = vpop.f32.mrf.mxu1  ;;  %v2298_v12 = vsel %vm2297_vm8, %v6120_v0, %v2286_v39  ;;  %v2304_v23 = vsel %vm2297_vm8, %v2286_v39, %v6120_v0  ;;  %v2098_v39 = vsel %vm2087_vm7, %v6242_v51, %v6204_v44 }
 0x28a   : > { %2148 = vmatpush.bf16.msrb.mxu2 %v2134_v15  ;;  %2912 = vperm.xlu2 %5224, %v2904_v47   ;;  %v2315_v28 = vmul.f32 %v6244_v32, %v2298_v12  ;;  %v2316_v33 = vmul.f32 %v6246_v9, %v2304_v23  ;;  %v5164_v47 = vld [vmem:[%s7518_s6 + $0x28] sm:$0xff] }
 0x28b   : > { %2162 = vmatpush.bf16.msrb.mxu3 %v2135_v17  ;;  %2198 = vmatpush.bf16.msra.mxu0 %v2184_v4  ;;  %v5173_v4 = vld [vmem:[%s7519_s8 + $0x28] sm:$0xff] }
 0x28c   : > { %2212 = vmatpush.bf16.msra.mxu1 %v2185_v56  ;;  %v2327_v5 = vpack.c.bf16 %v2316_v33, %v2315_v28  ;;  %v2092_v56 = vsel %vm2087_vm7, %v6204_v44, %v6242_v51 }
 0x28d   : > { %v2113_v33 = vmul.f32 %v6148_v18, %v2092_v56 }
 0x28e   : > { %v2340_v13 = vunpack.c.l.b16 %v2327_v5  ;;  %v2341_v22 = vunpack.c.h.b16 %v2327_v5 }
 0x28f   : > { %v2276_v57 = vpop.permute.xlu0 %2275  ;;  %v2074_v34 = vpop.permute.xlu2 %2073 }
 0x290   : > { %v2280_v1 = vpop.permute.xlu1 %2279  ;;  %v2299_v0 = vsel %vm2297_vm8, %v2276_v57, %v6162_v31  ;;  %v2305_v58 = vsel %vm2297_vm8, %v6162_v31, %v2276_v57 }
 0x291   : > { %3036 = vperm.xlu0 %5222, %v3028_v21   ;;  %v2317_v27 = vmul.f32 %v6244_v32, %v2299_v0  ;;  %v2318_v63 = vmul.f32 %v6246_v9, %v2305_v58  ;;  %v1284_v37 = vpop.f32.mrf.mxu0  ;;  %v1298_v36 = vpop.f32.mrf.mxu1  ;;  %v2301_v49 = vsel %vm2297_vm8, %v2280_v1, %v2292_v3  ;;  %v2307_v17 = vsel %vm2297_vm8, %v2292_v3, %v2280_v1 }
 0x292   : > { %3031 = vperm.xlu2 %5224, %v3027_v6   ;;  %v6278_v19 = vadd.f32 %v1284_v37, %v6215_v40  ;;  %v6284_v31 = vadd.f32 %v1298_v36, %v6220_v2  ;;  %v2321_v3 = vmul.f32 %v6244_v32, %v2301_v49  ;;  %v2322_v28 = vmul.f32 %v6246_v9, %v2307_v17  ;;  %v691_v36 = vld [vmem:[%s7513_s5 + $0xe] sm:$0x3] }
 0x293   : > { %v2328_v54 = vpack.c.bf16 %v2318_v63, %v2317_v27  ;;  %v2114_v21 = vmul.f32 %v6154_v16, %v2098_v39 }
 0x294   : > { %v2330_v0 = vpack.c.bf16 %v2322_v28, %v2321_v3 }
 0x295   : > { %v2342_v20 = vunpack.c.l.b16 %v2328_v54  ;;  %v2343_v24 = vunpack.c.h.b16 %v2328_v54  ;;  %4939 = vmatmul.msk.bf16.vlgmr.msra.gmra.mxu2 %vm857_vm2, %v5172_v7  ;;  %v2121_v63 = vpack.c.bf16 %v2114_v21, %v2113_v33 }
 0x296   : > { %4940 = vmatmul.msk.bf16.vlgmr.msra.gmra.mxu3 %vm857_vm2, %v5172_v7 }
 0x297   : > { %4945 = vmatmul.msk.bf16.vlgmr.msrb.gmra.mxu0 %vm857_vm2, %v5181_v50  ;;  %v2278_v40 = vpop.permute.xlu0 %2277  ;;  %v2484_v29 = vpop.permute.xlu2 %2483  ;;  %v2344_v43 = vpack.c.b16 %v2342_v20, %v2340_v13  ;;  %v2345_v45 = vpack.c.b16 %v2343_v24, %v2341_v22  ;;  %v2392_v13 = vunpack.c.l.b16 %v2330_v0  ;;  %v6344_v22 = vperm.slane %v691_v36, 0 }
 0x298   : > { %4946 = vmatmul.msk.bf16.vlgmr.msrb.gmra.mxu1 %vm857_vm2, %v5181_v50  ;;  %v2290_v38 = vpop.permute.xlu1 %2289  ;;  %v6346_v20 = vperm.slane %v691_v36, 1  ;;  %v2231_v24 = vunpack.c.h.b16 %v2121_v63 }
 0x299   : > { %2358 = vmatpush.bf16.msrb.mxu0 %v2344_v43  ;;  %2372 = vmatpush.bf16.msrb.mxu1 %v2345_v45  ;;  %v2300_v41 = vsel %vm2297_vm8, %v2278_v40, %v2290_v38  ;;  %v2306_v48 = vsel %vm2297_vm8, %v2290_v38, %v2278_v40  ;;  %v6325_v6 = vpop.f32.mrf.mxu0  ;;  %v6327_v57 = vpop.f32.mrf.mxu1  ;;  %7533 = vst [vmem:[#allocation19_spill] sm:$0xff] %v6344_v22 }
 0x29a   : > { %v2319_v12 = vmul.f32 %v6244_v32, %v2300_v41  ;;  %v2320_v23 = vmul.f32 %v6246_v9, %v2306_v48  ;;  %7534 = vst [vmem:[#allocation20_spill] sm:$0xff] %v6346_v20  ;;  %v2393_v41 = vunpack.c.h.b16 %v2330_v0 }
 0x29c   : > { %v2329_v44 = vpack.c.bf16 %v2320_v23, %v2319_v12 }
 0x29e   : > { %v2390_v50 = vunpack.c.l.b16 %v2329_v44  ;;  %v2391_v48 = vunpack.c.h.b16 %v2329_v44 }
 0x29f   : > { %v6290_v2 = vpop.permute.xlu0 %2293 }
 0x2a0   : > { %v6296_v55 = vpop.permute.xlu1 %2487  ;;  %v2395_v36 = vpack.c.b16 %v2393_v41, %v2391_v48 }
 0x2a2   : > { %v6298_v15 = vpop.permute.xlu2 %2489 }
 0x2a5   : > { %4951 = vmatmul.msk.bf16.vlgmr.msrb.gmra.mxu2 %vm857_vm2, %v5164_v47 }
 0x2a6   : > { %4952 = vmatmul.msk.bf16.vlgmr.msrb.gmra.mxu3 %vm857_vm2, %v5164_v47  ;;  %v2302_v47 = vsel %vm2297_vm8, %v6202_v42, %v6290_v2 }
 0x2a7   : > { %4957 = vmatmul.msk.bf16.vlgmr.msra.gmra.mxu0 %vm857_vm2, %v5173_v4  ;;  %v2486_v51 = vpop.permute.xlu0 %2485 }
 0x2a8   : > { %4958 = vmatmul.msk.bf16.vlgmr.msra.gmra.mxu1 %vm857_vm2, %v5173_v4  ;;  %v2086_v1 = vpop.permute.xlu1 %2085  ;;  %v2394_v4 = vpack.c.b16 %v2392_v13, %v2390_v50 }
 0x2a9   : > { %v2093_v58 = vsel %vm2087_vm7, %v2074_v34, %v2086_v1  ;;  %v2099_v5 = vsel %vm2087_vm7, %v2086_v1, %v2074_v34  ;;  %v2230_v34 = vunpack.c.l.b16 %v2121_v63  ;;  %v5182_v1 = vld [vmem:[%s7522_s10 + $0x28] sm:$0xff]  ;;  %v5165_v63 = vld [vmem:[%s7518_s6 + $0x30] sm:$0xff] }
 0x2aa   : > { %v6336_v27 = vpop.permute.xlu2 %2499  ;;  %v2115_v37 = vmul.f32 %v6148_v18, %v2093_v58  ;;  %v2116_v7 = vmul.f32 %v6154_v16, %v2099_v5 }
 0x2ab   : > { %v1330_v45 = vpop.f32.mrf.mxu0 }
 0x2ac   : > { %v2122_v54 = vpack.c.bf16 %v2116_v7, %v2115_v37  ;;  %v1344_v38 = vpop.f32.mrf.mxu1 }
 0x2ae   : > { %v2232_v40 = vunpack.c.l.b16 %v2122_v54  ;;  %v2233_v43 = vunpack.c.h.b16 %v2122_v54 }
 0x2af   : > { %v2496_v49 = vpop.permute.xlu0 %2495  ;;  %v1376_v17 = vpop.f32.mrf.mxu2 }
 0x2b0   : > { %v2498_v56 = vpop.permute.xlu1 %2497  ;;  %v2508_v39 = vsel %vm2507_vm9, %v2484_v29, %v2496_v49  ;;  %v2514_v12 = vsel %vm2507_vm9, %v2496_v49, %v2484_v29  ;;  %v6356_v23 = vadd.f32 %v1376_v17, %v1330_v45  ;;  %v2234_v3 = vpack.c.b16 %v2232_v40, %v2230_v34  ;;  %v1390_v37 = vpop.f32.mrf.mxu3 }
 0x2b1   : > { %v2509_v28 = vsel %vm2507_vm9, %v2486_v51, %v2498_v56  ;;  %v2515_v33 = vsel %vm2507_vm9, %v2498_v56, %v2486_v51  ;;  %v2525_v21 = vmul.f32 %v6344_v22, %v2508_v39  ;;  %v2526_v44 = vmul.f32 %v6346_v20, %v2514_v12 }
 0x2b2   : > { %v2308_v29 = vsel %vm2297_vm8, %v6290_v2, %v6202_v42  ;;  %v2527_v0 = vmul.f32 %v6344_v22, %v2509_v28  ;;  %v2528_v58 = vmul.f32 %v6346_v20, %v2515_v33  ;;  %2248 = vmatpush.bf16.msra.mxu2 %v2234_v3  ;;  %v2235_v51 = vpack.c.b16 %v2233_v43, %v2231_v24 }
 0x2b3   : > { %v6373_v5 = vpop.permute.xlu2 %2693  ;;  %v2537_v7 = vpack.c.bf16 %v2526_v44, %v2525_v21  ;;  %v6378_v50 = vadd.f32 %v1390_v37, %v1344_v38  ;;  %v2323_v42 = vmul.f32 %v6244_v32, %v2302_v47  ;;  %v2324_v2 = vmul.f32 %v6246_v9, %v2308_v29  ;;  %v6396_v12 = vpop.f32.mrf.mxu0 }
 0x2b4   : > { %v2538_v54 = vpack.c.bf16 %v2528_v58, %v2527_v0  ;;  %2262 = vmatpush.bf16.msra.mxu3 %v2235_v51  ;;  %v6390_v17 = vpop.f32.mrf.mxu1  ;;  %v2510_v3 = vsel %vm2507_vm9, %v6296_v55, %v6336_v27  ;;  %v2516_v28 = vsel %vm2507_vm9, %v6336_v27, %v6296_v55  ;;  %v5174_v27 = vld [vmem:[%s7519_s8 + $0x30] sm:$0xff] }
 0x2b5   : > { %v2550_v13 = vunpack.c.l.b16 %v2537_v7  ;;  %v2551_v34 = vunpack.c.h.b16 %v2537_v7  ;;  %4963 = vmatmul.msk.bf16.vlgmr.msra.gmra.mxu2 %vm857_vm2, %v5182_v1  ;;  %v2331_v48 = vpack.c.bf16 %v2324_v2, %v2323_v42  ;;  %v2530_v29 = vmul.f32 %v6346_v20, %v2516_v28 }
 0x2b6   : > { %2408 = vmatpush.bf16.msrb.mxu2 %v2394_v4  ;;  %v2552_v24 = vunpack.c.l.b16 %v2538_v54  ;;  %v2553_v40 = vunpack.c.h.b16 %v2538_v54 }
 0x2b7   : > { %4969 = vmatmul.msk.bf16.vlgmr.msrb.gmra.mxu0 %vm857_vm2, %v5165_v63  ;;  %4964 = vmatmul.msk.bf16.vlgmr.msra.gmra.mxu3 %vm857_vm2, %v5182_v1  ;;  %v2440_v21 = vunpack.c.l.b16 %v2331_v48  ;;  %v2441_v44 = vunpack.c.h.b16 %v2331_v48  ;;  %v2529_v1 = vmul.f32 %v6344_v22, %v2510_v3 }
 0x2b8   : > { %2422 = vmatpush.bf16.msrb.mxu3 %v2395_v36  ;;  %4970 = vmatmul.msk.bf16.vlgmr.msrb.gmra.mxu1 %vm857_vm2, %v5165_v63  ;;  %v2554_v38 = vpack.c.b16 %v2552_v24, %v2550_v13  ;;  %v2555_v41 = vpack.c.b16 %v2553_v40, %v2551_v34  ;;  %v5183_v34 = vld [vmem:[%s7522_s10 + $0x30] sm:$0xff] }
 0x2b9   : > { %v2296_v43 = vpop.permute.xlu1 %2295  ;;  %v2284_v45 = vpop.permute.xlu0 %2283  ;;  %v2539_v54 = vpack.c.bf16 %v2530_v29, %v2529_v1 }
 0x2ba   : > { %v2303_v47 = vsel %vm2297_vm8, %v2284_v45, %v2296_v43  ;;  %v2309_v49 = vsel %vm2297_vm8, %v2296_v43, %v2284_v45  ;;  %2568 = vmatpush.bf16.msra.mxu2 %v2554_v38 }
 0x2bb   : > { %v2325_v4 = vmul.f32 %v6244_v32, %v2303_v47  ;;  %v2326_v56 = vmul.f32 %v6246_v9, %v2309_v49  ;;  %v6394_v39 = vpop.permute.xlu2 %2707  ;;  %v2600_v43 = vunpack.c.l.b16 %v2539_v54  ;;  %v2601_v45 = vunpack.c.h.b16 %v2539_v54  ;;  %v692_v49 = vld [vmem:[%s7513_s5 + $0x10] sm:$0x3] }
 0x2bc   : > { %2582 = vmatpush.bf16.msra.mxu3 %v2555_v41 }
 0x2bd   : > { %v2332_v33 = vpack.c.bf16 %v2326_v56, %v2325_v4 }
 0x2bf   : > { %v2442_v0 = vunpack.c.l.b16 %v2332_v33  ;;  %v2443_v58 = vunpack.c.h.b16 %v2332_v33  ;;  %v6438_v33 = vperm.slane %v692_v49, 0 }
 0x2c1   : > { %v2492_v51 = vpop.permute.xlu1 %2491  ;;  %v2502_v63 = vpop.permute.xlu0 %2501  ;;  %v2444_v37 = vpack.c.b16 %v2442_v0, %v2440_v21  ;;  %v2445_v7 = vpack.c.b16 %v2443_v58, %v2441_v44  ;;  %7535 = vst [vmem:[#allocation21_spill] sm:$0xff] %v6438_v33  ;;  %v6440_v21 = vperm.slane %v692_v49, 1 }
 0x2c2   : > { %v2511_v36 = vsel %vm2507_vm9, %v6298_v15, %v2502_v63  ;;  %v2517_v55 = vsel %vm2507_vm9, %v2502_v63, %v6298_v15  ;;  %v6419_v13 = vpop.f32.mrf.mxu0  ;;  %v1436_v15 = vpop.f32.mrf.mxu1 }
 0x2c3   : > { %v2531_v42 = vmul.f32 %v6344_v22, %v2511_v36  ;;  %v2532_v2 = vmul.f32 %v6346_v20, %v2517_v55  ;;  %2458 = vmatpush.bf16.msra.mxu0 %v2444_v37  ;;  %2472 = vmatpush.bf16.msra.mxu1 %v2445_v7  ;;  %v6424_v24 = vpop.permute.xlu2 %2493  ;;  %7536 = vst [vmem:[#allocation22_spill] sm:$0xff] %v6440_v21  ;;  %v6450_v0 = vpop.f32.mrf.mxu2  ;;  %v5166_v55 = vld [vmem:[%s7518_s6 + $0x38] sm:$0xff] }
 0x2c4   : > { %v6452_v58 = vpop.f32.mrf.mxu3 }
 0x2c5   : > { %v2540_v40 = vpack.c.bf16 %v2532_v2, %v2531_v42  ;;  %4975 = vmatmul.msk.bf16.vlgmr.msrb.gmra.mxu2 %vm857_vm2, %v5174_v27  ;;  %v5175_v2 = vld [vmem:[%s7519_s8 + $0x38] sm:$0xff] }
 0x2c7   : > { %v2602_v38 = vunpack.c.l.b16 %v2540_v40  ;;  %v2603_v41 = vunpack.c.h.b16 %v2540_v40  ;;  %4981 = vmatmul.msk.bf16.vlgmr.msra.gmra.mxu0 %vm857_vm2, %v5183_v34  ;;  %4976 = vmatmul.msk.bf16.vlgmr.msrb.gmra.mxu3 %vm857_vm2, %v5174_v27 }
 0x2c8   : > { %4982 = vmatmul.msk.bf16.vlgmr.msra.gmra.mxu1 %vm857_vm2, %v5183_v34 }
 0x2c9   : > { %v2604_v48 = vpack.c.b16 %v2602_v38, %v2600_v43  ;;  %v2605_v47 = vpack.c.b16 %v2603_v41, %v2601_v45 }
 0x2ca   : > { %v2706_v4 = vpop.permute.xlu1 %2705  ;;  %v2504_v56 = vpop.permute.xlu0 %2503 }
 0x2cb   : > { %v6434_v3 = vpop.f32.mrf.mxu0  ;;  %2618 = vmatpush.bf16.msrb.mxu0 %v2604_v48  ;;  %v6436_v28 = vpop.f32.mrf.mxu1  ;;  %2632 = vmatpush.bf16.msrb.mxu1 %v2605_v47  ;;  %v2718_v44 = vsel %vm2717_vm10, %v6373_v5, %v2706_v4  ;;  %v2724_v1 = vsel %vm2717_vm10, %v2706_v4, %v6373_v5  ;;  %v2512_v27 = vsel %vm2507_vm9, %v2492_v51, %v2504_v56 }
 0x2cc   : > { %v6448_v29 = vpop.permute.xlu2 %2701  ;;  %v2735_v63 = vmul.f32 %v6438_v33, %v2718_v44  ;;  %v2736_v37 = vmul.f32 %v6440_v21, %v2724_v1  ;;  %v2518_v5 = vsel %vm2507_vm9, %v2504_v56, %v2492_v51  ;;  %v2533_v41 = vmul.f32 %v6344_v22, %v2512_v27 }
 0x2cd   : > { %v2534_v48 = vmul.f32 %v6346_v20, %v2518_v5 }
 0x2ce   : > { %v2747_v45 = vpack.c.bf16 %v2736_v37, %v2735_v63 }
 0x2cf   : > { %v2541_v37 = vpack.c.bf16 %v2534_v48, %v2533_v41 }
 0x2d0   : > { %v2761_v44 = vunpack.c.h.b16 %v2747_v45 }
 0x2d1   : > { %v2651_v41 = vunpack.c.h.b16 %v2541_v37 }
 0x2d2   : > { %v2700_v7 = vpop.permute.xlu1 %2699  ;;  %v2696_v36 = vpop.permute.xlu0 %2695 }
 0x2d3   : > { %v2719_v54 = vsel %vm2717_vm10, %v2696_v36, %v6394_v39  ;;  %v2725_v42 = vsel %vm2717_vm10, %v6394_v39, %v2696_v36 }
 0x2d4   : > { %v2737_v34 = vmul.f32 %v6438_v33, %v2719_v54  ;;  %v2738_v40 = vmul.f32 %v6440_v21, %v2725_v42  ;;  %v1574_v43 = vpop.f32.mrf.mxu0  ;;  %v1588_v38 = vpop.f32.mrf.mxu1 }
 0x2d5   : > { %v6475_v51 = vadd.f32 %v1574_v43, %v6278_v19  ;;  %v6480_v39 = vadd.f32 %v1588_v38, %v6284_v31  ;;  %4987 = vmatmul.msk.bf16.vlgmr.msra.gmra.mxu2 %vm857_vm2, %v5166_v55  ;;  %v2712_v56 = vpop.permute.xlu2 %2711  ;;  %v2760_v19 = vunpack.c.l.b16 %v2747_v45 }
 0x2d6   : > { %v2748_v47 = vpack.c.bf16 %v2738_v40, %v2737_v34 }
 0x2d7   : > { %4993 = vmatmul.msk.bf16.vlgmr.msrb.gmra.mxu0 %vm857_vm2, %v5175_v2  ;;  %4988 = vmatmul.msk.bf16.vlgmr.msra.gmra.mxu3 %vm857_vm2, %v5166_v55 }
 0x2d8   : > { %v2762_v49 = vunpack.c.l.b16 %v2748_v47  ;;  %v2763_v4 = vunpack.c.h.b16 %v2748_v47  ;;  %4994 = vmatmul.msk.bf16.vlgmr.msrb.gmra.mxu1 %vm857_vm2, %v5175_v2  ;;  %v1468_v1 = vpop.f32.mrf.mxu2  ;;  %v1482_v63 = vpop.f32.mrf.mxu3 }
 0x2d9   : > { %v1469_v31 = vadd.f32 %v1468_v1, %v6419_v13  ;;  %v1483_v5 = vadd.f32 %v1482_v63, %v1436_v15  ;;  %v2721_v13 = vsel %vm2717_vm10, %v2700_v7, %v2712_v56  ;;  %v2727_v15 = vsel %vm2717_vm10, %v2712_v56, %v2700_v7 }
 0x2da   : > { %v2506_v36 = vpop.permute.xlu1 %2505  ;;  %v2698_v27 = vpop.permute.xlu0 %2697  ;;  %v2764_v42 = vpack.c.b16 %v2762_v49, %v2760_v19  ;;  %v2765_v2 = vpack.c.b16 %v2763_v4, %v2761_v44  ;;  %v2741_v48 = vmul.f32 %v6438_v33, %v2721_v13  ;;  %v2742_v47 = vmul.f32 %v6440_v21, %v2727_v15 }
 0x2db   : > { %v2513_v54 = vsel %vm2507_vm9, %v6424_v24, %v2506_v36  ;;  %v2519_v55 = vsel %vm2507_vm9, %v2506_v36, %v6424_v24  ;;  %v2650_v24 = vunpack.c.l.b16 %v2541_v37 }
 0x2dc   : > { %v2535_v34 = vmul.f32 %v6344_v22, %v2513_v54  ;;  %v2536_v40 = vmul.f32 %v6346_v20, %v2519_v55  ;;  %v6495_v43 = vpop.f32.mrf.mxu0  ;;  %v6501_v45 = vpop.f32.mrf.mxu1  ;;  %2778 = vmatpush.bf16.msra.mxu0 %v2764_v42  ;;  %2792 = vmatpush.bf16.msra.mxu1 %v2765_v2  ;;  %v5184_v54 = vld [vmem:[%s7522_s10 + $0x38] sm:$0xff]  ;;  %v5167_v55 = vld [vmem:[%s7518_s6 + $0x40] sm:$0xff]  ;;  %v2750_v42 = vpack.c.bf16 %v2742_v47, %v2741_v48 }
 0x2de   : > { %v2542_v38 = vpack.c.bf16 %v2536_v40, %v2535_v34 }
 0x2e0   : > { %v2652_v49 = vunpack.c.l.b16 %v2542_v38  ;;  %v2653_v4 = vunpack.c.h.b16 %v2542_v38  ;;  %v6505_v19 = vpop.f32.mrf.mxu2  ;;  %v6507_v44 = vpop.f32.mrf.mxu3 }
 0x2e2   : > { %v2710_v1 = vpop.permute.xlu1 %2709  ;;  %v2704_v63 = vpop.permute.xlu0 %2703  ;;  %v2654_v7 = vpack.c.b16 %v2652_v49, %v2650_v24  ;;  %v2655_v56 = vpack.c.b16 %v2653_v4, %v2651_v41  ;;  %v2812_v24 = vunpack.c.l.b16 %v2750_v42  ;;  %v2813_v41 = vunpack.c.h.b16 %v2750_v42 }
 0x2e3   : > { %v2720_v36 = vsel %vm2717_vm10, %v2698_v27, %v2710_v1  ;;  %v2726_v37 = vsel %vm2717_vm10, %v2710_v1, %v2698_v27 }
 0x2e4   : > { %v2739_v2 = vmul.f32 %v6438_v33, %v2720_v36  ;;  %v2740_v34 = vmul.f32 %v6440_v21, %v2726_v37  ;;  %v1674_v40 = vpop.f32.mrf.mxu0  ;;  %2668 = vmatpush.bf16.msrb.mxu2 %v2654_v7  ;;  %2682 = vmatpush.bf16.msrb.mxu3 %v2655_v56  ;;  %v1688_v15 = vpop.f32.mrf.mxu1 }
 0x2e5   : > { %v6521_v13 = vadd.f32 %v1674_v40, %v1469_v31  ;;  %v6523_v38 = vadd.f32 %v1688_v15, %v1483_v5 }
 0x2e6   : > { %v2749_v27 = vpack.c.bf16 %v2740_v34, %v2739_v2 }
 0x2e7   : > { %4999 = vmatmul.msk.bf16.vlgmr.msrb.gmra.mxu2 %vm857_vm2, %v5184_v54  ;;  %5005 = vmatmul.msk.bf16.vlgmr.msra.gmra.mxu0 %vm857_vm2, %v5167_v55 }
 0x2e8   : > { %v2810_v48 = vunpack.c.l.b16 %v2749_v27  ;;  %v2811_v47 = vunpack.c.h.b16 %v2749_v27  ;;  %5000 = vmatmul.msk.bf16.vlgmr.msrb.gmra.mxu3 %vm857_vm2, %v5184_v54  ;;  %5006 = vmatmul.msk.bf16.vlgmr.msra.gmra.mxu1 %vm857_vm2, %v5167_v55  ;;  %v1624_v49 = vpop.f32.mrf.mxu2  ;;  %v1638_v4 = vpop.f32.mrf.mxu3 }
 0x2e9   : > { %v1643_v31 = vadd.f32 %v1624_v49, %v6356_v23  ;;  %v1644_v1 = vadd.f32 %v1638_v4, %v6378_v50 }
 0x2ea   : > { %v2814_v5 = vpack.c.b16 %v2812_v24, %v2810_v48  ;;  %v2815_v7 = vpack.c.b16 %v2813_v41, %v2811_v47 }
 0x2eb   : > { %v2716_v56 = vpop.permute.xlu1 %2715  ;;  %v2714_v36 = vpop.permute.xlu0 %2713 }
 0x2ec   : > { %v2723_v37 = vsel %vm2717_vm10, %v2704_v63, %v2716_v56  ;;  %v2729_v42 = vsel %vm2717_vm10, %v2716_v56, %v2704_v63  ;;  %v2722_v54 = vsel %vm2717_vm10, %v6448_v29, %v2714_v36  ;;  %v2728_v23 = vsel %vm2717_vm10, %v2714_v36, %v6448_v29  ;;  %v6541_v55 = vpop.f32.mrf.mxu0  ;;  %2828 = vmatpush.bf16.msra.mxu2 %v2814_v5  ;;  %v6547_v63 = vpop.f32.mrf.mxu1  ;;  %v5176_v56 = vld [vmem:[%s7519_s8 + $0x40] sm:$0xff] }
 0x2ed   : > { %v2745_v50 = vmul.f32 %v6438_v33, %v2723_v37  ;;  %v2746_v2 = vmul.f32 %v6440_v21, %v2729_v42  ;;  %v2743_v34 = vmul.f32 %v6438_v33, %v2722_v54  ;;  %v2744_v40 = vmul.f32 %v6440_v21, %v2728_v23  ;;  %2842 = vmatpush.bf16.msra.mxu3 %v2815_v7  ;;  %v5185_v7 = vld [vmem:[%s7522_s10 + $0x40] sm:$0xff] }
 0x2ef   : > { %v2752_v15 = vpack.c.bf16 %v2746_v2, %v2745_v50  ;;  %v2751_v27 = vpack.c.bf16 %v2744_v40, %v2743_v34 }
 0x2f0   : > { %v6549_v47 = vpop.f32.mrf.mxu2  ;;  %v6551_v49 = vpop.f32.mrf.mxu3 }
 0x2f1   : > { %v2862_v24 = vunpack.c.l.b16 %v2752_v15  ;;  %v2863_v41 = vunpack.c.h.b16 %v2752_v15  ;;  %v2860_v48 = vunpack.c.l.b16 %v2751_v27  ;;  %v2861_v29 = vunpack.c.h.b16 %v2751_v27 }
 0x2f3   : > { %v2864_v4 = vpack.c.b16 %v2862_v24, %v2860_v48  ;;  %v2865_v5 = vpack.c.b16 %v2863_v41, %v2861_v29 }
 0x2f4   : > { %v1834_v36 = vpop.f32.mrf.mxu0  ;;  %v1848_v42 = vpop.f32.mrf.mxu1 }
 0x2f5   : > { %v1853_v37 = vadd.f32 %v1834_v36, %v1643_v31  ;;  %2878 = vmatpush.bf16.msrb.mxu0 %v2864_v4  ;;  %2892 = vmatpush.bf16.msrb.mxu1 %v2865_v5  ;;  %v1854_v54 = vadd.f32 %v1848_v42, %v1644_v1 }
 0x2f7   : > { %5011 = vmatmul.msk.bf16.vlgmr.msra.gmra.mxu2 %vm857_vm2, %v5176_v56 }
 0x2f8   : > { %5012 = vmatmul.msk.bf16.vlgmr.msra.gmra.mxu3 %vm857_vm2, %v5176_v56  ;;  %5017 = vmatmul.msk.bf16.vlgmr.msrb.gmra.mxu0 %vm857_vm2, %v5185_v7  ;;  %v1784_v23 = vpop.f32.mrf.mxu2  ;;  %v1798_v50 = vpop.f32.mrf.mxu3 }
 0x2f9   : > { %5018 = vmatmul.msk.bf16.vlgmr.msrb.gmra.mxu1 %vm857_vm2, %v5185_v7  ;;  %v1803_v2 = vadd.f32 %v1784_v23, %v6475_v51  ;;  %v1804_v34 = vadd.f32 %v1798_v50, %v6480_v39 }
 0x2fc   : > { %v6565_v40 = vpop.f32.mrf.mxu0  ;;  %v6567_v31 = vpop.f32.mrf.mxu1 }
 0x300   : > { %v6569_v15 = vpop.f32.mrf.mxu2  ;;  %v6571_v1 = vpop.f32.mrf.mxu3 }
 0x304   : > { %v1940_v27 = vpop.f32.mrf.mxu0 }
 0x305   : > { %v1959_v24 = vadd.f32 %v1940_v27, %v1803_v2  ;;  %v1954_v41 = vpop.f32.mrf.mxu1 }
 0x306   : > { %v1960_v48 = vadd.f32 %v1954_v41, %v1804_v34 }
 0x308   : > { %v1884_v29 = vpop.f32.mrf.mxu2 }
 0x309   : > { %v1903_v4 = vadd.f32 %v1884_v29, %v6521_v13  ;;  %v1898_v5 = vpop.f32.mrf.mxu3 }
 0x30a   : > { %v1904_v51 = vadd.f32 %v1898_v5, %v6523_v38 }
 0x30c   : > { %v6575_v56 = vpop.f32.mrf.mxu0 }
 0x30d   : > { %v6577_v39 = vpop.f32.mrf.mxu1 }
 0x310   : > { %v6579_v36 = vpop.f32.mrf.mxu2 }
 0x311   : > { %v6581_v7 = vpop.f32.mrf.mxu3 }
 0x314   : > { %v2040_v42 = vpop.f32.mrf.mxu0 }
 0x315   : > { %v6583_v23 = vadd.f32 %v2040_v42, %v1903_v4  ;;  %v2054_v50 = vpop.f32.mrf.mxu1 }
 0x316   : > { %v6585_v2 = vadd.f32 %v2054_v50, %v1904_v51 }
 0x318   : > { %v1990_v34 = vpop.f32.mrf.mxu2 }
 0x319   : > { %v2009_v27 = vadd.f32 %v1990_v34, %v1853_v37  ;;  %v2004_v13 = vpop.f32.mrf.mxu3 }
 0x31a   : > { %v2010_v41 = vadd.f32 %v2004_v13, %v1854_v54 }
 0x31c   : > { %v6587_v29 = vpop.f32.mrf.mxu0 }
 0x31d   : > { %v6589_v38 = vpop.f32.mrf.mxu1 }
 0x320   : > { %v6591_v5 = vpop.f32.mrf.mxu2 }
 0x321   : > { %v6593_v62 = vpop.f32.mrf.mxu3 }
 0x324   : > { %v2200_v60 = vpop.f32.mrf.mxu0 }
 0x325   : > { %v6595_v61 = vadd.f32 %v2200_v60, %v2009_v27  ;;  %v2214_v4 = vpop.f32.mrf.mxu1 }
 0x326   : > { %v6597_v42 = vadd.f32 %v2214_v4, %v2010_v41 }
 0x328   : > { %v2150_v51 = vpop.f32.mrf.mxu2 }
 0x329   : > { %v2169_v50 = vadd.f32 %v2150_v51, %v1959_v24  ;;  %v2164_v59 = vpop.f32.mrf.mxu3 }
 0x32a   : > { %v2170_v37 = vadd.f32 %v2164_v59, %v1960_v48 }
 0x32c   : > { %v6599_v34 = vpop.f32.mrf.mxu0 }
 0x32d   : > { %v6601_v54 = vpop.f32.mrf.mxu1 }
 0x330   : > { %v6603_v13 = vpop.f32.mrf.mxu2 }
 0x331   : > { %v6605_v21 = vpop.f32.mrf.mxu3 }
 0x334   : > { %v2360_v33 = vpop.f32.mrf.mxu0 }
 0x335   : > { %v6607_v20 = vadd.f32 %v2360_v33, %v2169_v50  ;;  %v2374_v60 = vpop.f32.mrf.mxu1 }
 0x336   : > { %v6609_v27 = vadd.f32 %v2374_v60, %v2170_v37 }
 0x338   : > { %v2250_v41 = vpop.f32.mrf.mxu2 }
 0x33a   : > { %v2264_v4 = vpop.f32.mrf.mxu3 }
 0x33c   : > { %v6611_v22 = vpop.f32.mrf.mxu0 }
 0x33d   : > { %v6613_v24 = vpop.f32.mrf.mxu1 }
 0x340   : > { %v6615_v59 = vpop.f32.mrf.mxu2 }
 0x342   : > { %v6617_v48 = vpop.f32.mrf.mxu3 }
 0x344   : > { %v2460_v51 = vpop.f32.mrf.mxu0 }
 0x345   : > { %v2474_v9 = vpop.f32.mrf.mxu1 }
 0x348   : > { %v6619_v32 = vpop.f32.mrf.mxu2 }
 0x34a   : > { %v6621_v16 = vpop.f32.mrf.mxu3 }
 0x34c   : > { %v6623_v33 = vpop.f32.mrf.mxu0 }
 0x34d   : > { %v6625_v50 = vpop.f32.mrf.mxu1 }
 0x34e   : > { %7537 = vst [vmem:[#allocation23_spill] sm:$0xff] %v6625_v50 }
 0x350   : > { %v6627_v37 = vpop.f32.mrf.mxu2 }
 0x351   : > { %7538 = vst [vmem:[#allocation24_spill] sm:$0xff] %v6627_v37 }
 0x352   : > { %v6629_v60 = vpop.f32.mrf.mxu3 }
 0x353   : > { %7539 = vst [vmem:[#allocation25_spill] sm:$0xff] %v6629_v60  ;;  %v1287_v60 = vadd.f32 %v6325_v6, %v6248_v35  ;;  %v1471_v35 = vadd.f32 %v6505_v19, %v6434_v3  ;;  %v2270_v3 = vadd.f32 %v2264_v4, %v6585_v2 }
 0x354   : > { %v6631_v18 = vpop.f32.mrf.mxu0 }
 0x355   : > { %7540 = vst [vmem:[#allocation26_spill] sm:$0xff] %v6631_v18  ;;  %v6633_v30 = vpop.f32.mrf.mxu1 }
 0x356   : > { %7541 = vst [vmem:[#allocation27_spill] sm:$0xff] %v6633_v30  ;;  %v1301_v30 = vadd.f32 %v6327_v57, %v6250_v14  ;;  %v1485_v14 = vadd.f32 %v6507_v44, %v6436_v28 }
 0x358   : > { %v2570_v11 = vpop.f32.mrf.mxu2 }
 0x35a   : > { %v2584_v26 = vpop.f32.mrf.mxu3 }
 0x35c   : > { %v6635_v25 = vpop.f32.mrf.mxu0 }
 0x35d   : > { %7542 = vst [vmem:[#allocation28_spill] sm:$0xff] %v6635_v25  ;;  %v6637_v10 = vpop.f32.mrf.mxu1 }
 0x35e   : > { %7543 = vst [vmem:[#allocation29_spill] sm:$0xff] %v6637_v10  ;;  %v1379_v10 = vadd.f32 %v6450_v0, %v6396_v12 }
 0x360   : > { %v6639_v8 = vpop.f32.mrf.mxu2  ;;  %v1645_v6 = vadd.f32 %v6549_v47, %v1379_v10 }
 0x361   : > { %7544 = vst [vmem:[#allocation30_spill] sm:$0xff] %v6639_v8  ;;  %v1595_v8 = vadd.f32 %v6495_v43, %v1287_v60 }
 0x362   : > { %v6641_v53 = vpop.f32.mrf.mxu3  ;;  %v1855_v43 = vadd.f32 %v6565_v40, %v1645_v6 }
 0x363   : > { %7545 = vst [vmem:[#allocation31_spill] sm:$0xff] %v6641_v53  ;;  %v1393_v53 = vadd.f32 %v6452_v58, %v6390_v17  ;;  %v1805_v12 = vadd.f32 %v6569_v15, %v1595_v8  ;;  %v2269_v17 = vadd.f32 %v2250_v41, %v6583_v23  ;;  %v1695_v58 = vadd.f32 %v6541_v55, %v1471_v35 }
 0x364   : > { %v2780_v52 = vpop.f32.mrf.mxu0  ;;  %v2011_v55 = vadd.f32 %v6591_v5, %v1855_v43 }
 0x365   : > { %v6643_v46 = vpop.f32.mrf.mxu1  ;;  %v1646_v57 = vadd.f32 %v6551_v49, %v1393_v53  ;;  %v1961_v53 = vadd.f32 %v6575_v56, %v1805_v12  ;;  %v2479_v28 = vadd.f32 %v2460_v51, %v2269_v17  ;;  %v1905_v19 = vadd.f32 %v6579_v36, %v1695_v58  ;;  %v7547_v51 = vld [vmem:[#allocation26_spill] sm:$0xff] }
 0x366   : > { %7546 = vst [vmem:[#allocation32_spill] sm:$0xff] %v6643_v46  ;;  %v1596_v46 = vadd.f32 %v6501_v45, %v1301_v30  ;;  %v1696_v30 = vadd.f32 %v6547_v63, %v1485_v14  ;;  %v6672_v45 = vpop.permute.xlu0 %2944  ;;  %v2480_v63 = vadd.f32 %v2474_v9, %v2270_v3 }
 0x367   : > { %v1856_v10 = vadd.f32 %v6567_v31, %v1646_v57  ;;  %v2171_v40 = vadd.f32 %v6603_v13, %v1961_v53  ;;  %v2940_v13 = vpop.permute.xlu2 %2939 }
 0x368   : > { %v1806_v0 = vadd.f32 %v6571_v1, %v1596_v46  ;;  %v1906_v44 = vadd.f32 %v6581_v7, %v1696_v30  ;;  %v2061_v1 = vadd.f32 %v6587_v29, %v1905_v19  ;;  %v2429_v29 = vadd.f32 %v6619_v32, %v6595_v61  ;;  %v2908_v61 = vpop.permute.xlu1 %2907  ;;  %v7548_v32 = vld [vmem:[#allocation23_spill] sm:$0xff]  ;;  %v7552_v14 = vld [vmem:[#allocation30_spill] sm:$0xff] }
 0x369   : > { %v2012_v49 = vadd.f32 %v6593_v62, %v1856_v10  ;;  %v2381_v9 = vadd.f32 %v6611_v22, %v2171_v40  ;;  %v2590_v22 = vadd.f32 %v2584_v26, %v6609_v27  ;;  %v7551_v26 = vld [vmem:[#allocation24_spill] sm:$0xff] }
 0x36a   : > { %v2670_v37 = vpop.f32.mrf.mxu2  ;;  %v1962_v8 = vadd.f32 %v6577_v39, %v1806_v0  ;;  %v2062_v56 = vadd.f32 %v6589_v38, %v1906_v44  ;;  %v2221_v39 = vadd.f32 %v6599_v34, %v2011_v55  ;;  %v2589_v38 = vadd.f32 %v2570_v11, %v6607_v20  ;;  %v7549_v20 = vld [vmem:[#allocation27_spill] sm:$0xff] }
 0x36b   : > { %v2684_v50 = vpop.f32.mrf.mxu3  ;;  %v2689_v15 = vadd.f32 %v2670_v37, %v2479_v28  ;;  %v2222_v7 = vadd.f32 %v6601_v54, %v2012_v49  ;;  %v2430_v54 = vadd.f32 %v6621_v16, %v6597_v42  ;;  %v2591_v6 = vadd.f32 %v7552_v14, %v2381_v9  ;;  %v7553_v0 = vld [vmem:[#allocation31_spill] sm:$0xff] }
 0x36c   : > { %v6649_v18 = vpop.f32.mrf.mxu0  ;;  %v2172_v31 = vadd.f32 %v6605_v21, %v1962_v8  ;;  %v2690_v36 = vadd.f32 %v2684_v50, %v2480_v63  ;;  %v2271_v21 = vadd.f32 %v6615_v59, %v2061_v1  ;;  %v2272_v34 = vadd.f32 %v6617_v48, %v2062_v56 }
 0x36d   : > { %v6653_v25 = vpop.f32.mrf.mxu1  ;;  %v2639_v50 = vadd.f32 %v7547_v51, %v2429_v29  ;;  %v2799_v59 = vadd.f32 %v2780_v52, %v2589_v38  ;;  %v2640_v60 = vadd.f32 %v7549_v20, %v2430_v54  ;;  %v7550_v48 = vld [vmem:[#allocation32_spill] sm:$0xff]  ;;  %v2431_v27 = vadd.f32 %v7551_v26, %v2221_v39 }
 0x36e   : > { %v2382_v2 = vadd.f32 %v6613_v24, %v2172_v31  ;;  %v2481_v24 = vadd.f32 %v6623_v33, %v2271_v21  ;;  %v2482_v11 = vadd.f32 %v7548_v32, %v2272_v34  ;;  %v2800_v35 = vadd.f32 %v7550_v48, %v2590_v22  ;;  %v2924_v12 = vpop.permute.xlu0 %2923  ;;  %v7555_v39 = vld [vmem:[#allocation28_spill] sm:$0xff] }
 0x36f   : > { %v2915_v3 = vadd.f32 %v2908_v61, %v2799_v59  ;;  %v2801_v49 = vadd.f32 %v6649_v18, %v2591_v6 }
 0x370   : > { %v2592_v17 = vadd.f32 %v7553_v0, %v2382_v2  ;;  %v2916_v19 = vadd.f32 %v2908_v61, %v2800_v35  ;;  %v2913_v2 = vpop.permute.xlu2 %2912  ;;  %v2929_v54 = vpop.permute.xlu1 %2928 }
 0x372   : > { %v2672_v46 = vpop.f32.mrf.mxu2 }
 0x373   : > { %v2686_v47 = vpop.f32.mrf.mxu3  ;;  %v2691_v58 = vadd.f32 %v2672_v46, %v2481_v24  ;;  %v2802_v46 = vadd.f32 %v6653_v25, %v2592_v17 }
 0x374   : > { %v2692_v10 = vadd.f32 %v2686_v47, %v2482_v11 }
 0x375   : > { %v2880_v23 = vpop.f32.mrf.mxu0  ;;  %v2918_v22 = vadd.f32 %v2913_v2, %v2802_v46 }
 0x376   : > { %v2899_v62 = vadd.f32 %v2880_v23, %v2689_v15  ;;  %v2894_v5 = vpop.f32.mrf.mxu1  ;;  %v7554_v15 = vld [vmem:[#allocation25_spill] sm:$0xff] }
 0x377   : > { %v2900_v41 = vadd.f32 %v2894_v5, %v2690_v36  ;;  %v2432_v1 = vadd.f32 %v7554_v15, %v2222_v7  ;;  %v2641_v36 = vadd.f32 %v7555_v39, %v2431_v27  ;;  %v2917_v7 = vadd.f32 %v2913_v2, %v2801_v49 }
 0x378   : > { %v6697_v4 = vadd.f32 %v2940_v13, %v2899_v62  ;;  %v7556_v62 = vld [vmem:[#allocation29_spill] sm:$0xff] }
 0x379   : > { %v6701_v37 = vadd.f32 %v2940_v13, %v2900_v41  ;;  %v2642_v18 = vadd.f32 %v7556_v62, %v2432_v1 }
 0x37a   : > { %v2979_v16 = vmin.f32 %v6697_v4, 30.0  ;;  %v2830_v42 = vpop.f32.mrf.mxu2 }
 0x37b   : > { %v2980_v33 = vmin.f32 %v6701_v37, 30.0  ;;  %v2849_v57 = vadd.f32 %v2830_v42, %v2639_v50  ;;  %v2844_v52 = vpop.f32.mrf.mxu3 }
 0x37c   : > { %v2983_v30 = vmul.f32 1.442695, %v2979_v16  ;;  %v2850_v43 = vadd.f32 %v2844_v52, %v2640_v60 }
 0x37d   : > { %v2985_v53 = vmul.f32 1.442695, %v2980_v33  ;;  %v2931_v8 = vadd.f32 %v2924_v12, %v2849_v57  ;;  %v2882_v28 = vpop.f32.mrf.mxu0 }
 0x37e   : > { %5289 = vpow2.f32 %v2983_v30  ;;  %v2932_v44 = vadd.f32 %v2924_v12, %v2850_v43  ;;  %v2901_v55 = vadd.f32 %v2882_v28, %v2691_v58  ;;  %v2896_v63 = vpop.f32.mrf.mxu1 }
 0x37f   : > { %5291 = vpow2.f32 %v2985_v53  ;;  %v2951_v40 = vmul.f32 %v2931_v8, %v2915_v3  ;;  %v2902_v31 = vadd.f32 %v2896_v63, %v2692_v10 }
 0x380   : > { %v2952_v56 = vmul.f32 %v2932_v44, %v2916_v19  ;;  %v6715_v47 = vadd.f32 %v6672_v45, %v2901_v55 }
 0x381   : > { %v2955_v23 = vsub.f32 0.0, %v2951_v40  ;;  %v6719_v9 = vadd.f32 %v6672_v45, %v2902_v31 }
 0x382   : > { %v2956_v5 = vsub.f32 0.0, %v2952_v56  ;;  %v2981_v13 = vmin.f32 %v6715_v47, 30.0  ;;  %v2832_v21 = vpop.f32.mrf.mxu2 }
 0x383   : > { %v2959_v29 = vmin.f32 %v2955_v23, 30.0  ;;  %v2982_v25 = vmin.f32 %v6719_v9, 30.0  ;;  %v2851_v38 = vadd.f32 %v2832_v21, %v2641_v36  ;;  %v2846_v41 = vpop.f32.mrf.mxu3 }
 0x384   : > { %v5290_v34 = vpop.eup %5289  ;;  %v2960_v24 = vmin.f32 %v2956_v5, 30.0  ;;  %v2987_v51 = vmul.f32 1.442695, %v2981_v13  ;;  %v2852_v45 = vadd.f32 %v2846_v41, %v2642_v18 }
 0x385   : > { %v5292_v50 = vpop.eup %5291  ;;  %v2991_v59 = vadd.f32 1.0, %v5290_v34  ;;  %v2963_v61 = vmul.f32 1.442695, %v2959_v29  ;;  %v2989_v32 = vmul.f32 1.442695, %v2982_v25  ;;  %v2933_v11 = vadd.f32 %v2929_v54, %v2851_v38 }
 0x386   : > { %v2992_v20 = vadd.f32 1.0, %v5292_v50  ;;  %v2965_v60 = vmul.f32 1.442695, %v2960_v24  ;;  %5293 = vpow2.f32 %v2987_v51  ;;  %v2934_v48 = vadd.f32 %v2929_v54, %v2852_v45  ;;  %v5186_v45 = vld [vmem:[%s7557_s12] sm:$0xff] }
 0x387   : > { %v2995_v35 = vmul.f32 %v2991_v59, %v2991_v59  ;;  %5295 = vpow2.f32 %v2963_v61  ;;  %v2953_v16 = vmul.f32 %v2933_v11, %v2917_v7  ;;  %v3032_v59 = vpop.permute.xlu2 %3031 }
 0x388   : > { %v2996_v42 = vmul.f32 %v2992_v20, %v2992_v20  ;;  %5297 = vpow2.f32 %v2965_v60  ;;  %v2954_v26 = vmul.f32 %v2934_v48, %v2918_v22  ;;  %v3037_v48 = vpop.permute.xlu0 %3036 }
 0x389   : > { %v2999_v27 = vadd.f32 1.0, %v2995_v35  ;;  %5299 = vpow2.f32 %v2989_v32  ;;  %v2957_v14 = vsub.f32 0.0, %v2953_v16 }
 0x38a   : > { %v3000_v6 = vadd.f32 1.0, %v2996_v42  ;;  %v2958_v33 = vsub.f32 0.0, %v2954_v26 }
 0x38b   : > { %5301 = vrcp.f32 %v2999_v27  ;;  %v2961_v57 = vmin.f32 %v2957_v14, 30.0 }
 0x38c   : > { %v5294_v52 = vpop.eup %5293  ;;  %5303 = vrcp.f32 %v3000_v6  ;;  %v2962_v12 = vmin.f32 %v2958_v33, 30.0 }
 0x38d   : > { %v5296_v0 = vpop.eup %5295  ;;  %v2993_v17 = vadd.f32 1.0, %v5294_v52  ;;  %v2967_v58 = vmul.f32 1.442695, %v2961_v57 }
 0x38e   : > { %v5298_v30 = vpop.eup %5297  ;;  %v2971_v43 = vadd.f32 1.0, %v5296_v0  ;;  %v2969_v3 = vmul.f32 1.442695, %v2962_v12 }
 0x38f   : > { %v5300_v10 = vpop.eup %5299  ;;  %v2972_v53 = vadd.f32 1.0, %v5298_v30  ;;  %v2997_v8 = vmul.f32 %v2993_v17, %v2993_v17  ;;  %5305 = vpow2.f32 %v2967_v58 }
 0x390   : > { %5307 = vrcp.f32 %v2971_v43  ;;  %v2994_v28 = vadd.f32 1.0, %v5300_v10 }
 0x391   : > { %v5302_v19 = vpop.eup %5301  ;;  %5309 = vrcp.f32 %v2972_v53  ;;  %v3001_v44 = vadd.f32 1.0, %v2997_v8 }
 0x392   : > { %v5304_v55 = vpop.eup %5303  ;;  %v3007_v63 = vmul.f32 2.0, %v5302_v19  ;;  %v2998_v49 = vmul.f32 %v2994_v28, %v2994_v28  ;;  %5311 = vpow2.f32 %v2969_v3 }
 0x393   : > { %v3008_v40 = vmul.f32 2.0, %v5304_v55  ;;  %5313 = vrcp.f32 %v3001_v44 }
 0x394   : > { %v3011_v31 = vsub.f32 1.0, %v3007_v63  ;;  %v3002_v15 = vadd.f32 1.0, %v2998_v49 }
 0x395   : > { %v5306_v1 = vpop.eup %5305  ;;  %v3012_v46 = vsub.f32 1.0, %v3008_v40 }
 0x396   : > { %v5308_v56 = vpop.eup %5307  ;;  %v3015_v39 = vmul.f32 %v3011_v31, %v6697_v4  ;;  %5315 = vrcp.f32 %v3002_v15  ;;  %v2973_v36 = vadd.f32 1.0, %v5306_v1 }
 0x397   : > { %v5310_v23 = vpop.eup %5309  ;;  %v3016_v2 = vmul.f32 %v3012_v46, %v6701_v37 }
 0x398   : > { %v5312_v62 = vpop.eup %5311  ;;  %5317 = vrcp.f32 %v2973_v36  ;;  %v3019_v18 = vmul.f32 %v5308_v56, %v3015_v39 }
 0x399   : > { %v5314_v5 = vpop.eup %5313  ;;  %v2974_v13 = vadd.f32 1.0, %v5312_v62  ;;  %v3020_v21 = vmul.f32 %v5310_v23, %v3016_v2 }
 0x39a   : > { %v3009_v7 = vmul.f32 2.0, %v5314_v5 }
 0x39b   : > { %5319 = vrcp.f32 %v2974_v13 }
 0x39c   : > { %v5316_v29 = vpop.eup %5315  ;;  %v3013_v25 = vsub.f32 1.0, %v3009_v7  ;;  %v3133_v7 = vld [vmem:[%s7415_s15] sm:$0xff] }
 0x39d   : > { %v3010_v38 = vmul.f32 2.0, %v5316_v29  ;;  %v694_v29 = vld [vmem:[%s7416_s16] sm:$0xff] }
 0x39e   : > { %v5318_v41 = vpop.eup %5317  ;;  %v3017_v34 = vmul.f32 %v3013_v25, %v6715_v47  ;;  %v3134_v25 = vld [vmem:[%s7415_s15 + $0x8] sm:$0xff] }
 0x39f   : > { %v3014_v4 = vsub.f32 1.0, %v3010_v38  ;;  %v695_v38 = vld [vmem:[%s7416_s16 + $0x8] sm:$0xff] }
 0x3a0   : > { %v3021_v54 = vmul.f32 %v5318_v41, %v3017_v34  ;;  %v697_v34 = vld [vmem:[%s7417_s17 + $0x8] sm:$0xff] }
 0x3a1   : > { %v5320_v22 = vpop.eup %5319  ;;  %v3018_v24 = vmul.f32 %v3014_v4, %v6719_v9  ;;  %v696_v4 = vld [vmem:[%s7417_s17] sm:$0xff] }
 0x3a2   : > { %v3025_v37 = vpack.c.bf16 %v3021_v54, %v3019_v18 }
 0x3a3   : > { %v3022_v51 = vmul.f32 %v5320_v22, %v3018_v24 }
 0x3a4   : > { %3054 = vmatpush.bf16.msrb.mxu2 %v3025_v37 }
 0x3a5   : > { %v3026_v50 = vpack.c.bf16 %v3022_v51, %v3020_v21 }
 0x3a7   : > { %3068 = vmatpush.bf16.msrb.mxu3 %v3026_v50  ;;  %5023 = vmatmul.msk.bf16.vlgmr.msrb.gmra.mxu2 %vm857_vm2, %v5186_v45 }
 0x3aa   : > { %5024 = vmatmul.msk.bf16.vlgmr.msrb.gmra.mxu3 %vm857_vm2, %v5186_v45 }
 0x42a   : > { %v3056_v47 = vpop.f32.mrf.mxu2 }
 0x42b   : > { %v3057_v61 = vadd.f32 %v3056_v47, %v3032_v59 }
 0x42d   : > { %v3075_v32 = vmin.f32 %v3057_v61, 30.0  ;;  %v3070_v11 = vpop.f32.mrf.mxu3 }
 0x42e   : > { %v3071_v20 = vadd.f32 %v3070_v11, %v3032_v59  ;;  %v7567_v11 = vld [vmem:[#allocation7_spill] sm:$0xff] }
 0x42f   : > { %v3079_v9 = vmul.f32 1.442695, %v3075_v32  ;;  %v5202_v59 = vld [vmem:[%s7420_s20 + $0x30] sm:$0xff] }
 0x430   : > { %v3076_v60 = vmin.f32 %v3071_v20, 30.0 }
 0x431   : > { %5321 = vpow2.f32 %v3079_v9  ;;  %v7568_v9 = vld [vmem:[#allocation8_spill] sm:$0xff] }
 0x432   : > { %v3081_v35 = vmul.f32 1.442695, %v3076_v60  ;;  %v3058_v16 = vpop.f32.mrf.mxu2 }
 0x433   : > { %v3059_v42 = vadd.f32 %v3058_v16, %v3037_v48 }
 0x434   : > { %5323 = vpow2.f32 %v3081_v35 }
 0x435   : > { %v3077_v26 = vmin.f32 %v3059_v42, 30.0  ;;  %v3072_v27 = vpop.f32.mrf.mxu3 }
 0x436   : > { %v3073_v14 = vadd.f32 %v3072_v27, %v3037_v48 }
 0x437   : > { %v5322_v6 = vpop.eup %5321  ;;  %v3083_v33 = vmul.f32 1.442695, %v3077_v26 }
 0x438   : > { %v3087_v57 = vadd.f32 1.0, %v5322_v6  ;;  %v3078_v52 = vmin.f32 %v3073_v14, 30.0 }
 0x439   : > { %5325 = vpow2.f32 %v3083_v33 }
 0x43a   : > { %v5324_v12 = vpop.eup %5323  ;;  %v3091_v0 = vmul.f32 %v3087_v57, %v3087_v57  ;;  %v3085_v17 = vmul.f32 1.442695, %v3078_v52 }
 0x43b   : > { %v3088_v58 = vadd.f32 1.0, %v5324_v12 }
 0x43c   : > { %v3095_v30 = vadd.f32 1.0, %v3091_v0  ;;  %5327 = vpow2.f32 %v3085_v17  ;;  %v7569_v0 = vld [vmem:[#allocation9_spill] sm:$0xff] }
 0x43d   : > { %v3092_v43 = vmul.f32 %v3088_v58, %v3088_v58  ;;  %v7570_v58 = vld [vmem:[#allocation10_spill] sm:$0xff] }
 0x43e   : > { %5329 = vrcp.f32 %v3095_v30 }
 0x43f   : > { %v5326_v3 = vpop.eup %5325  ;;  %v3096_v10 = vadd.f32 1.0, %v3092_v43 }
 0x440   : > { %v3089_v53 = vadd.f32 1.0, %v5326_v3 }
 0x441   : > { %5331 = vrcp.f32 %v3096_v10  ;;  %v5188_v10 = vld [vmem:[%s7414_s14 + $0x8] sm:$0xff] }
 0x442   : > { %v5328_v8 = vpop.eup %5327  ;;  %v3093_v28 = vmul.f32 %v3089_v53, %v3089_v53 }
 0x443   : > { %v3090_v19 = vadd.f32 1.0, %v5328_v8 }
 0x444   : > { %v5330_v44 = vpop.eup %5329  ;;  %v3097_v55 = vadd.f32 1.0, %v3093_v28 }
 0x445   : > { %v3103_v63 = vmul.f32 2.0, %v5330_v44  ;;  %v3094_v49 = vmul.f32 %v3090_v19, %v3090_v19  ;;  %v5187_v19 = vld [vmem:[%s7414_s14] sm:$0xff] }
 0x446   : > { %5333 = vrcp.f32 %v3097_v55 }
 0x447   : > { %v5332_v40 = vpop.eup %5331  ;;  %v3107_v31 = vsub.f32 1.0, %v3103_v63  ;;  %v3098_v15 = vadd.f32 1.0, %v3094_v49 }
 0x448   : > { %v3104_v1 = vmul.f32 2.0, %v5332_v40 }
 0x449   : > { %v6733_v46 = vmul.f32 %v3107_v31, %v3057_v61  ;;  %5335 = vrcp.f32 %v3098_v15 }
 0x44a   : > { %v3108_v56 = vsub.f32 1.0, %v3104_v1  ;;  %v7571_v1 = vld [vmem:[#allocation11_spill] sm:$0xff] }
 0x44b   : > { %3135 = vrot.lane.b32.xlu2 %v6733_v46, %s7558_s1  ;;  %3153 = vrot.lane.b32.xlu1 %v6733_v46, %s7559_s0 }
 0x44c   : > { %v6739_v39 = vmul.f32 %v3108_v56, %v3071_v20  ;;  %v5334_v36 = vpop.eup %5333 }
 0x44d   : > { %v3105_v2 = vmul.f32 2.0, %v5334_v36  ;;  %v7572_v36 = vld [vmem:[#allocation12_spill] sm:$0xff] }
 0x44e   : > { %3157 = vrot.lane.b32.xlu0 %v6739_v39, %s7559_s0 }
 0x44f   : > { %v5336_v23 = vpop.eup %5335  ;;  %v3109_v18 = vsub.f32 1.0, %v3105_v2 }
 0x450   : > { %v3106_v62 = vmul.f32 2.0, %v5336_v23 }
 0x451   : > { %v6749_v13 = vmul.f32 %v3109_v18, %v3059_v42 }
 0x452   : > { %v3110_v5 = vsub.f32 1.0, %v3106_v62 }
 0x453   : > { %3247 = vrot.lane.b32.xlu2 %v6739_v39, %s7560_s26  ;;  %3139 = vrot.lane.b32.xlu1 %v6739_v39, %s7558_s1 }
 0x454   : > { %v6751_v21 = vmul.f32 %v3110_v5, %v3073_v14 }
 0x456   : > { %3243 = vrot.lane.b32.xlu0 %v6733_v46, %s7560_s26 }
 0x45b   : > { %3155 = vrot.lane.b32.xlu2 %v6749_v13, %s7559_s0  ;;  %3159 = vrot.lane.b32.xlu1 %v6751_v21, %s7559_s0 }
 0x45e   : > { %3137 = vrot.lane.b32.xlu0 %v6749_v13, %s7558_s1 }
 0x463   : > { %3141 = vrot.lane.b32.xlu2 %v6751_v21, %s7558_s1  ;;  %3301 = vrot.lane.b32.xlu1 %v6733_v46, %s7561_s25 }
 0x466   : > { %3249 = vrot.lane.b32.xlu0 %v6751_v21, %s7560_s26 }
 0x46b   : > { %3401 = vrot.lane.b32.xlu2 %v6733_v46, %s7562_s29  ;;  %3245 = vrot.lane.b32.xlu1 %v6749_v13, %s7560_s26 }
 0x46e   : > { %3305 = vrot.lane.b32.xlu0 %v6739_v39, %s7561_s25 }
 0x473   : > { %3303 = vrot.lane.b32.xlu2 %v6749_v13, %s7561_s25  ;;  %3307 = vrot.lane.b32.xlu1 %v6751_v21, %s7561_s25 }
 0x476   : > { %3459 = vrot.lane.b32.xlu0 %v6733_v46, %s7563_s30 }
 0x47b   : > { %3463 = vrot.lane.b32.xlu2 %v6739_v39, %s7563_s30  ;;  %3405 = vrot.lane.b32.xlu1 %v6739_v39, %s7562_s29 }
 0x47e   : > { %3403 = vrot.lane.b32.xlu0 %v6749_v13, %s7562_s29 }
 0x483   : > { %3407 = vrot.lane.b32.xlu2 %v6751_v21, %s7562_s29  ;;  %3517 = vrot.lane.b32.xlu1 %v6733_v46, %s7564_s2 }
 0x486   : > { %3465 = vrot.lane.b32.xlu0 %v6751_v21, %s7563_s30 }
 0x48b   : > { %3575 = vrot.lane.b32.xlu2 %v6733_v46, %s7565_s24  ;;  %3461 = vrot.lane.b32.xlu1 %v6749_v13, %s7563_s30 }
 0x48e   : > { %3521 = vrot.lane.b32.xlu0 %v6739_v39, %s7564_s2 }
 0x493   : > { %3519 = vrot.lane.b32.xlu2 %v6749_v13, %s7564_s2  ;;  %3523 = vrot.lane.b32.xlu1 %v6751_v21, %s7564_s2 }
 0x496   : > { %3577 = vrot.lane.b32.xlu0 %v6749_v13, %s7565_s24 }
 0x49b   : > { %3581 = vrot.lane.b32.xlu2 %v6751_v21, %s7565_s24  ;;  %3579 = vrot.lane.b32.xlu1 %v6739_v39, %s7565_s24 }
 0x49e   : > { %3635 = vperm.xlu0 %5222, %v3133_v7  }
 0x4a3   : > { %3689 = vperm.xlu2 %5224, %v694_v29   ;;  %3640 = vperm.xlu1 %5223, %v3134_v25   ;;  %v3359_v29 = vpack.c.bf16 %v6749_v13, %v6733_v46  ;;  %v3360_v25 = vpack.c.bf16 %v6751_v21, %v6739_v39  ;;  %v7573_v46 = vld [vmem:[#allocation13_spill] sm:$0xff] }
 0x4a5   : > { %v3136_v41 = vpop.permute.xlu2 %3135 }
 0x4a6   : > { %3694 = vperm.xlu0 %5222, %v695_v38  }
 0x4ab   : > { %3708 = vperm.xlu2 %5224, %v697_v34   ;;  %3703 = vperm.xlu1 %5223, %v696_v4   ;;  %v5189_v34 = vld [vmem:[%s7414_s14 + $0x10] sm:$0xff] }
 0x4ad   : > { %v3248_v54 = vpop.permute.xlu2 %3247 }
 0x4b5   : > { %v3156_v22 = vpop.permute.xlu2 %3155 }
 0x4bd   : > { %v3154_v24 = vpop.permute.xlu1 %3153  ;;  %v3142_v51 = vpop.permute.xlu2 %3141 }
 0x4c0   : > { %v3158_v37 = vpop.permute.xlu0 %3157 }
 0x4c1   : > { %v3161_v47 = vsel %vm1175_vm3, %v3154_v24, %v3158_v37  ;;  %v3163_v61 = vsel %vm1175_vm3, %v3158_v37, %v3154_v24 }
 0x4c2   : > { %v3165_v20 = vmul.f32 %v3163_v61, %v7567_v11  ;;  %v3166_v60 = vmul.f32 %v3161_v47, %v7568_v9  ;;  %v5190_v61 = vld [vmem:[%s7414_s14 + $0x18] sm:$0xff] }
 0x4c5   : > { %v3140_v45 = vpop.permute.xlu1 %3139  ;;  %v6833_v16 = vpop.permute.xlu2 %3401 }
 0x4c6   : > { %v3143_v42 = vsel %vm1115_vm4, %v3136_v41, %v3140_v45  ;;  %v3145_v26 = vsel %vm1115_vm4, %v3140_v45, %v3136_v41 }
 0x4c7   : > { %v3147_v17 = vmul.f32 %v3145_v26, %v7569_v0  ;;  %v3148_v30 = vmul.f32 %v3143_v42, %v7570_v58  ;;  %v7575_v42 = vld [vmem:[#allocation15_spill] sm:$0xff] }
 0x4c8   : > { %v3244_v50 = vpop.permute.xlu0 %3243 }
 0x4c9   : > { %v3251_v63 = vsel %vm1511_vm5, %v3244_v50, %v3248_v54  ;;  %v3253_v49 = vsel %vm1511_vm5, %v3248_v54, %v3244_v50 }
 0x4ca   : > { %v3255_v56 = vmul.f32 %v3253_v49, %v7571_v1  ;;  %v3256_v23 = vmul.f32 %v3251_v63, %v7572_v36  ;;  %v7578_v49 = vld [vmem:[#allocation18_spill] sm:$0xff] }
 0x4cd   : > { %v3160_v32 = vpop.permute.xlu1 %3159  ;;  %v3304_v55 = vpop.permute.xlu2 %3303 }
 0x4ce   : > { %v3162_v48 = vsel %vm1175_vm3, %v3156_v22, %v3160_v32  ;;  %v3164_v35 = vsel %vm1175_vm3, %v3160_v32, %v3156_v22  ;;  %v7574_v22 = vld [vmem:[#allocation14_spill] sm:$0xff] }
 0x4cf   : > { %v3167_v27 = vmul.f32 %v3164_v35, %v7567_v11  ;;  %v3168_v14 = vmul.f32 %v3162_v48, %v7568_v9 }
 0x4d0   : > { %v3138_v6 = vpop.permute.xlu0 %3137 }
 0x4d1   : > { %v3144_v33 = vsel %vm1115_vm4, %v3138_v6, %v3142_v51  ;;  %v3146_v57 = vsel %vm1115_vm4, %v3142_v51, %v3138_v6  ;;  %v3169_v52 = vpack.c.bf16 %v3167_v27, %v3165_v20  ;;  %v3170_v12 = vpack.c.bf16 %v3168_v14, %v3166_v60  ;;  %v7576_v27 = vld [vmem:[#allocation16_spill] sm:$0xff] }
 0x4d2   : > { %v3149_v43 = vmul.f32 %v3146_v57, %v7569_v0  ;;  %v3150_v3 = vmul.f32 %v3144_v33, %v7570_v58 }
 0x4d3   : > { %3186 = vmatpush.bf16.msra.mxu0 %v3169_v52  ;;  %3200 = vmatpush.bf16.msra.mxu1 %v3170_v12 }
 0x4d4   : > { %v3151_v53 = vpack.c.bf16 %v3149_v43, %v3147_v17  ;;  %v3152_v8 = vpack.c.bf16 %v3150_v3, %v3148_v30 }
 0x4d5   : > { %v3302_v28 = vpop.permute.xlu1 %3301  ;;  %v3464_v38 = vpop.permute.xlu2 %3463 }
 0x4d6   : > { %3222 = vmatpush.bf16.msra.mxu2 %v3151_v53  ;;  %3236 = vmatpush.bf16.msra.mxu3 %v3152_v8 }
 0x4d7   : > { %5029 = vmatmul.msk.bf16.vlgmr.msra.gmra.mxu0 %vm857_vm2, %v5188_v10  ;;  %5030 = vmatmul.msk.bf16.vlgmr.msra.gmra.mxu1 %vm857_vm2, %v5188_v10  ;;  %v5192_v10 = vld [vmem:[%s7414_s14 + $0x28] sm:$0xff] }
 0x4d8   : > { %v3250_v44 = vpop.permute.xlu0 %3249 }
 0x4d9   : > { %5035 = vmatmul.msk.bf16.vlgmr.msra.gmra.mxu2 %vm857_vm2, %v5187_v19  ;;  %5036 = vmatmul.msk.bf16.vlgmr.msra.gmra.mxu3 %vm857_vm2, %v5187_v19 }
 0x4dd   : > { %v3246_v40 = vpop.permute.xlu1 %3245  ;;  %v3408_v32 = vpop.permute.xlu2 %3407 }
 0x4de   : > { %v3252_v31 = vsel %vm1511_vm5, %v3246_v40, %v3250_v44  ;;  %v3254_v15 = vsel %vm1511_vm5, %v3250_v44, %v3246_v40 }
 0x4df   : > { %v3257_v2 = vmul.f32 %v3254_v15, %v7571_v1  ;;  %v3258_v62 = vmul.f32 %v3252_v31, %v7572_v36 }
 0x4e0   : > { %v3306_v18 = vpop.permute.xlu0 %3305 }
 0x4e1   : > { %v3259_v5 = vpack.c.bf16 %v3257_v2, %v3255_v56  ;;  %v3260_v7 = vpack.c.bf16 %v3258_v62, %v3256_v23  ;;  %v3311_v41 = vsel %vm1721_vm6, %v3306_v18, %v3302_v28  ;;  %v3309_v4 = vsel %vm1721_vm6, %v3302_v28, %v3306_v18 }
 0x4e2   : > { %v3313_v13 = vmul.f32 %v3311_v41, %v7573_v46  ;;  %v3314_v24 = vmul.f32 %v3309_v4, %v7574_v22  ;;  %v7580_v4 = vld [vmem:[#allocation20_spill] sm:$0xff] }
 0x4e3   : > { %3276 = vmatpush.bf16.msrb.mxu0 %v3259_v5  ;;  %3290 = vmatpush.bf16.msrb.mxu1 %v3260_v7  ;;  %v5193_v5 = vld [vmem:[%s7414_s14 + $0x30] sm:$0xff] }
 0x4e5   : > { %v3308_v54 = vpop.permute.xlu1 %3307  ;;  %v3576_v43 = vpop.permute.xlu2 %3575 }
 0x4e6   : > { %v3310_v39 = vsel %vm1721_vm6, %v3304_v55, %v3308_v54  ;;  %v3312_v21 = vsel %vm1721_vm6, %v3308_v54, %v3304_v55  ;;  %v7577_v55 = vld [vmem:[#allocation17_spill] sm:$0xff] }
 0x4e7   : > { %3376 = vmatpush.bf16.msra.mxu0 %v3359_v29  ;;  %3390 = vmatpush.bf16.msra.mxu1 %v3360_v25  ;;  %v3315_v37 = vmul.f32 %v3312_v21, %v7573_v46  ;;  %v3316_v51 = vmul.f32 %v3310_v39, %v7574_v22  ;;  %v7579_v25 = vld [vmem:[#allocation19_spill] sm:$0xff] }
 0x4e8   : > { %5041 = vmatmul.msk.bf16.vlgmr.msrb.gmra.mxu0 %vm857_vm2, %v5189_v34  ;;  %5042 = vmatmul.msk.bf16.vlgmr.msrb.gmra.mxu1 %vm857_vm2, %v5189_v34  ;;  %v3460_v45 = vpop.permute.xlu0 %3459 }
 0x4e9   : > { %v3317_v50 = vpack.c.bf16 %v3315_v37, %v3313_v13  ;;  %v3318_v47 = vpack.c.bf16 %v3316_v51, %v3314_v24  ;;  %v3467_v53 = vsel %vm2297_vm8, %v3460_v45, %v3464_v38  ;;  %v3469_v8 = vsel %vm2297_vm8, %v3464_v38, %v3460_v45  ;;  %v5194_v51 = vld [vmem:[%s7414_s14 + $0x38] sm:$0xff] }
 0x4ea   : > { %v3471_v63 = vmul.f32 %v3467_v53, %v7577_v55  ;;  %v3472_v40 = vmul.f32 %v3469_v8, %v7578_v49 }
 0x4eb   : > { %3334 = vmatpush.bf16.msrb.mxu2 %v3317_v50  ;;  %3348 = vmatpush.bf16.msrb.mxu3 %v3318_v47 }
 0x4ed   : > { %v3406_v20 = vpop.permute.xlu1 %3405  ;;  %v3520_v23 = vpop.permute.xlu2 %3519 }
 0x4ee   : > { %v3409_v60 = vsel %vm2087_vm7, %v6833_v16, %v3406_v20  ;;  %v3411_v48 = vsel %vm2087_vm7, %v3406_v20, %v6833_v16  ;;  %5047 = vmatmul.msk.bf16.vlgmr.msrb.gmra.mxu2 %vm857_vm2, %v5190_v61  ;;  %5048 = vmatmul.msk.bf16.vlgmr.msrb.gmra.mxu3 %vm857_vm2, %v5190_v61  ;;  %v5191_v16 = vld [vmem:[%s7414_s14 + $0x20] sm:$0xff] }
 0x4ef   : > { %v3413_v26 = vmul.f32 %v3409_v60, %v7575_v42  ;;  %v3414_v14 = vmul.f32 %v3411_v48, %v7576_v27  ;;  %v7581_v60 = vld [vmem:[#allocation21_spill] sm:$0xff] }
 0x4f0   : > { %v3404_v35 = vpop.permute.xlu0 %3403 }
 0x4f1   : > { %v3410_v6 = vsel %vm2087_vm7, %v3404_v35, %v3408_v32  ;;  %v3412_v33 = vsel %vm2087_vm7, %v3408_v32, %v3404_v35  ;;  %v7582_v35 = vld [vmem:[#allocation22_spill] sm:$0xff] }
 0x4f2   : > { %v3415_v57 = vmul.f32 %v3410_v6, %v7575_v42  ;;  %v3416_v52 = vmul.f32 %v3412_v33, %v7576_v27 }
 0x4f4   : > { %v3417_v12 = vpack.c.bf16 %v3415_v57, %v3413_v26  ;;  %v3418_v17 = vpack.c.bf16 %v3416_v52, %v3414_v14  ;;  %v5195_v52 = vld [vmem:[%s7414_s14 + $0x40] sm:$0xff] }
 0x4f5   : > { %v3518_v30 = vpop.permute.xlu1 %3517  ;;  %v3582_v45 = vpop.permute.xlu2 %3581 }
 0x4f6   : > { %3434 = vmatpush.bf16.msra.mxu2 %v3417_v12  ;;  %3448 = vmatpush.bf16.msra.mxu3 %v3418_v17 }
 0x4f8   : > { %5053 = vmatmul.msk.bf16.vlgmr.msra.gmra.mxu0 %vm857_vm2, %v5191_v16  ;;  %5054 = vmatmul.msk.bf16.vlgmr.msra.gmra.mxu1 %vm857_vm2, %v5191_v16  ;;  %v3466_v3 = vpop.permute.xlu0 %3465 }
 0x4fd   : > { %v3462_v28 = vpop.permute.xlu1 %3461 }
 0x4fe   : > { %v3468_v19 = vsel %vm2297_vm8, %v3462_v28, %v3466_v3  ;;  %v3470_v44 = vsel %vm2297_vm8, %v3466_v3, %v3462_v28  ;;  %5059 = vmatmul.msk.bf16.vlgmr.msra.gmra.mxu2 %vm857_vm2, %v5192_v10  ;;  %5060 = vmatmul.msk.bf16.vlgmr.msra.gmra.mxu3 %vm857_vm2, %v5192_v10 }
 0x4ff   : > { %v3473_v31 = vmul.f32 %v3468_v19, %v7577_v55  ;;  %v3474_v15 = vmul.f32 %v3470_v44, %v7578_v49 }
 0x500   : > { %v3522_v56 = vpop.permute.xlu0 %3521 }
 0x501   : > { %v3475_v2 = vpack.c.bf16 %v3473_v31, %v3471_v63  ;;  %v3476_v62 = vpack.c.bf16 %v3474_v15, %v3472_v40  ;;  %v3525_v18 = vsel %vm2507_vm9, %v3518_v30, %v3522_v56  ;;  %v3527_v7 = vsel %vm2507_vm9, %v3522_v56, %v3518_v30 }
 0x502   : > { %v3529_v38 = vmul.f32 %v3525_v18, %v7579_v25  ;;  %v3530_v54 = vmul.f32 %v3527_v7, %v7580_v4 }
 0x503   : > { %3492 = vmatpush.bf16.msrb.mxu0 %v3475_v2  ;;  %3506 = vmatpush.bf16.msrb.mxu1 %v3476_v62 }
 0x505   : > { %v3524_v29 = vpop.permute.xlu1 %3523 }
 0x506   : > { %v3526_v41 = vsel %vm2507_vm9, %v3520_v23, %v3524_v29  ;;  %v3528_v34 = vsel %vm2507_vm9, %v3524_v29, %v3520_v23 }
 0x507   : > { %v3531_v13 = vmul.f32 %v3526_v41, %v7579_v25  ;;  %v3532_v39 = vmul.f32 %v3528_v34, %v7580_v4 }
 0x508   : > { %5065 = vmatmul.msk.bf16.vlgmr.msrb.gmra.mxu0 %vm857_vm2, %v5193_v5  ;;  %5066 = vmatmul.msk.bf16.vlgmr.msrb.gmra.mxu1 %vm857_vm2, %v5193_v5  ;;  %v3578_v21 = vpop.permute.xlu0 %3577 }
 0x509   : > { %v3533_v24 = vpack.c.bf16 %v3531_v13, %v3529_v38  ;;  %v3534_v37 = vpack.c.bf16 %v3532_v39, %v3530_v54  ;;  %v3584_v50 = vsel %vm2717_vm10, %v3578_v21, %v3582_v45  ;;  %v3586_v47 = vsel %vm2717_vm10, %v3582_v45, %v3578_v21 }
 0x50a   : > { %v3589_v48 = vmul.f32 %v3584_v50, %v7581_v60  ;;  %v3590_v26 = vmul.f32 %v3586_v47, %v7582_v35 }
 0x50b   : > { %3550 = vmatpush.bf16.msrb.mxu2 %v3533_v24  ;;  %3564 = vmatpush.bf16.msrb.mxu3 %v3534_v37 }
 0x50d   : > { %v3580_v61 = vpop.permute.xlu1 %3579 }
 0x50e   : > { %v3583_v32 = vsel %vm2717_vm10, %v3576_v43, %v3580_v61  ;;  %v3585_v20 = vsel %vm2717_vm10, %v3580_v61, %v3576_v43  ;;  %5071 = vmatmul.msk.bf16.vlgmr.msrb.gmra.mxu2 %vm857_vm2, %v5194_v51  ;;  %5072 = vmatmul.msk.bf16.vlgmr.msrb.gmra.mxu3 %vm857_vm2, %v5194_v51 }
 0x50f   : > { %v3587_v14 = vmul.f32 %v3583_v32, %v7581_v60  ;;  %v3588_v6 = vmul.f32 %v3585_v20, %v7582_v35 }
 0x511   : > { %v3591_v33 = vpack.c.bf16 %v3589_v48, %v3587_v14  ;;  %v3592_v57 = vpack.c.bf16 %v3590_v26, %v3588_v6 }
 0x513   : > { %3608 = vmatpush.bf16.msra.mxu0 %v3591_v33  ;;  %3622 = vmatpush.bf16.msra.mxu1 %v3592_v57 }
 0x518   : > { %5077 = vmatmul.msk.bf16.vlgmr.msra.gmra.mxu0 %vm857_vm2, %v5195_v52  ;;  %5078 = vmatmul.msk.bf16.vlgmr.msra.gmra.mxu1 %vm857_vm2, %v5195_v52 }
 0x554   : > { %v3188_v16 = vpop.f32.mrf.mxu0  ;;  %v3202_v12 = vpop.f32.mrf.mxu1 }
 0x55c   : > { %v3190_v17 = vpop.f32.mrf.mxu0  ;;  %v3204_v30 = vpop.f32.mrf.mxu1 }
 0x55d   : > { %v3224_v43 = vpop.f32.mrf.mxu2  ;;  %v3238_v3 = vpop.f32.mrf.mxu3 }
 0x55e   : > { %v3225_v7 = vadd.f32 %v3224_v43, %v3188_v16  ;;  %v3239_v29 = vadd.f32 %v3238_v3, %v3202_v12 }
 0x565   : > { %v3278_v10 = vpop.f32.mrf.mxu0  ;;  %v3292_v53 = vpop.f32.mrf.mxu1 }
 0x566   : > { %v3226_v8 = vpop.f32.mrf.mxu2  ;;  %v3240_v28 = vpop.f32.mrf.mxu3  ;;  %v3297_v38 = vadd.f32 %v3278_v10, %v3225_v7  ;;  %v3298_v41 = vadd.f32 %v3292_v53, %v3239_v29 }
 0x567   : > { %v3227_v37 = vadd.f32 %v3226_v8, %v3190_v17  ;;  %v3241_v51 = vadd.f32 %v3240_v28, %v3204_v30 }
 0x56d   : > { %v3280_v19 = vpop.f32.mrf.mxu0  ;;  %v3294_v44 = vpop.f32.mrf.mxu1 }
 0x56e   : > { %v3299_v47 = vadd.f32 %v3280_v19, %v3227_v37  ;;  %v3300_v61 = vadd.f32 %v3294_v44, %v3241_v51  ;;  %v3636_v44 = vpop.permute.xlu0 %3635 }
 0x571   : > { %v3336_v63 = vpop.f32.mrf.mxu2  ;;  %v3350_v40 = vpop.f32.mrf.mxu3 }
 0x572   : > { %v3355_v13 = vadd.f32 %v3336_v63, %v3297_v38  ;;  %v3356_v39 = vadd.f32 %v3350_v40, %v3298_v41 }
 0x575   : > { %v3378_v31 = vpop.f32.mrf.mxu0  ;;  %v3392_v15 = vpop.f32.mrf.mxu1 }
 0x576   : > { %v3397_v45 = vadd.f32 %v3378_v31, %v3355_v13  ;;  %v3398_v50 = vadd.f32 %v3392_v15, %v3356_v39  ;;  %v3641_v13 = vpop.permute.xlu1 %3640 }
 0x579   : > { %v3338_v56 = vpop.f32.mrf.mxu2  ;;  %v3352_v23 = vpop.f32.mrf.mxu3 }
 0x57a   : > { %v3357_v14 = vadd.f32 %v3338_v56, %v3299_v47  ;;  %v3358_v6 = vadd.f32 %v3352_v23, %v3300_v61 }
 0x57d   : > { %v3380_v2 = vpop.f32.mrf.mxu0  ;;  %v3394_v62 = vpop.f32.mrf.mxu1 }
 0x57e   : > { %v3399_v12 = vadd.f32 %v3380_v2, %v3357_v14  ;;  %v3400_v43 = vadd.f32 %v3394_v62, %v3358_v6 }
 0x581   : > { %v3436_v18 = vpop.f32.mrf.mxu2  ;;  %v3450_v5 = vpop.f32.mrf.mxu3 }
 0x582   : > { %v3455_v32 = vadd.f32 %v3436_v18, %v3397_v45  ;;  %v3456_v20 = vadd.f32 %v3450_v5, %v3398_v50 }
 0x585   : > { %v3494_v34 = vpop.f32.mrf.mxu0  ;;  %v3508_v54 = vpop.f32.mrf.mxu1 }
 0x586   : > { %v3513_v33 = vadd.f32 %v3494_v34, %v3455_v32  ;;  %v3514_v57 = vadd.f32 %v3508_v54, %v3456_v20 }
 0x589   : > { %v3438_v21 = vpop.f32.mrf.mxu2  ;;  %v3452_v24 = vpop.f32.mrf.mxu3 }
 0x58a   : > { %v3457_v17 = vadd.f32 %v3438_v21, %v3399_v12  ;;  %v3458_v30 = vadd.f32 %v3452_v24, %v3400_v43 }
 0x58d   : > { %v3496_v48 = vpop.f32.mrf.mxu0  ;;  %v3510_v26 = vpop.f32.mrf.mxu1 }
 0x58e   : > { %v3515_v63 = vadd.f32 %v3496_v48, %v3457_v17  ;;  %v3516_v40 = vadd.f32 %v3510_v26, %v3458_v30 }
 0x591   : > { %v3552_v52 = vpop.f32.mrf.mxu2  ;;  %v3566_v16 = vpop.f32.mrf.mxu3 }
 0x592   : > { %v3571_v3 = vadd.f32 %v3552_v52, %v3513_v33  ;;  %v3572_v10 = vadd.f32 %v3566_v16, %v3514_v57 }
 0x595   : > { %v3610_v53 = vpop.f32.mrf.mxu0  ;;  %v3624_v8 = vpop.f32.mrf.mxu1 }
 0x596   : > { %v3629_v28 = vadd.f32 %v3610_v53, %v3571_v3  ;;  %v3630_v19 = vadd.f32 %v3624_v8, %v3572_v10  ;;  %v6972_v3 = vpop.permute.xlu2 %3689  ;;  %v6974_v8 = vpop.permute.xlu1 %3703 }
 0x598   : > { %v3643_v31 = vadd.f32 %v3636_v44, %v3629_v28  ;;  %v3644_v15 = vadd.f32 %v3636_v44, %v3630_v19  ;;  %v7583_v44 = vld [vmem:[#allocation2_spill] sm:$0xff] }
 0x599   : > { %v3554_v56 = vpop.f32.mrf.mxu2  ;;  %v3568_v23 = vpop.f32.mrf.mxu3 }
 0x59a   : > { %v3647_v18 = vmin.f32 %v3643_v31, 30.0  ;;  %v3648_v5 = vmin.f32 %v3644_v15, 30.0  ;;  %v3573_v7 = vadd.f32 %v3554_v56, %v3515_v63  ;;  %v3574_v2 = vadd.f32 %v3568_v23, %v3516_v40  ;;  %v7584_v56 = vld [vmem:[#allocation4_spill] sm:$0xff] }
 0x59b   : > { %v3697_v63 = vmul.f32 %v6972_v3, %v7583_v44  ;;  %v3698_v23 = vmul.f32 %v6972_v3, %v7584_v56 }
 0x59c   : > { %v3651_v62 = vmul.f32 1.442695, %v3647_v18  ;;  %v3653_v29 = vmul.f32 1.442695, %v3648_v5 }
 0x59d   : > { %v3612_v38 = vpop.f32.mrf.mxu0  ;;  %v3626_v41 = vpop.f32.mrf.mxu1  ;;  %v3711_v5 = vadd.f32 %v6974_v8, %v3697_v63 }
 0x59e   : > { %5337 = vpow2.f32 %v3651_v62  ;;  %v3631_v34 = vadd.f32 %v3612_v38, %v3573_v7  ;;  %v3632_v54 = vadd.f32 %v3626_v41, %v3574_v2  ;;  %v6981_v7 = vpop.permute.xlu0 %3694  ;;  %v3712_v62 = vadd.f32 %v6974_v8, %v3698_v23 }
 0x59f   : > { %5339 = vpow2.f32 %v3653_v29 }
 0x5a0   : > { %v3645_v39 = vadd.f32 %v3641_v13, %v3631_v34  ;;  %v3646_v21 = vadd.f32 %v3641_v13, %v3632_v54 }
 0x5a2   : > { %v3649_v24 = vmin.f32 %v3645_v39, 30.0  ;;  %v3650_v37 = vmin.f32 %v3646_v21, 30.0 }
 0x5a4   : > { %v5338_v51 = vpop.eup %5337  ;;  %v3655_v45 = vmul.f32 1.442695, %v3649_v24  ;;  %v3657_v50 = vmul.f32 1.442695, %v3650_v37  ;;  %v7585_v24 = vld [vmem:[#allocation3_spill] sm:$0xff] }
 0x5a5   : > { %v5340_v47 = vpop.eup %5339  ;;  %v3659_v61 = vadd.f32 1.0, %v5338_v51  ;;  %v3699_v37 = vmul.f32 %v6981_v7, %v7585_v24 }
 0x5a6   : > { %v3660_v32 = vadd.f32 1.0, %v5340_v47  ;;  %5341 = vpow2.f32 %v3655_v45  ;;  %v7586_v45 = vld [vmem:[#allocation5_spill] sm:$0xff] }
 0x5a7   : > { %v3663_v20 = vmul.f32 %v3659_v61, %v3659_v61  ;;  %5343 = vpow2.f32 %v3657_v50  ;;  %v3700_v50 = vmul.f32 %v6981_v7, %v7586_v45  ;;  %v6991_v61 = vpop.permute.xlu2 %3708 }
 0x5a8   : > { %v3664_v48 = vmul.f32 %v3660_v32, %v3660_v32 }
 0x5a9   : > { %v3667_v26 = vadd.f32 1.0, %v3663_v20 }
 0x5aa   : > { %v3668_v14 = vadd.f32 1.0, %v3664_v48 }
 0x5ab   : > { %5345 = vrcp.f32 %v3667_v26 }
 0x5ac   : > { %v5342_v6 = vpop.eup %5341  ;;  %5347 = vrcp.f32 %v3668_v14  ;;  %v3713_v14 = vadd.f32 %v6991_v61, %v3699_v37 }
 0x5ad   : > { %v5344_v33 = vpop.eup %5343  ;;  %v3661_v57 = vadd.f32 1.0, %v5342_v6 }
 0x5ae   : > { %v3662_v52 = vadd.f32 1.0, %v5344_v33 }
 0x5af   : > { %v3665_v16 = vmul.f32 %v3661_v57, %v3661_v57  ;;  %v3714_v57 = vadd.f32 %v6991_v61, %v3700_v50 }
 0x5b0   : > { %v3666_v12 = vmul.f32 %v3662_v52, %v3662_v52 }
 0x5b1   : > { %v5346_v43 = vpop.eup %5345  ;;  %v3669_v10 = vadd.f32 1.0, %v3665_v16 }
 0x5b2   : > { %v5348_v17 = vpop.eup %5347  ;;  %v3675_v30 = vmul.f32 2.0, %v5346_v43  ;;  %v3670_v53 = vadd.f32 1.0, %v3666_v12 }
 0x5b3   : > { %v3676_v28 = vmul.f32 2.0, %v5348_v17  ;;  %5349 = vrcp.f32 %v3669_v10 }
 0x5b4   : > { %v3679_v19 = vsub.f32 1.0, %v3675_v30  ;;  %5351 = vrcp.f32 %v3670_v53  ;;  %v3740_v30 = vld [vmem:[%s7419_s19] sm:$0xff] }
 0x5b5   : > { %v3680_v40 = vsub.f32 1.0, %v3676_v28 }
 0x5b6   : > { %v3683_v18 = vmul.f32 %v3679_v19, %v3643_v31 }
 0x5b7   : > { %v3684_v2 = vmul.f32 %v3680_v40, %v3644_v15 }
 0x5b8   : > { %v3715_v29 = vadd.f32 %v3711_v5, %v3683_v18 }
 0x5b9   : > { %v5350_v38 = vpop.eup %5349  ;;  %v3716_v41 = vadd.f32 %v3712_v62, %v3684_v2 }
 0x5ba   : > { %v5352_v34 = vpop.eup %5351  ;;  %v3719_v54 = vmul.f32 %v3715_v29, %v6972_v3  ;;  %v3677_v13 = vmul.f32 2.0, %v5350_v38 }
 0x5bb   : > { %v3720_v51 = vmul.f32 %v3716_v41, %v6972_v3  ;;  %v3678_v31 = vmul.f32 2.0, %v5352_v34 }
 0x5bc   : > { %v3723_v15 = vadd.f32 %v3719_v54, %v7583_v44  ;;  %v3681_v47 = vsub.f32 1.0, %v3677_v13  ;;  %v3732_v13 = vld [vmem:[%s7418_s18 + $0x4] sm:$0xf] }
 0x5bd   : > { %v3724_v32 = vadd.f32 %v3720_v51, %v7584_v56  ;;  %v3682_v20 = vsub.f32 1.0, %v3678_v31 }
 0x5be   : > { %v6995_v48 = vadd.f32 %v3723_v15, %v6974_v8  ;;  %v3685_v26 = vmul.f32 %v3681_v47, %v3645_v39 }
 0x5bf   : > { %v6999_v6 = vadd.f32 %v3724_v32, %v6974_v8  ;;  %v3686_v33 = vmul.f32 %v3682_v20, %v3646_v21 }
 0x5c0   : > { %v3717_v52 = vadd.f32 %v3713_v14, %v3685_v26  ;;  %3835 = vrot.lane.b32.xlu1 %v6995_v48, %s7560_s26  ;;  %3759 = vrot.lane.b32.xlu0 %v6995_v48, %s7559_s0 }
 0x5c1   : > { %v3718_v16 = vadd.f32 %v3714_v57, %v3686_v33  ;;  %3763 = vrot.lane.b32.xlu2 %v6999_v6, %s7559_s0 }
 0x5c2   : > { %v3721_v39 = vmul.f32 %v3717_v52, %v6981_v7 }
 0x5c3   : > { %v3722_v12 = vmul.f32 %v3718_v16, %v6981_v7 }
 0x5c4   : > { %v3725_v43 = vadd.f32 %v3721_v39, %v7585_v24 }
 0x5c5   : > { %v3726_v21 = vadd.f32 %v3722_v12, %v7586_v45 }
 0x5c6   : > { %v7013_v10 = vadd.f32 %v3725_v43, %v6991_v61  ;;  %v3733_v43 = vld [vmem:[%s7418_s18 + $0x8] sm:$0xf] }
 0x5c7   : > { %v7016_v17 = vadd.f32 %v3726_v21, %v6991_v61 }
 0x5c8   : > { %3761 = vrot.lane.b32.xlu1 %v7013_v10, %s7559_s0  ;;  %v3933_v16 = vpack.c.bf16 %v7013_v10, %v6995_v48 }
 0x5c9   : > { %3741 = vrot.lane.b32.xlu2 %v6995_v48, %s7558_s1  ;;  %3765 = vrot.lane.b32.xlu0 %v7016_v17, %s7559_s0  ;;  %v3934_v39 = vpack.c.bf16 %v7016_v17, %v6999_v6 }
 0x5d0   : > { %3745 = vrot.lane.b32.xlu1 %v6999_v6, %s7558_s1 }
 0x5d1   : > { %3839 = vrot.lane.b32.xlu0 %v6999_v6, %s7560_s26  ;;  %3837 = vrot.lane.b32.xlu2 %v7013_v10, %s7560_s26 }
 0x5d8   : > { %3841 = vrot.lane.b32.xlu1 %v7016_v17, %s7560_s26 }
 0x5d9   : > { %3884 = vrot.lane.b32.xlu0 %v6995_v48, %s7561_s25  ;;  %3747 = vrot.lane.b32.xlu2 %v7016_v17, %s7558_s1 }
 0x5e0   : > { %4015 = vrot.lane.b32.xlu1 %v6995_v48, %s7563_s30 }
 0x5e1   : > { %3743 = vrot.lane.b32.xlu0 %v7013_v10, %s7558_s1  ;;  %3888 = vrot.lane.b32.xlu2 %v6999_v6, %s7561_s25 }
 0x5e8   : > { %3970 = vrot.lane.b32.xlu1 %v6999_v6, %s7562_s29 }
 0x5e9   : > { %4019 = vrot.lane.b32.xlu0 %v6999_v6, %s7563_s30  ;;  %3966 = vrot.lane.b32.xlu2 %v6995_v48, %s7562_s29 }
 0x5f0   : > { %3886 = vrot.lane.b32.xlu1 %v7013_v10, %s7561_s25 }
 0x5f1   : > { %3890 = vrot.lane.b32.xlu0 %v7016_v17, %s7561_s25  ;;  %4017 = vrot.lane.b32.xlu2 %v7013_v10, %s7563_s30 }
 0x5f8   : > { %4021 = vrot.lane.b32.xlu1 %v7016_v17, %s7563_s30 }
 0x5f9   : > { %4113 = vrot.lane.b32.xlu0 %v6995_v48, %s7565_s24  ;;  %3972 = vrot.lane.b32.xlu2 %v7016_v17, %s7562_s29 }
 0x600   : > { %4064 = vrot.lane.b32.xlu1 %v6995_v48, %s7564_s2 }
 0x601   : > { %3968 = vrot.lane.b32.xlu0 %v7013_v10, %s7562_s29  ;;  %4117 = vrot.lane.b32.xlu2 %v6999_v6, %s7565_s24 }
 0x608   : > { %4115 = vrot.lane.b32.xlu1 %v7013_v10, %s7565_s24 }
 0x609   : > { %4119 = vrot.lane.b32.xlu0 %v7016_v17, %s7565_s24  ;;  %4066 = vrot.lane.b32.xlu2 %v7013_v10, %s7564_s2 }
 0x610   : > { %4070 = vrot.lane.b32.xlu1 %v7016_v17, %s7564_s2 }
 0x611   : > { %4068 = vrot.lane.b32.xlu0 %v6999_v6, %s7564_s2  ;;  %4164 = vperm.xlu2 %5224, %v3740_v30  }
 0x61b   : > { %v3764_v53 = vpop.permute.xlu2 %3763 }
 0x623   : > { %v3742_v28 = vpop.permute.xlu2 %3741 }
 0x62b   : > { %v3838_v18 = vpop.permute.xlu2 %3837 }
 0x632   : > { %v3836_v19 = vpop.permute.xlu1 %3835  ;;  %v3760_v44 = vpop.permute.xlu0 %3759 }
 0x633   : > { %v3767_v63 = vsel %vm1175_vm3, %v3760_v44, %v3764_v53  ;;  %v3769_v40 = vsel %vm1175_vm3, %v3764_v53, %v3760_v44  ;;  %v3748_v51 = vpop.permute.xlu2 %3747 }
 0x634   : > { %v3771_v62 = vmul.f32 %v3769_v40, %v7567_v11  ;;  %v3772_v29 = vmul.f32 %v3767_v63, %v7568_v9 }
 0x63a   : > { %v3762_v56 = vpop.permute.xlu1 %3761 }
 0x63b   : > { %v3766_v23 = vpop.permute.xlu0 %3765  ;;  %v3889_v12 = vpop.permute.xlu2 %3888 }
 0x63c   : > { %v3768_v5 = vsel %vm1175_vm3, %v3762_v56, %v3766_v23  ;;  %v3770_v2 = vsel %vm1175_vm3, %v3766_v23, %v3762_v56 }
 0x63d   : > { %v3773_v38 = vmul.f32 %v3770_v2, %v7567_v11  ;;  %v3774_v41 = vmul.f32 %v3768_v5, %v7568_v9  ;;  %v3731_v2 = vld [vmem:[%s7418_s18] sm:$0xf] }
 0x63f   : > { %v3775_v34 = vpack.c.bf16 %v3773_v38, %v3771_v62  ;;  %v3776_v54 = vpack.c.bf16 %v3774_v41, %v3772_v29  ;;  %v3735_v41 = vld [vmem:[%s7418_s18 + $0x10] sm:$0xf] }
 0x641   : > { %3787 = vmatpush.bf16.msra.mxu2 %v3775_v34  ;;  %3800 = vmatpush.bf16.msra.mxu3 %v3776_v54 }
 0x642   : > { %v3746_v24 = vpop.permute.xlu1 %3745 }
 0x643   : > { %v3840_v37 = vpop.permute.xlu0 %3839  ;;  %v3749_v21 = vsel %vm1115_vm4, %v3742_v28, %v3746_v24  ;;  %v3751_v30 = vsel %vm1115_vm4, %v3746_v24, %v3742_v28  ;;  %v3967_v62 = vpop.permute.xlu2 %3966 }
 0x644   : > { %5079 = vmatmul.msk.bf16.vlgmr.msra.gmra.mxu2 %vm857_vm2, %v3732_v13  ;;  %5080 = vmatmul.msk.bf16.vlgmr.msra.gmra.mxu3 %vm857_vm2, %v3732_v13  ;;  %v3843_v31 = vsel %vm1511_vm5, %v3836_v19, %v3840_v37  ;;  %v3845_v45 = vsel %vm1511_vm5, %v3840_v37, %v3836_v19  ;;  %v3753_v40 = vmul.f32 %v3751_v30, %v7569_v0 }
 0x645   : > { %v3847_v20 = vmul.f32 %v3845_v45, %v7571_v1  ;;  %v3848_v26 = vmul.f32 %v3843_v31, %v7572_v36  ;;  %v3754_v56 = vmul.f32 %v3749_v21, %v7570_v58 }
 0x64a   : > { %v3842_v50 = vpop.permute.xlu1 %3841 }
 0x64b   : > { %v3885_v15 = vpop.permute.xlu0 %3884  ;;  %v3844_v47 = vsel %vm1511_vm5, %v3838_v18, %v3842_v50  ;;  %v3846_v32 = vsel %vm1511_vm5, %v3842_v50, %v3838_v18  ;;  %v4018_v37 = vpop.permute.xlu2 %4017 }
 0x64c   : > { %v3849_v14 = vmul.f32 %v3846_v32, %v7571_v1  ;;  %v3850_v33 = vmul.f32 %v3844_v47, %v7572_v36  ;;  %v3892_v34 = vsel %vm1721_vm6, %v3885_v15, %v3889_v12  ;;  %v3894_v54 = vsel %vm1721_vm6, %v3889_v12, %v3885_v15 }
 0x64d   : > { %v3896_v45 = vmul.f32 %v3894_v54, %v7573_v46  ;;  %v3897_v50 = vmul.f32 %v3892_v34, %v7574_v22 }
 0x64e   : > { %v3851_v57 = vpack.c.bf16 %v3849_v14, %v3847_v20  ;;  %v3852_v52 = vpack.c.bf16 %v3850_v33, %v3848_v26  ;;  %v3734_v33 = vld [vmem:[%s7418_s18 + $0xc] sm:$0xf] }
 0x650   : > { %3863 = vmatpush.bf16.msrb.mxu2 %v3851_v57  ;;  %3876 = vmatpush.bf16.msrb.mxu3 %v3852_v52 }
 0x652   : > { %v4016_v53 = vpop.permute.xlu1 %4015 }
 0x653   : > { %v3744_v19 = vpop.permute.xlu0 %3743 }
 0x654   : > { %3945 = vmatpush.bf16.msra.mxu2 %v3933_v16  ;;  %3958 = vmatpush.bf16.msra.mxu3 %v3934_v39  ;;  %v3750_v44 = vsel %vm1115_vm4, %v3744_v19, %v3748_v51  ;;  %v3752_v63 = vsel %vm1115_vm4, %v3748_v51, %v3744_v19 }
 0x655   : > { %5083 = vmatmul.msk.bf16.vlgmr.msrb.gmra.mxu2 %vm857_vm2, %v3733_v43  ;;  %v3755_v23 = vmul.f32 %v3752_v63, %v7569_v0  ;;  %v3756_v18 = vmul.f32 %v3750_v44, %v7570_v58  ;;  %5084 = vmatmul.msk.bf16.vlgmr.msrb.gmra.mxu3 %vm857_vm2, %v3733_v43  ;;  %v3737_v63 = vld [vmem:[%s7418_s18 + $0x18] sm:$0xf] }
 0x657   : > { %v3757_v28 = vpack.c.bf16 %v3755_v23, %v3753_v40  ;;  %v3758_v5 = vpack.c.bf16 %v3756_v18, %v3754_v56 }
 0x659   : > { %3816 = vmatpush.bf16.msrb.mxu0 %v3757_v28  ;;  %3829 = vmatpush.bf16.msrb.mxu1 %v3758_v5 }
 0x65a   : > { %v3971_v29 = vpop.permute.xlu1 %3970 }
 0x65b   : > { %v4020_v38 = vpop.permute.xlu0 %4019  ;;  %v3974_v40 = vsel %vm2087_vm7, %v3967_v62, %v3971_v29  ;;  %v3976_v56 = vsel %vm2087_vm7, %v3971_v29, %v3967_v62 }
 0x65c   : > { %5081 = vmatmul.msk.bf16.vlgmr.msrb.gmra.mxu0 %vm857_vm2, %v3731_v2  ;;  %5082 = vmatmul.msk.bf16.vlgmr.msrb.gmra.mxu1 %vm857_vm2, %v3731_v2  ;;  %v4023_v26 = vsel %vm2297_vm8, %v4016_v53, %v4020_v38  ;;  %v4025_v14 = vsel %vm2297_vm8, %v4020_v38, %v4016_v53  ;;  %v3973_v53 = vpop.permute.xlu2 %3972  ;;  %v3978_v2 = vmul.f32 %v3974_v40, %v7575_v42 }
 0x65d   : > { %v4027_v12 = vmul.f32 %v4023_v26, %v7577_v55  ;;  %v4028_v43 = vmul.f32 %v4025_v14, %v7578_v49  ;;  %v3979_v38 = vmul.f32 %v3976_v56, %v7576_v27  ;;  %v3738_v56 = vld [vmem:[%s7418_s18 + $0x1c] sm:$0xf] }
 0x662   : > { %v3887_v13 = vpop.permute.xlu1 %3886 }
 0x663   : > { %v3891_v24 = vpop.permute.xlu0 %3890 }
 0x664   : > { %v3893_v51 = vsel %vm1721_vm6, %v3887_v13, %v3891_v24  ;;  %v3895_v31 = vsel %vm1721_vm6, %v3891_v24, %v3887_v13  ;;  %v4118_v54 = vpop.permute.xlu2 %4117  ;;  %v3736_v13 = vld [vmem:[%s7418_s18 + $0x14] sm:$0xf] }
 0x665   : > { %5087 = vmatmul.msk.bf16.vlgmr.msra.gmra.mxu2 %vm857_vm2, %v3735_v41  ;;  %v3898_v47 = vmul.f32 %v3895_v31, %v7573_v46  ;;  %v3899_v32 = vmul.f32 %v3893_v51, %v7574_v22  ;;  %5088 = vmatmul.msk.bf16.vlgmr.msra.gmra.mxu3 %vm857_vm2, %v3735_v41 }
 0x667   : > { %v3900_v15 = vpack.c.bf16 %v3898_v47, %v3896_v45  ;;  %v3901_v20 = vpack.c.bf16 %v3899_v32, %v3897_v50 }
 0x669   : > { %3912 = vmatpush.bf16.msra.mxu0 %v3900_v15  ;;  %3925 = vmatpush.bf16.msra.mxu1 %v3901_v20 }
 0x66a   : > { %v4022_v57 = vpop.permute.xlu1 %4021 }
 0x66b   : > { %v4114_v52 = vpop.permute.xlu0 %4113  ;;  %v4024_v16 = vsel %vm2297_vm8, %v4018_v37, %v4022_v57  ;;  %v4026_v39 = vsel %vm2297_vm8, %v4022_v57, %v4018_v37 }
 0x66c   : > { %v4029_v21 = vmul.f32 %v4024_v16, %v7577_v55  ;;  %v4030_v30 = vmul.f32 %v4026_v39, %v7578_v49  ;;  %5085 = vmatmul.msk.bf16.vlgmr.msra.gmra.mxu0 %vm857_vm2, %v3734_v33  ;;  %5086 = vmatmul.msk.bf16.vlgmr.msra.gmra.mxu1 %vm857_vm2, %v3734_v33  ;;  %v4121_v24 = vsel %vm2717_vm10, %v4114_v52, %v4118_v54  ;;  %v3739_v33 = vld [vmem:[%s7418_s18 + $0x20] sm:$0xf]  ;;  %v4067_v57 = vpop.permute.xlu2 %4066 }
 0x66d   : > { %v4123_v37 = vsel %vm2717_vm10, %v4118_v54, %v4114_v52  ;;  %v4125_v47 = vmul.f32 %v4121_v24, %v7581_v60 }
 0x66e   : > { %v4031_v19 = vpack.c.bf16 %v4029_v21, %v4027_v12  ;;  %v4032_v44 = vpack.c.bf16 %v4030_v30, %v4028_v43  ;;  %v4126_v32 = vmul.f32 %v4123_v37, %v7582_v35 }
 0x670   : > { %4043 = vmatpush.bf16.msrb.mxu2 %v4031_v19  ;;  %4056 = vmatpush.bf16.msrb.mxu3 %v4032_v44 }
 0x672   : > { %v4065_v23 = vpop.permute.xlu1 %4064 }
 0x673   : > { %v3969_v18 = vpop.permute.xlu0 %3968 }
 0x674   : > { %v3975_v28 = vsel %vm2087_vm7, %v3969_v18, %v3973_v53  ;;  %v3977_v5 = vsel %vm2087_vm7, %v3973_v53, %v3969_v18 }
 0x675   : > { %5091 = vmatmul.msk.bf16.vlgmr.msrb.gmra.mxu2 %vm857_vm2, %v3737_v63  ;;  %v3980_v41 = vmul.f32 %v3975_v28, %v7575_v42  ;;  %v3981_v34 = vmul.f32 %v3977_v5, %v7576_v27  ;;  %5092 = vmatmul.msk.bf16.vlgmr.msrb.gmra.mxu3 %vm857_vm2, %v3737_v63 }
 0x677   : > { %v3982_v62 = vpack.c.bf16 %v3980_v41, %v3978_v2  ;;  %v3983_v29 = vpack.c.bf16 %v3981_v34, %v3979_v38 }
 0x679   : > { %3994 = vmatpush.bf16.msrb.mxu0 %v3982_v62  ;;  %4007 = vmatpush.bf16.msrb.mxu1 %v3983_v29 }
 0x67a   : > { %v4116_v51 = vpop.permute.xlu1 %4115 }
 0x67b   : > { %v4120_v31 = vpop.permute.xlu0 %4119 }
 0x67c   : > { %v4122_v45 = vsel %vm2717_vm10, %v4116_v51, %v4120_v31  ;;  %v4124_v50 = vsel %vm2717_vm10, %v4120_v31, %v4116_v51  ;;  %5089 = vmatmul.msk.bf16.vlgmr.msrb.gmra.mxu0 %vm857_vm2, %v3736_v13  ;;  %5090 = vmatmul.msk.bf16.vlgmr.msrb.gmra.mxu1 %vm857_vm2, %v3736_v13 }
 0x67d   : > { %v4127_v15 = vmul.f32 %v4122_v45, %v7581_v60  ;;  %v4128_v20 = vmul.f32 %v4124_v50, %v7582_v35 }
 0x67f   : > { %v4129_v26 = vpack.c.bf16 %v4127_v15, %v4125_v47  ;;  %v4130_v14 = vpack.c.bf16 %v4128_v20, %v4126_v32 }
 0x681   : > { %4141 = vmatpush.bf16.msra.mxu2 %v4129_v26  ;;  %4154 = vmatpush.bf16.msra.mxu3 %v4130_v14 }
 0x682   : > { %v4071_v52 = vpop.permute.xlu1 %4070 }
 0x683   : > { %v4069_v16 = vpop.permute.xlu0 %4068  ;;  %v4073_v39 = vsel %vm2507_vm9, %v4067_v57, %v4071_v52  ;;  %v4075_v12 = vsel %vm2507_vm9, %v4071_v52, %v4067_v57 }
 0x684   : > { %v4072_v43 = vsel %vm2507_vm9, %v4065_v23, %v4069_v16  ;;  %v4074_v21 = vsel %vm2507_vm9, %v4069_v16, %v4065_v23  ;;  %v4078_v30 = vmul.f32 %v4073_v39, %v7579_v25  ;;  %v4079_v53 = vmul.f32 %v4075_v12, %v7580_v4 }
 0x685   : > { %5095 = vmatmul.msk.bf16.vlgmr.msra.gmra.mxu2 %vm857_vm2, %v3739_v33  ;;  %v4076_v19 = vmul.f32 %v4072_v43, %v7579_v25  ;;  %v4077_v44 = vmul.f32 %v4074_v21, %v7580_v4  ;;  %5096 = vmatmul.msk.bf16.vlgmr.msra.gmra.mxu3 %vm857_vm2, %v3739_v33 }
 0x687   : > { %v4080_v63 = vpack.c.bf16 %v4078_v30, %v4076_v19  ;;  %v4081_v40 = vpack.c.bf16 %v4079_v53, %v4077_v44 }
 0x689   : > { %4092 = vmatpush.bf16.msra.mxu0 %v4080_v63  ;;  %4105 = vmatpush.bf16.msra.mxu1 %v4081_v40 }
 0x68c   : > { %5093 = vmatmul.msk.bf16.vlgmr.msra.gmra.mxu0 %vm857_vm2, %v3738_v56  ;;  %5094 = vmatmul.msk.bf16.vlgmr.msra.gmra.mxu1 %vm857_vm2, %v3738_v56 }
 0x6c7   : > { %v3789_v23 = vpop.f32.mrf.mxu2  ;;  %v3802_v18 = vpop.f32.mrf.mxu3 }
 0x6cf   : > { %v3791_v28 = vpop.f32.mrf.mxu2  ;;  %v3804_v5 = vpop.f32.mrf.mxu3 }
 0x6d8   : > { %v3865_v2 = vpop.f32.mrf.mxu2  ;;  %v3878_v38 = vpop.f32.mrf.mxu3 }
 0x6d9   : > { %v3818_v41 = vpop.f32.mrf.mxu0  ;;  %v3831_v34 = vpop.f32.mrf.mxu1 }
 0x6da   : > { %v3819_v20 = vadd.f32 %v3818_v41, %v3789_v23  ;;  %v3832_v14 = vadd.f32 %v3831_v34, %v3802_v18 }
 0x6dc   : > { %v3882_v52 = vadd.f32 %v3865_v2, %v3819_v20  ;;  %v3883_v16 = vadd.f32 %v3878_v38, %v3832_v14  ;;  %v4165_v38 = vpop.permute.xlu2 %4164 }
 0x6e0   : > { %v3867_v62 = vpop.f32.mrf.mxu2  ;;  %v3880_v29 = vpop.f32.mrf.mxu3 }
 0x6e1   : > { %v3820_v54 = vpop.f32.mrf.mxu0  ;;  %v3833_v13 = vpop.f32.mrf.mxu1 }
 0x6e8   : > { %v3947_v24 = vpop.f32.mrf.mxu2  ;;  %v3960_v37 = vpop.f32.mrf.mxu3 }
 0x6e9   : > { %v3914_v51 = vpop.f32.mrf.mxu0  ;;  %v3927_v31 = vpop.f32.mrf.mxu1 }
 0x6ea   : > { %v3931_v39 = vadd.f32 %v3914_v51, %v3882_v52  ;;  %v3932_v12 = vadd.f32 %v3927_v31, %v3883_v16 }
 0x6ec   : > { %v3964_v53 = vadd.f32 %v3947_v24, %v3931_v39  ;;  %v3965_v44 = vadd.f32 %v3960_v37, %v3932_v12 }
 0x6f0   : > { %v3949_v45 = vpop.f32.mrf.mxu2  ;;  %v3962_v50 = vpop.f32.mrf.mxu3 }
 0x6f1   : > { %v3916_v47 = vpop.f32.mrf.mxu0  ;;  %v3929_v32 = vpop.f32.mrf.mxu1 }
 0x6f8   : > { %v4045_v15 = vpop.f32.mrf.mxu2  ;;  %v4058_v26 = vpop.f32.mrf.mxu3 }
 0x6f9   : > { %v3996_v33 = vpop.f32.mrf.mxu0  ;;  %v4009_v57 = vpop.f32.mrf.mxu1 }
 0x6fa   : > { %v4013_v63 = vadd.f32 %v3996_v33, %v3964_v53  ;;  %v4014_v40 = vadd.f32 %v4009_v57, %v3965_v44 }
 0x6fc   : > { %v4062_v28 = vadd.f32 %v4045_v15, %v4013_v63  ;;  %v4063_v23 = vadd.f32 %v4058_v26, %v4014_v40  ;;  %v4208_v63 = vld [vmem:[%s7421_s21 + $0x8] sm:$0xff]  ;;  %v4207_v40 = vld [vmem:[%s7421_s21] sm:$0xff] }
 0x700   : > { %v4047_v43 = vpop.f32.mrf.mxu2  ;;  %v4060_v21 = vpop.f32.mrf.mxu3 }
 0x701   : > { %v3998_v30 = vpop.f32.mrf.mxu0  ;;  %v4011_v19 = vpop.f32.mrf.mxu1 }
 0x708   : > { %v4143_v56 = vpop.f32.mrf.mxu2  ;;  %v4156_v5 = vpop.f32.mrf.mxu3 }
 0x709   : > { %v4094_v41 = vpop.f32.mrf.mxu0  ;;  %v4107_v34 = vpop.f32.mrf.mxu1 }
 0x70a   : > { %v4111_v18 = vadd.f32 %v4094_v41, %v4062_v28  ;;  %v4112_v62 = vadd.f32 %v4107_v34, %v4063_v23 }
 0x70c   : > { %v4160_v2 = vadd.f32 %v4143_v56, %v4111_v18  ;;  %v4161_v29 = vadd.f32 %v4156_v5, %v4112_v62 }
 0x70e   : > { %v4167_v54 = vadd.f32 %v4165_v38, %v4160_v2  ;;  %v4168_v13 = vadd.f32 %v4165_v38, %v4161_v29 }
 0x710   : > { %v4145_v51 = vpop.f32.mrf.mxu2  ;;  %v4169_v31 = vmin.f32 %v4167_v54, 30.0  ;;  %v4158_v24 = vpop.f32.mrf.mxu3  ;;  %v4170_v45 = vmin.f32 %v4168_v13, 30.0 }
 0x711   : > { %v4096_v37 = vpop.f32.mrf.mxu0  ;;  %v4109_v47 = vpop.f32.mrf.mxu1 }
 0x712   : > { %v4171_v50 = vmul.f32 1.442695, %v4169_v31  ;;  %v4173_v32 = vmul.f32 1.442695, %v4170_v45 }
 0x714   : > { %5353 = vpow2.f32 %v4171_v50 }
 0x715   : > { %5355 = vpow2.f32 %v4173_v32 }
 0x71a   : > { %v5354_v15 = vpop.eup %5353 }
 0x71b   : > { %v5356_v20 = vpop.eup %5355  ;;  %v4175_v26 = vadd.f32 1.0, %v5354_v15 }
 0x71c   : > { %v4176_v14 = vadd.f32 1.0, %v5356_v20 }
 0x71d   : > { %v4177_v33 = vmul.f32 %v4175_v26, %v4175_v26 }
 0x71e   : > { %v4178_v57 = vmul.f32 %v4176_v14, %v4176_v14 }
 0x71f   : > { %v4179_v52 = vadd.f32 1.0, %v4177_v33 }
 0x720   : > { %v4180_v16 = vadd.f32 1.0, %v4178_v57 }
 0x721   : > { %5357 = vrcp.f32 %v4179_v52 }
 0x722   : > { %5359 = vrcp.f32 %v4180_v16 }
 0x727   : > { %v5358_v39 = vpop.eup %5357 }
 0x728   : > { %v5360_v12 = vpop.eup %5359  ;;  %v4183_v43 = vmul.f32 2.0, %v5358_v39 }
 0x729   : > { %v4184_v21 = vmul.f32 2.0, %v5360_v12 }
 0x72a   : > { %v4185_v30 = vsub.f32 1.0, %v4183_v43 }
 0x72b   : > { %v4186_v53 = vsub.f32 1.0, %v4184_v21 }
 0x72c   : > { %v7224_v19 = vmul.f32 %v4185_v30, %v4167_v54 }
 0x72d   : > { %v7226_v44 = vmul.f32 %v4186_v53, %v4168_v13  ;;  %v5197_v13 = vld [vmem:[%s7420_s20 + $0x8] sm:$0xff] }
 0x72e   : > { %4209 = vrot.lane.b32.xlu2 %v7224_v19, %s7558_s1  ;;  %4219 = vrot.lane.b32.xlu0 %v7224_v19, %s7559_s0  ;;  %v4427_v14 = vpack.c.bf16 %v7224_v19, %v7224_v19 }
 0x72f   : > { %4221 = vrot.lane.b32.xlu1 %v7226_v44, %s7559_s0  ;;  %v4428_v26 = vpack.c.bf16 %v7226_v44, %v7226_v44 }
 0x730   : > { %v4438_v43 = vsel %vm4238_vm11, %v4427_v14, 0 }
 0x731   : > { %v4441_v39 = vsel %vm4238_vm11, %v4428_v26, 0 }
 0x736   : > { %4317 = vrot.lane.b32.xlu2 %v7226_v44, %s7560_s26  ;;  %4211 = vrot.lane.b32.xlu0 %v7226_v44, %s7558_s1 }
 0x737   : > { %4315 = vrot.lane.b32.xlu1 %v7224_v19, %s7560_s26 }
 0x73e   : > { %4475 = vrot.lane.b32.xlu2 %v7224_v19, %s7562_s29  ;;  %4371 = vrot.lane.b32.xlu0 %v7224_v19, %s7561_s25 }
 0x73f   : > { %4373 = vrot.lane.b32.xlu1 %v7226_v44, %s7561_s25 }
 0x746   : > { %4533 = vrot.lane.b32.xlu2 %v7226_v44, %s7563_s30  ;;  %4477 = vrot.lane.b32.xlu0 %v7226_v44, %s7562_s29  ;;  %s5154_s29 = sshll.u32 %s7588_s28, 5 }
 0x747   : > { %4531 = vrot.lane.b32.xlu1 %v7224_v19, %s7563_s30 }
 0x74e   : > { %4643 = vrot.lane.b32.xlu2 %v7224_v19, %s7565_s24  ;;  %4587 = vrot.lane.b32.xlu0 %v7224_v19, %s7564_s2 }
 0x74f   : > { %4589 = vrot.lane.b32.xlu1 %v7226_v44, %s7564_s2 }
 0x756   : > { %4706 = vperm.xlu2 %5224, %v4208_v63   ;;  %4645 = vrot.lane.b32.xlu0 %v7226_v44, %s7565_s24  ;;  %s683_s24 = scalar_lea.vmem %s7422_s22, %s5154_s29 }
 0x757   : > { %4701 = vperm.xlu1 %5223, %v4207_v40  }
 0x788   : > { %v4210_v56 = vpop.permute.xlu2 %4209 }
 0x790   : > { %v4318_v62 = vpop.permute.xlu2 %4317 }
 0x798   : > { %v4476_v57 = vpop.permute.xlu2 %4475 }
 0x7a0   : > { %v4220_v28 = vpop.permute.xlu0 %4219 }
 0x7a1   : > { %v4222_v5 = vpop.permute.xlu1 %4221 }
 0x7a2   : > { %v4223_v23 = vsel %vm1175_vm3, %v4220_v28, %v4222_v5  ;;  %v4224_v41 = vsel %vm1175_vm3, %v4222_v5, %v4220_v28  ;;  %v5198_v5 = vld [vmem:[%s7420_s20 + $0x10] sm:$0xff] }
 0x7a3   : > { %v4225_v18 = vmul.f32 %v4224_v41, %v7567_v11  ;;  %v4226_v34 = vmul.f32 %v4223_v23, %v7568_v9  ;;  %v4534_v41 = vpop.permute.xlu2 %4533 }
 0x7a5   : > { %v4227_v2 = vpack.c.bf16 %v4225_v18, %v4225_v18  ;;  %v4228_v38 = vpack.c.bf16 %v4226_v34, %v4226_v34 }
 0x7a7   : > { %v4240_v29 = vsel %vm4238_vm11, %v4227_v2, 0  ;;  %v4243_v54 = vsel %vm4238_vm11, %v4228_v38, 0 }
 0x7a8   : > { %4252 = vmatpush.bf16.msrb.mxu0 %v4240_v29  ;;  %4266 = vmatpush.bf16.msrb.mxu1 %v4243_v54  ;;  %v4212_v51 = vpop.permute.xlu0 %4211 }
 0x7a9   : > { %v4316_v31 = vpop.permute.xlu1 %4315  ;;  %v4213_v11 = vsel %vm1115_vm4, %v4210_v56, %v4212_v51  ;;  %v4214_v9 = vsel %vm1115_vm4, %v4212_v51, %v4210_v56 }
 0x7aa   : > { %v4319_v24 = vsel %vm1511_vm5, %v4316_v31, %v4318_v62  ;;  %v4320_v45 = vsel %vm1511_vm5, %v4318_v62, %v4316_v31  ;;  %v4215_v37 = vmul.f32 %v4214_v9, %v7569_v0  ;;  %v4216_v50 = vmul.f32 %v4213_v11, %v7570_v58 }
 0x7ab   : > { %v4321_v47 = vmul.f32 %v4320_v45, %v7571_v1  ;;  %v4322_v32 = vmul.f32 %v4319_v24, %v7572_v36  ;;  %5101 = vmatmul.msk.bf16.vlgmr.msrb.gmra.mxu0 %vm4234_vm12, %v5197_v13  ;;  %5102 = vmatmul.msk.bf16.vlgmr.msrb.gmra.mxu1 %vm4234_vm12, %v5197_v13  ;;  %v5196_v36 = vld [vmem:[%s7420_s20] sm:$0xff] }
 0x7ac   : > { %v4217_v15 = vpack.c.bf16 %v4215_v37, %v4215_v37  ;;  %v4218_v20 = vpack.c.bf16 %v4216_v50, %v4216_v50 }
 0x7ad   : > { %v4323_v33 = vpack.c.bf16 %v4321_v47, %v4321_v47  ;;  %v4324_v0 = vpack.c.bf16 %v4322_v32, %v4322_v32 }
 0x7ae   : > { %v4282_v58 = vsel %vm4238_vm11, %v4217_v15, 0  ;;  %v4285_v1 = vsel %vm4238_vm11, %v4218_v20, 0 }
 0x7af   : > { %4294 = vmatpush.bf16.msrb.mxu2 %v4282_v58  ;;  %4308 = vmatpush.bf16.msrb.mxu3 %v4285_v1  ;;  %v4334_v52 = vsel %vm4238_vm11, %v4323_v33, 0  ;;  %v4337_v16 = vsel %vm4238_vm11, %v4324_v0, 0  ;;  %v5200_v33 = vld [vmem:[%s7420_s20 + $0x20] sm:$0xff]  ;;  %v4644_v0 = vpop.permute.xlu2 %4643 }
 0x7b0   : > { %4346 = vmatpush.bf16.msra.mxu0 %v4334_v52  ;;  %4360 = vmatpush.bf16.msra.mxu1 %v4337_v16  ;;  %v4372_v12 = vpop.permute.xlu0 %4371 }
 0x7b1   : > { %v4374_v21 = vpop.permute.xlu1 %4373 }
 0x7b2   : > { %v4375_v30 = vsel %vm1721_vm6, %v4372_v12, %v4374_v21  ;;  %v4376_v53 = vsel %vm1721_vm6, %v4374_v21, %v4372_v12  ;;  %5107 = vmatmul.msk.bf16.vlgmr.msrb.gmra.mxu2 %vm4234_vm12, %v5196_v36  ;;  %5108 = vmatmul.msk.bf16.vlgmr.msrb.gmra.mxu3 %vm4234_vm12, %v5196_v36  ;;  %v5201_v12 = vld [vmem:[%s7420_s20 + $0x28] sm:$0xff] }
 0x7b3   : > { %v4377_v19 = vmul.f32 %v4376_v53, %v7573_v46  ;;  %v4378_v44 = vmul.f32 %v4375_v30, %v7574_v22 }
 0x7b4   : > { %4464 = vmatpush.bf16.msrb.mxu1 %v4441_v39  ;;  %4450 = vmatpush.bf16.msrb.mxu0 %v4438_v43 }
 0x7b5   : > { %v4379_v63 = vpack.c.bf16 %v4377_v19, %v4377_v19  ;;  %v4380_v40 = vpack.c.bf16 %v4378_v44, %v4378_v44 }
 0x7b7   : > { %v4390_v56 = vsel %vm4238_vm11, %v4379_v63, 0  ;;  %v4393_v28 = vsel %vm4238_vm11, %v4380_v40, 0 }
 0x7b8   : > { %4402 = vmatpush.bf16.msra.mxu2 %v4390_v56  ;;  %4416 = vmatpush.bf16.msra.mxu3 %v4393_v28  ;;  %v4478_v23 = vpop.permute.xlu0 %4477 }
 0x7b9   : > { %v4532_v18 = vpop.permute.xlu1 %4531  ;;  %v4479_v46 = vsel %vm2087_vm7, %v4476_v57, %v4478_v23  ;;  %v4480_v22 = vsel %vm2087_vm7, %v4478_v23, %v4476_v57 }
 0x7ba   : > { %v4535_v34 = vsel %vm2297_vm8, %v4532_v18, %v4534_v41  ;;  %v4536_v62 = vsel %vm2297_vm8, %v4534_v41, %v4532_v18  ;;  %v4481_v2 = vmul.f32 %v4479_v46, %v7575_v42  ;;  %v4482_v38 = vmul.f32 %v4480_v22, %v7576_v27  ;;  %v5199_v42 = vld [vmem:[%s7420_s20 + $0x18] sm:$0xff] }
 0x7bb   : > { %v4537_v29 = vmul.f32 %v4535_v34, %v7577_v55  ;;  %v4538_v54 = vmul.f32 %v4536_v62, %v7578_v49  ;;  %5113 = vmatmul.msk.bf16.vlgmr.msra.gmra.mxu0 %vm4234_vm12, %v5198_v5  ;;  %5114 = vmatmul.msk.bf16.vlgmr.msra.gmra.mxu1 %vm4234_vm12, %v5198_v5 }
 0x7bc   : > { %v4483_v13 = vpack.c.bf16 %v4481_v2, %v4481_v2  ;;  %v4484_v51 = vpack.c.bf16 %v4482_v38, %v4482_v38 }
 0x7bd   : > { %v4539_v31 = vpack.c.bf16 %v4537_v29, %v4537_v29  ;;  %v4540_v11 = vpack.c.bf16 %v4538_v54, %v4538_v54 }
 0x7be   : > { %v4494_v9 = vsel %vm4238_vm11, %v4483_v13, 0  ;;  %v4497_v24 = vsel %vm4238_vm11, %v4484_v51, 0 }
 0x7bf   : > { %4506 = vmatpush.bf16.msrb.mxu2 %v4494_v9  ;;  %4520 = vmatpush.bf16.msrb.mxu3 %v4497_v24  ;;  %v4550_v27 = vsel %vm4238_vm11, %v4539_v31, 0  ;;  %v4553_v55 = vsel %vm4238_vm11, %v4540_v11, 0 }
 0x7c0   : > { %4562 = vmatpush.bf16.msra.mxu0 %v4550_v27  ;;  %4576 = vmatpush.bf16.msra.mxu1 %v4553_v55  ;;  %v4588_v49 = vpop.permute.xlu0 %4587 }
 0x7c1   : > { %v4590_v45 = vpop.permute.xlu1 %4589 }
 0x7c2   : > { %v4591_v37 = vsel %vm2507_vm9, %v4588_v49, %v4590_v45  ;;  %v4592_v50 = vsel %vm2507_vm9, %v4590_v45, %v4588_v49  ;;  %5119 = vmatmul.msk.bf16.vlgmr.msra.gmra.mxu2 %vm4234_vm12, %v5199_v42  ;;  %5120 = vmatmul.msk.bf16.vlgmr.msra.gmra.mxu3 %vm4234_vm12, %v5199_v42 }
 0x7c3   : > { %v4593_v47 = vmul.f32 %v4591_v37, %v7579_v25  ;;  %v4594_v32 = vmul.f32 %v4592_v50, %v7580_v4 }
 0x7c5   : > { %v4595_v15 = vpack.c.bf16 %v4593_v47, %v4593_v47  ;;  %v4596_v20 = vpack.c.bf16 %v4594_v32, %v4594_v32 }
 0x7c7   : > { %v4606_v26 = vsel %vm4238_vm11, %v4595_v15, 0  ;;  %v4609_v14 = vsel %vm4238_vm11, %v4596_v20, 0 }
 0x7c8   : > { %4618 = vmatpush.bf16.msra.mxu2 %v4606_v26  ;;  %4632 = vmatpush.bf16.msra.mxu3 %v4609_v14  ;;  %v4646_v58 = vpop.permute.xlu0 %4645 }
 0x7c9   : > { %v4647_v1 = vsel %vm2717_vm10, %v4644_v0, %v4646_v58  ;;  %v4648_v25 = vsel %vm2717_vm10, %v4646_v58, %v4644_v0 }
 0x7ca   : > { %v4649_v4 = vmul.f32 %v4647_v1, %v7581_v60  ;;  %v4650_v36 = vmul.f32 %v4648_v25, %v7582_v35  ;;  %v5203_v60 = vld [vmem:[%s7420_s20 + $0x38] sm:$0xff]  ;;  %v5204_v35 = vld [vmem:[%s7420_s20 + $0x40] sm:$0xff] }
 0x7cb   : > { %5125 = vmatmul.msk.bf16.vlgmr.msrb.gmra.mxu0 %vm4234_vm12, %v5200_v33  ;;  %5126 = vmatmul.msk.bf16.vlgmr.msrb.gmra.mxu1 %vm4234_vm12, %v5200_v33 }
 0x7cc   : > { %v4651_v57 = vpack.c.bf16 %v4649_v4, %v4649_v4  ;;  %v4652_v52 = vpack.c.bf16 %v4650_v36, %v4650_v36 }
 0x7ce   : > { %v4662_v16 = vsel %vm4238_vm11, %v4651_v57, 0  ;;  %v4665_v39 = vsel %vm4238_vm11, %v4652_v52, 0 }
 0x7cf   : > { %4674 = vmatpush.bf16.msrb.mxu0 %v4662_v16  ;;  %4688 = vmatpush.bf16.msrb.mxu1 %v4665_v39 }
 0x7d2   : > { %5131 = vmatmul.msk.bf16.vlgmr.msrb.gmra.mxu2 %vm4234_vm12, %v5201_v12  ;;  %5132 = vmatmul.msk.bf16.vlgmr.msrb.gmra.mxu3 %vm4234_vm12, %v5201_v12 }
 0x7db   : > { %5137 = vmatmul.msk.bf16.vlgmr.msra.gmra.mxu0 %vm4234_vm12, %v5202_v59  ;;  %5138 = vmatmul.msk.bf16.vlgmr.msra.gmra.mxu1 %vm4234_vm12, %v5202_v59 }
 0x7e2   : > { %5143 = vmatmul.msk.bf16.vlgmr.msra.gmra.mxu2 %vm4234_vm12, %v5203_v60  ;;  %5144 = vmatmul.msk.bf16.vlgmr.msra.gmra.mxu3 %vm4234_vm12, %v5203_v60 }
 0x7eb   : > { %5149 = vmatmul.msk.bf16.vlgmr.msrb.gmra.mxu0 %vm4234_vm12, %v5204_v35  ;;  %5150 = vmatmul.msk.bf16.vlgmr.msrb.gmra.mxu1 %vm4234_vm12, %v5204_v35 }
 0x828   : > { %v4254_v43 = vpop.f32.mrf.mxu0  ;;  %v4268_v21 = vpop.f32.mrf.mxu1 }
 0x830   : > { %v4256_v30 = vpop.f32.mrf.mxu0  ;;  %v4270_v53 = vpop.f32.mrf.mxu1 }
 0x835   : > { %v4296_v19 = vpop.f32.mrf.mxu2  ;;  %v4310_v44 = vpop.f32.mrf.mxu3 }
 0x836   : > { %v4297_v29 = vadd.f32 %v4296_v19, %v4254_v43  ;;  %v4311_v54 = vadd.f32 %v4310_v44, %v4268_v21 }
 0x838   : > { %v4348_v63 = vpop.f32.mrf.mxu0  ;;  %v4362_v40 = vpop.f32.mrf.mxu1 }
 0x839   : > { %v4367_v31 = vadd.f32 %v4348_v63, %v4297_v29  ;;  %v4368_v11 = vadd.f32 %v4362_v40, %v4311_v54 }
 0x83d   : > { %v4298_v56 = vpop.f32.mrf.mxu2  ;;  %v4312_v28 = vpop.f32.mrf.mxu3 }
 0x83e   : > { %v4299_v55 = vadd.f32 %v4298_v56, %v4256_v30  ;;  %v4313_v49 = vadd.f32 %v4312_v28, %v4270_v53  ;;  %v4702_v30 = vpop.permute.xlu1 %4701 }
 0x840   : > { %v4350_v5 = vpop.f32.mrf.mxu0  ;;  %v4364_v23 = vpop.f32.mrf.mxu1 }
 0x841   : > { %v4369_v32 = vadd.f32 %v4350_v5, %v4299_v55  ;;  %v4370_v15 = vadd.f32 %v4364_v23, %v4313_v49 }
 0x845   : > { %v4404_v41 = vpop.f32.mrf.mxu2  ;;  %v4418_v18 = vpop.f32.mrf.mxu3 }
 0x846   : > { %v4423_v42 = vadd.f32 %v4404_v41, %v4367_v31  ;;  %v4424_v27 = vadd.f32 %v4418_v18, %v4368_v11 }
 0x848   : > { %v4452_v46 = vpop.f32.mrf.mxu0  ;;  %v4466_v22 = vpop.f32.mrf.mxu1 }
 0x849   : > { %v4471_v50 = vadd.f32 %v4452_v46, %v4423_v42  ;;  %v4472_v47 = vadd.f32 %v4466_v22, %v4424_v27 }
 0x84d   : > { %v4406_v34 = vpop.f32.mrf.mxu2  ;;  %v4420_v62 = vpop.f32.mrf.mxu3 }
 0x84e   : > { %v4425_v0 = vadd.f32 %v4406_v34, %v4369_v32  ;;  %v4426_v58 = vadd.f32 %v4420_v62, %v4370_v15 }
 0x850   : > { %v4454_v2 = vpop.f32.mrf.mxu0  ;;  %v4468_v38 = vpop.f32.mrf.mxu1 }
 0x851   : > { %v4473_v57 = vadd.f32 %v4454_v2, %v4425_v0  ;;  %v4474_v52 = vadd.f32 %v4468_v38, %v4426_v58  ;;  %v4707_v38 = vpop.permute.xlu2 %4706 }
 0x855   : > { %v4508_v13 = vpop.f32.mrf.mxu2  ;;  %v4522_v51 = vpop.f32.mrf.mxu3 }
 0x856   : > { %v4527_v20 = vadd.f32 %v4508_v13, %v4471_v50  ;;  %v4528_v26 = vadd.f32 %v4522_v51, %v4472_v47 }
 0x858   : > { %v4564_v9 = vpop.f32.mrf.mxu0  ;;  %v4578_v24 = vpop.f32.mrf.mxu1 }
 0x859   : > { %v4583_v1 = vadd.f32 %v4564_v9, %v4527_v20  ;;  %v4584_v25 = vadd.f32 %v4578_v24, %v4528_v26 }
 0x85d   : > { %v4510_v45 = vpop.f32.mrf.mxu2  ;;  %v4524_v37 = vpop.f32.mrf.mxu3 }
 0x85e   : > { %v4529_v12 = vadd.f32 %v4510_v45, %v4473_v57  ;;  %v4530_v59 = vadd.f32 %v4524_v37, %v4474_v52 }
 0x860   : > { %v4566_v14 = vpop.f32.mrf.mxu0  ;;  %v4580_v33 = vpop.f32.mrf.mxu1 }
 0x861   : > { %v4585_v44 = vadd.f32 %v4566_v14, %v4529_v12  ;;  %v4586_v63 = vadd.f32 %v4580_v33, %v4530_v59 }
 0x865   : > { %v4620_v4 = vpop.f32.mrf.mxu2  ;;  %v4634_v36 = vpop.f32.mrf.mxu3 }
 0x866   : > { %v4639_v16 = vadd.f32 %v4620_v4, %v4583_v1  ;;  %v4640_v39 = vadd.f32 %v4634_v36, %v4584_v25 }
 0x868   : > { %v4676_v60 = vpop.f32.mrf.mxu0  ;;  %v4690_v35 = vpop.f32.mrf.mxu1 }
 0x869   : > { %v4695_v43 = vadd.f32 %v4676_v60, %v4639_v16  ;;  %v4696_v21 = vadd.f32 %v4690_v35, %v4640_v39 }
 0x86b   : > { %v4709_v53 = vadd.f32 %v4702_v30, %v4695_v43  ;;  %v4710_v19 = vadd.f32 %v4702_v30, %v4696_v21 }
 0x86d   : > { %v4713_v40 = vmin.f32 %v4709_v53, 30.0  ;;  %v4714_v56 = vmin.f32 %v4710_v19, 30.0  ;;  %v4622_v28 = vpop.f32.mrf.mxu2  ;;  %v4636_v5 = vpop.f32.mrf.mxu3 }
 0x86e   : > { %v4641_v23 = vadd.f32 %v4622_v28, %v4585_v44  ;;  %v4642_v41 = vadd.f32 %v4636_v5, %v4586_v63 }
 0x86f   : > { %v4717_v18 = vmul.f32 1.442695, %v4713_v40  ;;  %v4719_v46 = vmul.f32 1.442695, %v4714_v56 }
 0x870   : > { %v4678_v22 = vpop.f32.mrf.mxu0  ;;  %v4692_v34 = vpop.f32.mrf.mxu1 }
 0x871   : > { %5361 = vpow2.f32 %v4717_v18  ;;  %v4697_v62 = vadd.f32 %v4678_v22, %v4641_v23  ;;  %v4698_v2 = vadd.f32 %v4692_v34, %v4642_v41 }
 0x872   : > { %5363 = vpow2.f32 %v4719_v46 }
 0x873   : > { %v4711_v29 = vadd.f32 %v4707_v38, %v4697_v62  ;;  %v4712_v54 = vadd.f32 %v4707_v38, %v4698_v2 }
 0x875   : > { %v4715_v13 = vmin.f32 %v4711_v29, 30.0  ;;  %v4716_v51 = vmin.f32 %v4712_v54, 30.0 }
 0x877   : > { %v5362_v31 = vpop.eup %5361  ;;  %v4721_v11 = vmul.f32 1.442695, %v4715_v13  ;;  %v4723_v9 = vmul.f32 1.442695, %v4716_v51 }
 0x878   : > { %v5364_v24 = vpop.eup %5363  ;;  %v4725_v42 = vadd.f32 1.0, %v5362_v31 }
 0x879   : > { %v4726_v27 = vadd.f32 1.0, %v5364_v24  ;;  %5365 = vpow2.f32 %v4721_v11 }
 0x87a   : > { %v4729_v55 = vmul.f32 %v4725_v42, %v4725_v42  ;;  %5367 = vpow2.f32 %v4723_v9 }
 0x87b   : > { %v4730_v49 = vmul.f32 %v4726_v27, %v4726_v27 }
 0x87c   : > { %v4733_v45 = vadd.f32 1.0, %v4729_v55 }
 0x87d   : > { %v4734_v37 = vadd.f32 1.0, %v4730_v49 }
 0x87e   : > { %5369 = vrcp.f32 %v4733_v45 }
 0x87f   : > { %v5366_v50 = vpop.eup %5365  ;;  %5371 = vrcp.f32 %v4734_v37 }
 0x880   : > { %v5368_v47 = vpop.eup %5367  ;;  %v4727_v32 = vadd.f32 1.0, %v5366_v50 }
 0x881   : > { %v4728_v15 = vadd.f32 1.0, %v5368_v47 }
 0x882   : > { %v4731_v20 = vmul.f32 %v4727_v32, %v4727_v32 }
 0x883   : > { %v4732_v26 = vmul.f32 %v4728_v15, %v4728_v15 }
 0x884   : > { %v5370_v14 = vpop.eup %5369  ;;  %v4735_v33 = vadd.f32 1.0, %v4731_v20 }
 0x885   : > { %v5372_v0 = vpop.eup %5371  ;;  %v4741_v58 = vmul.f32 2.0, %v5370_v14  ;;  %v4736_v1 = vadd.f32 1.0, %v4732_v26 }
 0x886   : > { %v4742_v25 = vmul.f32 2.0, %v5372_v0  ;;  %5373 = vrcp.f32 %v4735_v33 }
 0x887   : > { %v4745_v4 = vsub.f32 1.0, %v4741_v58  ;;  %5375 = vrcp.f32 %v4736_v1 }
 0x888   : > { %v4746_v36 = vsub.f32 1.0, %v4742_v25 }
 0x889   : > { %v4749_v57 = vmul.f32 %v4745_v4, %v4709_v53 }
 0x88a   : > { %v4750_v52 = vmul.f32 %v4746_v36, %v4710_v19 }
 0x88b   : > { %v4753_v16 = vadd.f32 %v4749_v57, %v6995_v48 }
 0x88c   : > { %v5374_v39 = vpop.eup %5373  ;;  %v4754_v12 = vadd.f32 %v4750_v52, %v6999_v6 }
 0x88d   : > { %v5376_v59 = vpop.eup %5375  ;;  %v4757_v60 = vmul.f32 %v4753_v16, %v6972_v3  ;;  %v4743_v35 = vmul.f32 2.0, %v5374_v39 }
 0x88e   : > { %v4758_v43 = vmul.f32 %v4754_v12, %v6972_v3  ;;  %v4744_v21 = vmul.f32 2.0, %v5376_v59 }
 0x88f   : > { %v4761_v30 = vadd.f32 %v4757_v60, %v6974_v8  ;;  %v4747_v53 = vsub.f32 1.0, %v4743_v35 }
 0x890   : > { %v4762_v19 = vadd.f32 %v4758_v43, %v6974_v8  ;;  %v4748_v48 = vsub.f32 1.0, %v4744_v21 }
 0x891   : > { %4765 = vst [vmem:[%s683_s24] sm:$0xff] %v4761_v30  ;;  %v4751_v44 = vmul.f32 %v4747_v53, %v4711_v29 }
 0x892   : > { %4766 = vst [vmem:[%s683_s24 + $0x8] sm:$0xff] %v4762_v19  ;;  %v4752_v6 = vmul.f32 %v4748_v48, %v4712_v54 }
 0x893   : > { %v4755_v63 = vadd.f32 %v4751_v44, %v7013_v10 }
 0x894   : > { %v4756_v40 = vadd.f32 %v4752_v6, %v7016_v17 }
 0x895   : > { %v4759_v56 = vmul.f32 %v4755_v63, %v6981_v7 }
 0x896   : > { %v4760_v28 = vmul.f32 %v4756_v40, %v6981_v7 }
 0x897   : > { %v4763_v3 = vadd.f32 %v4759_v56, %v6991_v61 }
 0x898   : > { %v4764_v5 = vadd.f32 %v4760_v28, %v6991_v61 }
 0x899   : > { %4767 = vst [vmem:[%s683_s24 + $0x10] sm:$0xff] %v4763_v3 }
 0x89a   : > { %4768 = vst [vmem:[%s683_s24 + $0x18] sm:$0xff] %v4764_v5 }
 0x89b PF: > { %s32_s3 = sadd.s32 1, %s5383_s3  }
 0x89c   : > { %p29_p4 = scmp.ge.s32.totalorder %s32_s3, 4  }
 0x89e   :  { %31 = sbr.rel (!%p29_p4) target bundleno = 15 (0xf), region = 138 }

</bundles_post_ra>
